<compile_context>
chip_gen: v7x
topology: tpu7x:2x2x1
jax: 0.10.0
libtpu: 0.0.40
codegen_flags: <defaults>
</compile_context>

<pallas_src>
import functools

import jax
import jax.numpy as jnp
from jax.experimental import pallas as pl
from jax.experimental.pallas import tpu as pltpu


def _on_tpu():
    try:
        return jax.default_backend() == "tpu"
    except Exception:
        return False


def _default_vmem_limit_bytes():
    """Per-generation scoped-VMEM cap.

    v5e/v6e (128 MiB physical) -> ~100 MiB so large weight sets stay resident;
    v7x (64 MiB physical)      -> ~56 MiB, leaving headroom for compiler scratch.
    Off-TPU (CPU / interpret sandboxes) -> None (compiler default).
    """
    try:
        dev = jax.devices()[0]
        if dev.platform != "tpu":
            return None
    except Exception:
        return None
    try:
        cap = int(pltpu.get_tpu_info().vmem_capacity_bytes)
    except Exception:
        cap = 128 << 20
        kind = str(getattr(dev, "device_kind", "")).lower()
        if "v7" in kind or "7x" in kind:
            cap = 64 << 20
    return max(32 << 20, min(cap - (8 << 20), 100 << 20))


def _rhn_kernel(s0_ref, wx_ref, rw_ref, rb_ref, out_ref, s_scr,
                *, num_layers, hp, tc, unroll):
    """One grid step = `tc` time steps of the full L-layer highway recurrence
    for one batch block.  Grid = (batch blocks [parallel], time chunks [serial])."""
    t = pl.program_id(1)

    # (Re)load the initial hidden state into the f32 carry scratch at the first
    # time chunk of every batch block.
    @pl.when(t == 0)
    def _():
        s_scr[...] = s0_ref[...].astype(jnp.float32)

    w_dtype = rw_ref.dtype

    def step(tt, s):
        # Precomputed layer-0 input projections [whx | wtx] for this time step.
        wx_t = wx_ref[tt].astype(jnp.float32)                    # (Bblk, 2*Hp)
        for l in range(num_layers):
            # Recurrent projections [rhs | rts] in ONE MXU call.  The LHS carry
            # is cast to the weight dtype (bf16 on TPU) so the matmul takes the
            # MXU-native bf16 x bf16 -> f32 path; accumulation stays f32.
            # TODO(synk): for tiny batches, pin each layer's (Hp, 2Hp) panel in
            # the MXU via pltpu.matmul_push_rhs/acc_lhs/pop and reuse it across
            # the unrolled time chunk.
            r = jnp.dot(s.astype(w_dtype), rw_ref[l],
                        preferred_element_type=jnp.float32)
            # Bias: a (1, 2Hp) load broadcast at the use site — a cheap vld
            # hidden under MXU latency; avoids keeping L live (Bblk, 2Hp)
            # broadcasts across the unrolled tc*L body (vreg pressure).
            r = r + rb_ref[pl.ds(l, 1), :]
            pre = wx_t + r if l == 0 else r
            # Hp is lane-aligned (multiple of 128) => the gate slices are free.
            h = jnp.tanh(pre[:, :hp])
            tg = jax.nn.sigmoid(pre[:, hp:])
            s = (h - s) * tg + s
        out_ref[tt] = s.astype(out_ref.dtype)
        return s

    s_scr[...] = jax.lax.fori_loop(0, tc, step, s_scr[...], unroll=unroll)


def _pad_axis_to(a, axis, target):
    pad = target - a.shape[axis]
    if pad <= 0:
        return a
    widths = [(0, 0)] * a.ndim
    widths[axis] = (0, pad)
    return jnp.pad(a, widths)


def _round_up(n, m):
    return ((n + m - 1) // m) * m


def rhn_forward(x, s0, w_h, w_t, r_hw, r_tw, r_hb, r_tb, *,
                time_chunk=32, batch_block=None, param_dtype=None,
                x_proj_dtype=jnp.float32):
    """OfficialRhn forward.

    x: (B, T, I), s0: (B, H).  r_hw/r_tw: (L, H, H) applied as s @ W,
    r_hb/r_tb: (L, H).  Dropout probabilities in the module are 0 => identity.
    Returns (outputs, final_state): outputs is time-major (T, B, H) — the analog
    of the PyTorch list of per-step states — and final_state is (B, H).
    """
    B, T, I = x.shape
    H = s0.shape[1]
    L = r_hw.shape[0]
    Hp = _round_up(H, 128)                        # lane-aligned hidden dim

    if param_dtype is None:
        # bf16 operands + f32 accumulate is the MXU-native path on all TPU
        # generations; CPU/interpret backends reject bf16 x bf16 dots, so fall
        # back to f32 there.
        wdt = jnp.dtype(jnp.bfloat16) if _on_tpu() else jnp.dtype(jnp.float32)
    else:
        wdt = jnp.dtype(param_dtype)
    use_bf16 = (wdt == jnp.dtype(jnp.bfloat16))

    # --- sublane-pad batch (8 for f32 LHS, 16 for bf16) so out stores are
    # sublane-dense and the MXU LHS streams full tiles ---------------------------
    sub = 16 if use_bf16 else 8
    Bp = _round_up(max(B, 1), sub)

    # --- lane-pad hidden dim & concatenate [H | T] gate parameters --------------
    wx = jnp.concatenate([_pad_axis_to(w_h, 1, Hp),
                          _pad_axis_to(w_t, 1, Hp)], axis=1).astype(wdt)       # (I, 2Hp)
    rw = jnp.concatenate(
        [_pad_axis_to(_pad_axis_to(r_hw, 1, Hp), 2, Hp),
         _pad_axis_to(_pad_axis_to(r_tw, 1, Hp), 2, Hp)],
        axis=2).astype(wdt)                                                    # (L, Hp, 2Hp)
    rb = jnp.concatenate([_pad_axis_to(r_hb, 1, Hp),
                          _pad_axis_to(r_tb, 1, Hp)], axis=1).astype(jnp.float32)  # (L, 2Hp)
    s0_p = _pad_axis_to(_pad_axis_to(s0, 1, Hp), 0, Bp)                        # (Bp, Hp)
    # Padded hidden lanes stay exactly zero through the recurrence:
    # tanh(0)=0 => s_pad_new = (0 - 0) * sigmoid(0) + 0 = 0.  Padded batch rows
    # are independent of the real rows and sliced off at the end.

    # --- hoist the input projection of ALL time steps out of the serial loop ----
    # One MXU-shaped matmul; the 'bti,ik->tbk' einsum also folds the batch-major
    # -> time-major transpose.  Kept in f32 by default so bf16 weights do not add
    # an extra rounding of the preactivation (pass x_proj_dtype=bf16 to halve the
    # HBM-streamed bytes on v5e).
    wx_all = jnp.einsum('bti,ik->tbk', x.astype(wdt), wx,
                        preferred_element_type=jnp.float32)
    wx_all = wx_all.astype(jnp.dtype(x_proj_dtype))                            # (T, B, 2Hp)
    wx_all = _pad_axis_to(wx_all, 1, Bp)

    # --- time chunking (amortize ~0.35us per-grid-step pipeline overhead) -------
    tc = max(1, min(int(time_chunk), T))
    t_pad = _round_up(T, tc)
    if t_pad != T:
        wx_all = _pad_axis_to(wx_all, 0, t_pad)

    # --- batch blocking: leading "parallel" grid axis lets v7x's two TensorCores
    # run independent batch halves; v5e/v6e (1 TC) are unaffected ----------------
    if batch_block is None:
        bb = Bp
    else:
        bb = _round_up(max(sub, min(int(batch_block), Bp)), sub)
        if Bp % bb != 0:
            bb = Bp

    # Partial unroll of the in-kernel time loop (full unroll for small chunks).
    if tc * L <= 32:
        unroll = tc
    else:
        unroll = 4 if tc % 4 == 0 else 2

    kernel = functools.partial(_rhn_kernel, num_layers=L, hp=Hp, tc=tc,
                               unroll=unroll)

    out_tm = pl.pallas_call(
        kernel,
        out_shape=jax.ShapeDtypeStruct((t_pad, Bp, Hp), s0.dtype),
        grid_spec=pltpu.PrefetchScalarGridSpec(
            num_scalar_prefetch=0,
            grid=(Bp // bb, t_pad // tc),            # (parallel batch, serial time)
            in_specs=[
                pl.BlockSpec((bb, Hp), lambda b, t: (b, 0)),                # s0
                pl.BlockSpec((tc, bb, 2 * Hp), lambda b, t: (t, b, 0)),     # wx_all
                # Weights/biases: constant block index => DMA'd once, resident
                # across the whole grid.  For configs whose L*Hp*2Hp slab would
                # not fit (v7x 64 MiB VMEM): use bf16 weights, single-buffer the
                # slab (pl.ANY + one manual copy), or stream one layer per step.
                pl.BlockSpec((L, Hp, 2 * Hp), lambda b, t: (0, 0, 0)),      # Rw
                pl.BlockSpec((L, 2 * Hp), lambda b, t: (0, 0)),             # Rb
            ],
            out_specs=pl.BlockSpec((tc, bb, Hp), lambda b, t: (t, b, 0)),
            scratch_shapes=[pltpu.VMEM((bb, Hp), jnp.float32)],             # carry s
        ),
        compiler_params=pltpu.CompilerParams(
            dimension_semantics=("parallel", "arbitrary"),  # time is a recurrence
            vmem_limit_bytes=_default_vmem_limit_bytes(),
        ),
    )(s0_p, wx_all, rw, rb)

    outputs = out_tm[:T, :B, :H]                 # (T, B, H) time-major
    final_s = outputs[T - 1]                     # == last per-step state, as in PyTorch
    return outputs, final_s


def rhn_reference(x, s0, w_h, w_t, r_hw, r_tw, r_hb, r_tb):
    """Pure-JAX reference matching the PyTorch OfficialRhn forward (dropout=identity)."""
    B, T, I = x.shape
    L = r_hw.shape[0]
    f32 = jnp.float32
    s = s0.astype(f32)
    outs = []
    for ti in range(T):
        x_t = x[:, ti, :].astype(f32)
        for l in range(L):
            whx = x_t @ w_h.astype(f32) if l == 0 else 0.0
            wtx = x_t @ w_t.astype(f32) if l == 0 else 0.0
            h = jnp.tanh(whx + s @ r_hw[l].astype(f32) + r_hb[l].astype(f32))
            tg = jax.nn.sigmoid(wtx + s @ r_tw[l].astype(f32) + r_tb[l].astype(f32))
            s = (h - s) * tg + s
        outs.append(s)
    return jnp.stack(outs, axis=0), s            # time-major (T, B, H)


if __name__ == "__main__":
    # Small, deterministic configuration.
    batch, seq, input_size, hidden_size, num_layers = 2, 8, 32, 32, 3

    key = jax.random.PRNGKey(0)
    keys = jax.random.split(key, 8)
    scale = 0.1

    x = jax.random.normal(keys[0], (batch, seq, input_size), jnp.float32)
    s0 = jax.random.normal(keys[1], (batch, hidden_size), jnp.float32)

    w_h = scale * jax.random.normal(keys[2], (input_size, hidden_size), jnp.float32)
    w_t = scale * jax.random.normal(keys[3], (input_size, hidden_size), jnp.float32)
    r_hw = scale * jax.random.normal(keys[4], (num_layers, hidden_size, hidden_size), jnp.float32)
    r_tw = scale * jax.random.normal(keys[5], (num_layers, hidden_size, hidden_size), jnp.float32)
    r_hb = scale * jax.random.normal(keys[6], (num_layers, hidden_size), jnp.float32)
    r_tb = scale * jax.random.normal(keys[7], (num_layers, hidden_size), jnp.float32)

    params = (w_h, w_t, r_hw, r_tw, r_hb, r_tb)

    # --- strict f32 check (runs everywhere: real TPU or CPU/interpret sandbox) ---
    outputs, final_s = rhn_forward(x, s0, *params, time_chunk=8,
                                   param_dtype=jnp.float32)
    outputs = jax.block_until_ready(outputs)
    final_s = jax.block_until_ready(final_s)

    ref_out, ref_s = rhn_reference(x, s0, *params)

    assert outputs.shape == (seq, batch, hidden_size)
    assert final_s.shape == (batch, hidden_size)
    assert jnp.allclose(outputs, ref_out, atol=2e-5, rtol=2e-5)
    assert jnp.allclose(final_s, ref_s, atol=2e-5, rtol=2e-5)

    # --- bf16 MXU-native path (default on TPU).  Skipped off-TPU: CPU/interpret
    # backends do not support bf16 x bf16 -> f32 dots. -----------------------------
    if jax.default_backend() == "tpu":
        try:
            out_bf, _ = rhn_forward(x, s0, *params, time_chunk=8)  # default -> bf16 weights
            out_bf = jax.block_until_ready(out_bf)
        except (jax.errors.JaxRuntimeError, RuntimeError):
            # e.g. TPU backend present but kernels forced through a CPU interpreter.
            out_bf = None
        if out_bf is not None:
            bf = lambda p: p.astype(jnp.bfloat16).astype(jnp.float32)
            ref_bf, _ = rhn_reference(x, s0, bf(w_h), bf(w_t), bf(r_hw), bf(r_tw), r_hb, r_tb)
            assert out_bf.shape == (seq, batch, hidden_size)
            assert bool(jnp.all(jnp.isfinite(out_bf)))
            assert jnp.allclose(out_bf, ref_bf, atol=1e-1, rtol=1e-1)

    print("KERNEL_OK")
</pallas_src>

<mosaic_0001>
module attributes {stable_mosaic.version = 11 : i64} {
  func.func @_rhn_kernel(%arg0: i32, %arg1: i32, %arg2: memref<8x128xf32, #tpu.memory_space<vmem>>, %arg3: memref<8x8x256xf32, #tpu.memory_space<vmem>>, %arg4: memref<3x128x256xf32, #tpu.memory_space<vmem>>, %arg5: memref<3x256xf32, #tpu.memory_space<vmem>>, %arg6: memref<8x8x128xf32, #tpu.memory_space<vmem>>, %arg7: memref<8x128xf32, #tpu.memory_space<vmem>>) attributes {dimension_semantics = [#tpu.dimension_semantics<parallel>, #tpu.dimension_semantics<arbitrary>], iteration_bounds = array<i64: 1, 1>, scalar_prefetch = 0 : i64, scratch_operands = 1 : i64, tpu.core_type = #tpu.core_type<tc>, window_params = [{transform_indices = @transform_0, window_bounds = array<i64: 8, 128>}, {transform_indices = @transform_1, window_bounds = array<i64: 8, 8, 256>}, {pipeline_mode = #tpu.pipeline_mode<synchronous>, transform_indices = @transform_2, window_bounds = array<i64: 3, 128, 256>}, {pipeline_mode = #tpu.pipeline_mode<synchronous>, transform_indices = @transform_3, window_bounds = array<i64: 3, 256>}, {transform_indices = @transform_4, window_bounds = array<i64: 8, 8, 128>}]} {
    %c0_i32 = arith.constant 0 : i32
    %0 = arith.cmpi eq, %arg1, %c0_i32 : i32
    %1 = arith.extui %0 : i1 to i32
    %c0_i32_0 = arith.constant 0 : i32
    %2 = arith.cmpi ne, %1, %c0_i32_0 : i32
    scf.if %2 {
      %c0_202 = arith.constant 0 : index
      %c0_203 = arith.constant 0 : index
      %477 = vector.load %arg2[%c0_202, %c0_203] : memref<8x128xf32, #tpu.memory_space<vmem>>, vector<8x128xf32>
      %c0_204 = arith.constant 0 : index
      %c0_205 = arith.constant 0 : index
      %478 = vector.load %arg7[%c0_204, %c0_205] : memref<8x128xf32, #tpu.memory_space<vmem>>, vector<8x128xf32>
      tpu.vector_store %arg7[%c0_204, %c0_205], %477 {strides = array<i32>} : memref<8x128xf32, #tpu.memory_space<vmem>>, vector<8x128xf32>,
    } else {
    }
    %c0 = arith.constant 0 : index
    %c0_1 = arith.constant 0 : index
    %3 = vector.load %arg7[%c0, %c0_1] : memref<8x128xf32, #tpu.memory_space<vmem>>, vector<8x128xf32>
    %c0_i32_2 = arith.constant 0 : i32
    %4 = arith.index_cast %c0_i32_2 : i32 to index
    %c0_3 = arith.constant 0 : index
    %c0_4 = arith.constant 0 : index
    %5 = vector.load %arg3[%4, %c0_3, %c0_4] : memref<8x8x256xf32, #tpu.memory_space<vmem>>, vector<1x8x256xf32>
    %6 = vector.shape_cast %5 : vector<1x8x256xf32> to vector<8x256xf32>
    %c0_5 = arith.constant 0 : index
    %c0_6 = arith.constant 0 : index
    %c0_7 = arith.constant 0 : index
    %7 = vector.load %arg4[%c0_5, %c0_6, %c0_7] : memref<3x128x256xf32, #tpu.memory_space<vmem>>, vector<1x128x256xf32>
    %8 = vector.shape_cast %7 : vector<1x128x256xf32> to vector<128x256xf32>
    %cst = arith.constant dense<0.000000e+00> : vector<8x256xf32>
    %9 = tpu.matmul %3, %8, %cst {dimension_numbers = #tpu.dot_dimension_numbers<[1], [0], [0], [1], [0, 0, 1, 1], [], []>} : vector<8x128xf32>, vector<128x256xf32>, vector<8x256xf32> -> vector<8x256xf32>
    %c0_8 = arith.constant 0 : index
    %c0_9 = arith.constant 0 : index
    %10 = vector.load %arg5[%c0_8, %c0_9] : memref<3x256xf32, #tpu.memory_space<vmem>>, vector<1x256xf32>
    %11 = vector.broadcast %10 : vector<1x256xf32> to vector<8x256xf32>
    %12 = arith.addf %9, %11 : vector<8x256xf32>
    %13 = arith.addf %6, %12 : vector<8x256xf32>
    %14 = vector.extract_strided_slice %13 {offsets = [0, 0], sizes = [8, 128], strides = [1, 1]} : vector<8x256xf32> to vector<8x128xf32>
    %15 = math.tanh %14 : vector<8x128xf32>
    %16 = vector.extract_strided_slice %13 {offsets = [0, 128], sizes = [8, 128], strides = [1, 1]} : vector<8x256xf32> to vector<8x128xf32>
    %17 = arith.negf %16 : vector<8x128xf32>
    %18 = math.exp %17 : vector<8x128xf32>
    %cst_10 = arith.constant 1.000000e+00 : f32
    %19 = vector.broadcast %cst_10 : f32 to vector<8x128xf32>
    %20 = arith.addf %19, %18 : vector<8x128xf32>
    %21 = arith.divf %19, %20 : vector<8x128xf32>
    %22 = arith.subf %15, %3 : vector<8x128xf32>
    %23 = arith.mulf %22, %21 : vector<8x128xf32>
    %24 = arith.addf %23, %3 : vector<8x128xf32>
    %c1 = arith.constant 1 : index
    %c0_11 = arith.constant 0 : index
    %c0_12 = arith.constant 0 : index
    %25 = vector.load %arg4[%c1, %c0_11, %c0_12] : memref<3x128x256xf32, #tpu.memory_space<vmem>>, vector<1x128x256xf32>
    %26 = vector.shape_cast %25 : vector<1x128x256xf32> to vector<128x256xf32>
    %cst_13 = arith.constant dense<0.000000e+00> : vector<8x256xf32>
    %27 = tpu.matmul %24, %26, %cst_13 {dimension_numbers = #tpu.dot_dimension_numbers<[1], [0], [0], [1], [0, 0, 1, 1], [], []>} : vector<8x128xf32>, vector<128x256xf32>, vector<8x256xf32> -> vector<8x256xf32>
    %c1_14 = arith.constant 1 : index
    %c0_15 = arith.constant 0 : index
    %28 = vector.load %arg5[%c1_14, %c0_15] : memref<3x256xf32, #tpu.memory_space<vmem>>, vector<1x256xf32>
    %29 = vector.broadcast %28 : vector<1x256xf32> to vector<8x256xf32>
    %30 = arith.addf %27, %29 : vector<8x256xf32>
    %31 = vector.extract_strided_slice %30 {offsets = [0, 0], sizes = [8, 128], strides = [1, 1]} : vector<8x256xf32> to vector<8x128xf32>
    %32 = math.tanh %31 : vector<8x128xf32>
    %33 = vector.extract_strided_slice %30 {offsets = [0, 128], sizes = [8, 128], strides = [1, 1]} : vector<8x256xf32> to vector<8x128xf32>
    %34 = arith.negf %33 : vector<8x128xf32>
    %35 = math.exp %34 : vector<8x128xf32>
    %cst_16 = arith.constant 1.000000e+00 : f32
    %36 = vector.broadcast %cst_16 : f32 to vector<8x128xf32>
    %37 = arith.addf %36, %35 : vector<8x128xf32>
    %38 = arith.divf %36, %37 : vector<8x128xf32>
    %39 = arith.subf %32, %24 : vector<8x128xf32>
    %40 = arith.mulf %39, %38 : vector<8x128xf32>
    %41 = arith.addf %40, %24 : vector<8x128xf32>
    %c2 = arith.constant 2 : index
    %c0_17 = arith.constant 0 : index
    %c0_18 = arith.constant 0 : index
    %42 = vector.load %arg4[%c2, %c0_17, %c0_18] : memref<3x128x256xf32, #tpu.memory_space<vmem>>, vector<1x128x256xf32>
    %43 = vector.shape_cast %42 : vector<1x128x256xf32> to vector<128x256xf32>
    %cst_19 = arith.constant dense<0.000000e+00> : vector<8x256xf32>
    %44 = tpu.matmul %41, %43, %cst_19 {dimension_numbers = #tpu.dot_dimension_numbers<[1], [0], [0], [1], [0, 0, 1, 1], [], []>} : vector<8x128xf32>, vector<128x256xf32>, vector<8x256xf32> -> vector<8x256xf32>
    %c2_20 = arith.constant 2 : index
    %c0_21 = arith.constant 0 : index
    %45 = vector.load %arg5[%c2_20, %c0_21] : memref<3x256xf32, #tpu.memory_space<vmem>>, vector<1x256xf32>
    %46 = vector.broadcast %45 : vector<1x256xf32> to vector<8x256xf32>
    %47 = arith.addf %44, %46 : vector<8x256xf32>
    %48 = vector.extract_strided_slice %47 {offsets = [0, 0], sizes = [8, 128], strides = [1, 1]} : vector<8x256xf32> to vector<8x128xf32>
    %49 = math.tanh %48 : vector<8x128xf32>
    %50 = vector.extract_strided_slice %47 {offsets = [0, 128], sizes = [8, 128], strides = [1, 1]} : vector<8x256xf32> to vector<8x128xf32>
    %51 = arith.negf %50 : vector<8x128xf32>
    %52 = math.exp %51 : vector<8x128xf32>
    %cst_22 = arith.constant 1.000000e+00 : f32
    %53 = vector.broadcast %cst_22 : f32 to vector<8x128xf32>
    %54 = arith.addf %53, %52 : vector<8x128xf32>
    %55 = arith.divf %53, %54 : vector<8x128xf32>
    %56 = arith.subf %49, %41 : vector<8x128xf32>
    %57 = arith.mulf %56, %55 : vector<8x128xf32>
    %58 = arith.addf %57, %41 : vector<8x128xf32>
    %59 = arith.index_cast %c0_i32_2 : i32 to index
    %c0_23 = arith.constant 0 : index
    %c0_24 = arith.constant 0 : index
    %60 = vector.load %arg6[%59, %c0_23, %c0_24] : memref<8x8x128xf32, #tpu.memory_space<vmem>>, vector<1x8x128xf32>
    %61 = vector.shape_cast %60 : vector<1x8x128xf32> to vector<8x128xf32>
    %62 = vector.shape_cast %58 : vector<8x128xf32> to vector<1x8x128xf32>
    tpu.vector_store %arg6[%59, %c0_23, %c0_24], %62 {strides = array<i32>} : memref<8x8x128xf32, #tpu.memory_space<vmem>>, vector<1x8x128xf32>,
    %c1_i32 = arith.constant 1 : i32
    %63 = arith.index_cast %c1_i32 : i32 to index
    %c0_25 = arith.constant 0 : index
    %c0_26 = arith.constant 0 : index
    %64 = vector.load %arg3[%63, %c0_25, %c0_26] : memref<8x8x256xf32, #tpu.memory_space<vmem>>, vector<1x8x256xf32>
    %65 = vector.shape_cast %64 : vector<1x8x256xf32> to vector<8x256xf32>
    %c0_27 = arith.constant 0 : index
    %c0_28 = arith.constant 0 : index
    %c0_29 = arith.constant 0 : index
    %66 = vector.load %arg4[%c0_27, %c0_28, %c0_29] : memref<3x128x256xf32, #tpu.memory_space<vmem>>, vector<1x128x256xf32>
    %67 = vector.shape_cast %66 : vector<1x128x256xf32> to vector<128x256xf32>
    %cst_30 = arith.constant dense<0.000000e+00> : vector<8x256xf32>
    %68 = tpu.matmul %58, %67, %cst_30 {dimension_numbers = #tpu.dot_dimension_numbers<[1], [0], [0], [1], [0, 0, 1, 1], [], []>} : vector<8x128xf32>, vector<128x256xf32>, vector<8x256xf32> -> vector<8x256xf32>
    %c0_31 = arith.constant 0 : index
    %c0_32 = arith.constant 0 : index
    %69 = vector.load %arg5[%c0_31, %c0_32] : memref<3x256xf32, #tpu.memory_space<vmem>>, vector<1x256xf32>
    %70 = vector.broadcast %69 : vector<1x256xf32> to vector<8x256xf32>
    %71 = arith.addf %68, %70 : vector<8x256xf32>
    %72 = arith.addf %65, %71 : vector<8x256xf32>
    %73 = vector.extract_strided_slice %72 {offsets = [0, 0], sizes = [8, 128], strides = [1, 1]} : vector<8x256xf32> to vector<8x128xf32>
    %74 = math.tanh %73 : vector<8x128xf32>
    %75 = vector.extract_strided_slice %72 {offsets = [0, 128], sizes = [8, 128], strides = [1, 1]} : vector<8x256xf32> to vector<8x128xf32>
    %76 = arith.negf %75 : vector<8x128xf32>
    %77 = math.exp %76 : vector<8x128xf32>
    %cst_33 = arith.constant 1.000000e+00 : f32
    %78 = vector.broadcast %cst_33 : f32 to vector<8x128xf32>
    %79 = arith.addf %78, %77 : vector<8x128xf32>
    %80 = arith.divf %78, %79 : vector<8x128xf32>
    %81 = arith.subf %74, %58 : vector<8x128xf32>
    %82 = arith.mulf %81, %80 : vector<8x128xf32>
    %83 = arith.addf %82, %58 : vector<8x128xf32>
    %c1_34 = arith.constant 1 : index
    %c0_35 = arith.constant 0 : index
    %c0_36 = arith.constant 0 : index
    %84 = vector.load %arg4[%c1_34, %c0_35, %c0_36] : memref<3x128x256xf32, #tpu.memory_space<vmem>>, vector<1x128x256xf32>
    %85 = vector.shape_cast %84 : vector<1x128x256xf32> to vector<128x256xf32>
    %cst_37 = arith.constant dense<0.000000e+00> : vector<8x256xf32>
    %86 = tpu.matmul %83, %85, %cst_37 {dimension_numbers = #tpu.dot_dimension_numbers<[1], [0], [0], [1], [0, 0, 1, 1], [], []>} : vector<8x128xf32>, vector<128x256xf32>, vector<8x256xf32> -> vector<8x256xf32>
    %c1_38 = arith.constant 1 : index
    %c0_39 = arith.constant 0 : index
    %87 = vector.load %arg5[%c1_38, %c0_39] : memref<3x256xf32, #tpu.memory_space<vmem>>, vector<1x256xf32>
    %88 = vector.broadcast %87 : vector<1x256xf32> to vector<8x256xf32>
    %89 = arith.addf %86, %88 : vector<8x256xf32>
    %90 = vector.extract_strided_slice %89 {offsets = [0, 0], sizes = [8, 128], strides = [1, 1]} : vector<8x256xf32> to vector<8x128xf32>
    %91 = math.tanh %90 : vector<8x128xf32>
    %92 = vector.extract_strided_slice %89 {offsets = [0, 128], sizes = [8, 128], strides = [1, 1]} : vector<8x256xf32> to vector<8x128xf32>
    %93 = arith.negf %92 : vector<8x128xf32>
    %94 = math.exp %93 : vector<8x128xf32>
    %cst_40 = arith.constant 1.000000e+00 : f32
    %95 = vector.broadcast %cst_40 : f32 to vector<8x128xf32>
    %96 = arith.addf %95, %94 : vector<8x128xf32>
    %97 = arith.divf %95, %96 : vector<8x128xf32>
    %98 = arith.subf %91, %83 : vector<8x128xf32>
    %99 = arith.mulf %98, %97 : vector<8x128xf32>
    %100 = arith.addf %99, %83 : vector<8x128xf32>
    %c2_41 = arith.constant 2 : index
    %c0_42 = arith.constant 0 : index
    %c0_43 = arith.constant 0 : index
    %101 = vector.load %arg4[%c2_41, %c0_42, %c0_43] : memref<3x128x256xf32, #tpu.memory_space<vmem>>, vector<1x128x256xf32>
    %102 = vector.shape_cast %101 : vector<1x128x256xf32> to vector<128x256xf32>
    %cst_44 = arith.constant dense<0.000000e+00> : vector<8x256xf32>
    %103 = tpu.matmul %100, %102, %cst_44 {dimension_numbers = #tpu.dot_dimension_numbers<[1], [0], [0], [1], [0, 0, 1, 1], [], []>} : vector<8x128xf32>, vector<128x256xf32>, vector<8x256xf32> -> vector<8x256xf32>
    %c2_45 = arith.constant 2 : index
    %c0_46 = arith.constant 0 : index
    %104 = vector.load %arg5[%c2_45, %c0_46] : memref<3x256xf32, #tpu.memory_space<vmem>>, vector<1x256xf32>
    %105 = vector.broadcast %104 : vector<1x256xf32> to vector<8x256xf32>
    %106 = arith.addf %103, %105 : vector<8x256xf32>
    %107 = vector.extract_strided_slice %106 {offsets = [0, 0], sizes = [8, 128], strides = [1, 1]} : vector<8x256xf32> to vector<8x128xf32>
    %108 = math.tanh %107 : vector<8x128xf32>
    %109 = vector.extract_strided_slice %106 {offsets = [0, 128], sizes = [8, 128], strides = [1, 1]} : vector<8x256xf32> to vector<8x128xf32>
    %110 = arith.negf %109 : vector<8x128xf32>
    %111 = math.exp %110 : vector<8x128xf32>
    %cst_47 = arith.constant 1.000000e+00 : f32
    %112 = vector.broadcast %cst_47 : f32 to vector<8x128xf32>
    %113 = arith.addf %112, %111 : vector<8x128xf32>
    %114 = arith.divf %112, %113 : vector<8x128xf32>
    %115 = arith.subf %108, %100 : vector<8x128xf32>
    %116 = arith.mulf %115, %114 : vector<8x128xf32>
    %117 = arith.addf %116, %100 : vector<8x128xf32>
    %118 = arith.index_cast %c1_i32 : i32 to index
    %c0_48 = arith.constant 0 : index
    %c0_49 = arith.constant 0 : index
    %119 = vector.load %arg6[%118, %c0_48, %c0_49] : memref<8x8x128xf32, #tpu.memory_space<vmem>>, vector<1x8x128xf32>
    %120 = vector.shape_cast %119 : vector<1x8x128xf32> to vector<8x128xf32>
    %121 = vector.shape_cast %117 : vector<8x128xf32> to vector<1x8x128xf32>
    tpu.vector_store %arg6[%118, %c0_48, %c0_49], %121 {strides = array<i32>} : memref<8x8x128xf32, #tpu.memory_space<vmem>>, vector<1x8x128xf32>,
    %c2_i32 = arith.constant 2 : i32
    %122 = arith.index_cast %c2_i32 : i32 to index
    %c0_50 = arith.constant 0 : index
    %c0_51 = arith.constant 0 : index
    %123 = vector.load %arg3[%122, %c0_50, %c0_51] : memref<8x8x256xf32, #tpu.memory_space<vmem>>, vector<1x8x256xf32>
    %124 = vector.shape_cast %123 : vector<1x8x256xf32> to vector<8x256xf32>
    %c0_52 = arith.constant 0 : index
    %c0_53 = arith.constant 0 : index
    %c0_54 = arith.constant 0 : index
    %125 = vector.load %arg4[%c0_52, %c0_53, %c0_54] : memref<3x128x256xf32, #tpu.memory_space<vmem>>, vector<1x128x256xf32>
    %126 = vector.shape_cast %125 : vector<1x128x256xf32> to vector<128x256xf32>
    %cst_55 = arith.constant dense<0.000000e+00> : vector<8x256xf32>
    %127 = tpu.matmul %117, %126, %cst_55 {dimension_numbers = #tpu.dot_dimension_numbers<[1], [0], [0], [1], [0, 0, 1, 1], [], []>} : vector<8x128xf32>, vector<128x256xf32>, vector<8x256xf32> -> vector<8x256xf32>
    %c0_56 = arith.constant 0 : index
    %c0_57 = arith.constant 0 : index
    %128 = vector.load %arg5[%c0_56, %c0_57] : memref<3x256xf32, #tpu.memory_space<vmem>>, vector<1x256xf32>
    %129 = vector.broadcast %128 : vector<1x256xf32> to vector<8x256xf32>
    %130 = arith.addf %127, %129 : vector<8x256xf32>
    %131 = arith.addf %124, %130 : vector<8x256xf32>
    %132 = vector.extract_strided_slice %131 {offsets = [0, 0], sizes = [8, 128], strides = [1, 1]} : vector<8x256xf32> to vector<8x128xf32>
    %133 = math.tanh %132 : vector<8x128xf32>
    %134 = vector.extract_strided_slice %131 {offsets = [0, 128], sizes = [8, 128], strides = [1, 1]} : vector<8x256xf32> to vector<8x128xf32>
    %135 = arith.negf %134 : vector<8x128xf32>
    %136 = math.exp %135 : vector<8x128xf32>
    %cst_58 = arith.constant 1.000000e+00 : f32
    %137 = vector.broadcast %cst_58 : f32 to vector<8x128xf32>
    %138 = arith.addf %137, %136 : vector<8x128xf32>
    %139 = arith.divf %137, %138 : vector<8x128xf32>
    %140 = arith.subf %133, %117 : vector<8x128xf32>
    %141 = arith.mulf %140, %139 : vector<8x128xf32>
    %142 = arith.addf %141, %117 : vector<8x128xf32>
    %c1_59 = arith.constant 1 : index
    %c0_60 = arith.constant 0 : index
    %c0_61 = arith.constant 0 : index
    %143 = vector.load %arg4[%c1_59, %c0_60, %c0_61] : memref<3x128x256xf32, #tpu.memory_space<vmem>>, vector<1x128x256xf32>
    %144 = vector.shape_cast %143 : vector<1x128x256xf32> to vector<128x256xf32>
    %cst_62 = arith.constant dense<0.000000e+00> : vector<8x256xf32>
    %145 = tpu.matmul %142, %144, %cst_62 {dimension_numbers = #tpu.dot_dimension_numbers<[1], [0], [0], [1], [0, 0, 1, 1], [], []>} : vector<8x128xf32>, vector<128x256xf32>, vector<8x256xf32> -> vector<8x256xf32>
    %c1_63 = arith.constant 1 : index
    %c0_64 = arith.constant 0 : index
    %146 = vector.load %arg5[%c1_63, %c0_64] : memref<3x256xf32, #tpu.memory_space<vmem>>, vector<1x256xf32>
    %147 = vector.broadcast %146 : vector<1x256xf32> to vector<8x256xf32>
    %148 = arith.addf %145, %147 : vector<8x256xf32>
    %149 = vector.extract_strided_slice %148 {offsets = [0, 0], sizes = [8, 128], strides = [1, 1]} : vector<8x256xf32> to vector<8x128xf32>
    %150 = math.tanh %149 : vector<8x128xf32>
    %151 = vector.extract_strided_slice %148 {offsets = [0, 128], sizes = [8, 128], strides = [1, 1]} : vector<8x256xf32> to vector<8x128xf32>
    %152 = arith.negf %151 : vector<8x128xf32>
    %153 = math.exp %152 : vector<8x128xf32>
    %cst_65 = arith.constant 1.000000e+00 : f32
    %154 = vector.broadcast %cst_65 : f32 to vector<8x128xf32>
    %155 = arith.addf %154, %153 : vector<8x128xf32>
    %156 = arith.divf %154, %155 : vector<8x128xf32>
    %157 = arith.subf %150, %142 : vector<8x128xf32>
    %158 = arith.mulf %157, %156 : vector<8x128xf32>
    %159 = arith.addf %158, %142 : vector<8x128xf32>
    %c2_66 = arith.constant 2 : index
    %c0_67 = arith.constant 0 : index
    %c0_68 = arith.constant 0 : index
    %160 = vector.load %arg4[%c2_66, %c0_67, %c0_68] : memref<3x128x256xf32, #tpu.memory_space<vmem>>, vector<1x128x256xf32>
    %161 = vector.shape_cast %160 : vector<1x128x256xf32> to vector<128x256xf32>
    %cst_69 = arith.constant dense<0.000000e+00> : vector<8x256xf32>
    %162 = tpu.matmul %159, %161, %cst_69 {dimension_numbers = #tpu.dot_dimension_numbers<[1], [0], [0], [1], [0, 0, 1, 1], [], []>} : vector<8x128xf32>, vector<128x256xf32>, vector<8x256xf32> -> vector<8x256xf32>
    %c2_70 = arith.constant 2 : index
    %c0_71 = arith.constant 0 : index
    %163 = vector.load %arg5[%c2_70, %c0_71] : memref<3x256xf32, #tpu.memory_space<vmem>>, vector<1x256xf32>
    %164 = vector.broadcast %163 : vector<1x256xf32> to vector<8x256xf32>
    %165 = arith.addf %162, %164 : vector<8x256xf32>
    %166 = vector.extract_strided_slice %165 {offsets = [0, 0], sizes = [8, 128], strides = [1, 1]} : vector<8x256xf32> to vector<8x128xf32>
    %167 = math.tanh %166 : vector<8x128xf32>
    %168 = vector.extract_strided_slice %165 {offsets = [0, 128], sizes = [8, 128], strides = [1, 1]} : vector<8x256xf32> to vector<8x128xf32>
    %169 = arith.negf %168 : vector<8x128xf32>
    %170 = math.exp %169 : vector<8x128xf32>
    %cst_72 = arith.constant 1.000000e+00 : f32
    %171 = vector.broadcast %cst_72 : f32 to vector<8x128xf32>
    %172 = arith.addf %171, %170 : vector<8x128xf32>
    %173 = arith.divf %171, %172 : vector<8x128xf32>
    %174 = arith.subf %167, %159 : vector<8x128xf32>
    %175 = arith.mulf %174, %173 : vector<8x128xf32>
    %176 = arith.addf %175, %159 : vector<8x128xf32>
    %177 = arith.index_cast %c2_i32 : i32 to index
    %c0_73 = arith.constant 0 : index
    %c0_74 = arith.constant 0 : index
    %178 = vector.load %arg6[%177, %c0_73, %c0_74] : memref<8x8x128xf32, #tpu.memory_space<vmem>>, vector<1x8x128xf32>
    %179 = vector.shape_cast %178 : vector<1x8x128xf32> to vector<8x128xf32>
    %180 = vector.shape_cast %176 : vector<8x128xf32> to vector<1x8x128xf32>
    tpu.vector_store %arg6[%177, %c0_73, %c0_74], %180 {strides = array<i32>} : memref<8x8x128xf32, #tpu.memory_space<vmem>>, vector<1x8x128xf32>,
    %c3_i32 = arith.constant 3 : i32
    %181 = arith.index_cast %c3_i32 : i32 to index
    %c0_75 = arith.constant 0 : index
    %c0_76 = arith.constant 0 : index
    %182 = vector.load %arg3[%181, %c0_75, %c0_76] : memref<8x8x256xf32, #tpu.memory_space<vmem>>, vector<1x8x256xf32>
    %183 = vector.shape_cast %182 : vector<1x8x256xf32> to vector<8x256xf32>
    %c0_77 = arith.constant 0 : index
    %c0_78 = arith.constant 0 : index
    %c0_79 = arith.constant 0 : index
    %184 = vector.load %arg4[%c0_77, %c0_78, %c0_79] : memref<3x128x256xf32, #tpu.memory_space<vmem>>, vector<1x128x256xf32>
    %185 = vector.shape_cast %184 : vector<1x128x256xf32> to vector<128x256xf32>
    %cst_80 = arith.constant dense<0.000000e+00> : vector<8x256xf32>
    %186 = tpu.matmul %176, %185, %cst_80 {dimension_numbers = #tpu.dot_dimension_numbers<[1], [0], [0], [1], [0, 0, 1, 1], [], []>} : vector<8x128xf32>, vector<128x256xf32>, vector<8x256xf32> -> vector<8x256xf32>
    %c0_81 = arith.constant 0 : index
    %c0_82 = arith.constant 0 : index
    %187 = vector.load %arg5[%c0_81, %c0_82] : memref<3x256xf32, #tpu.memory_space<vmem>>, vector<1x256xf32>
    %188 = vector.broadcast %187 : vector<1x256xf32> to vector<8x256xf32>
    %189 = arith.addf %186, %188 : vector<8x256xf32>
    %190 = arith.addf %183, %189 : vector<8x256xf32>
    %191 = vector.extract_strided_slice %190 {offsets = [0, 0], sizes = [8, 128], strides = [1, 1]} : vector<8x256xf32> to vector<8x128xf32>
    %192 = math.tanh %191 : vector<8x128xf32>
    %193 = vector.extract_strided_slice %190 {offsets = [0, 128], sizes = [8, 128], strides = [1, 1]} : vector<8x256xf32> to vector<8x128xf32>
    %194 = arith.negf %193 : vector<8x128xf32>
    %195 = math.exp %194 : vector<8x128xf32>
    %cst_83 = arith.constant 1.000000e+00 : f32
    %196 = vector.broadcast %cst_83 : f32 to vector<8x128xf32>
    %197 = arith.addf %196, %195 : vector<8x128xf32>
    %198 = arith.divf %196, %197 : vector<8x128xf32>
    %199 = arith.subf %192, %176 : vector<8x128xf32>
    %200 = arith.mulf %199, %198 : vector<8x128xf32>
    %201 = arith.addf %200, %176 : vector<8x128xf32>
    %c1_84 = arith.constant 1 : index
    %c0_85 = arith.constant 0 : index
    %c0_86 = arith.constant 0 : index
    %202 = vector.load %arg4[%c1_84, %c0_85, %c0_86] : memref<3x128x256xf32, #tpu.memory_space<vmem>>, vector<1x128x256xf32>
    %203 = vector.shape_cast %202 : vector<1x128x256xf32> to vector<128x256xf32>
    %cst_87 = arith.constant dense<0.000000e+00> : vector<8x256xf32>
    %204 = tpu.matmul %201, %203, %cst_87 {dimension_numbers = #tpu.dot_dimension_numbers<[1], [0], [0], [1], [0, 0, 1, 1], [], []>} : vector<8x128xf32>, vector<128x256xf32>, vector<8x256xf32> -> vector<8x256xf32>
    %c1_88 = arith.constant 1 : index
    %c0_89 = arith.constant 0 : index
    %205 = vector.load %arg5[%c1_88, %c0_89] : memref<3x256xf32, #tpu.memory_space<vmem>>, vector<1x256xf32>
    %206 = vector.broadcast %205 : vector<1x256xf32> to vector<8x256xf32>
    %207 = arith.addf %204, %206 : vector<8x256xf32>
    %208 = vector.extract_strided_slice %207 {offsets = [0, 0], sizes = [8, 128], strides = [1, 1]} : vector<8x256xf32> to vector<8x128xf32>
    %209 = math.tanh %208 : vector<8x128xf32>
    %210 = vector.extract_strided_slice %207 {offsets = [0, 128], sizes = [8, 128], strides = [1, 1]} : vector<8x256xf32> to vector<8x128xf32>
    %211 = arith.negf %210 : vector<8x128xf32>
    %212 = math.exp %211 : vector<8x128xf32>
    %cst_90 = arith.constant 1.000000e+00 : f32
    %213 = vector.broadcast %cst_90 : f32 to vector<8x128xf32>
    %214 = arith.addf %213, %212 : vector<8x128xf32>
    %215 = arith.divf %213, %214 : vector<8x128xf32>
    %216 = arith.subf %209, %201 : vector<8x128xf32>
    %217 = arith.mulf %216, %215 : vector<8x128xf32>
    %218 = arith.addf %217, %201 : vector<8x128xf32>
    %c2_91 = arith.constant 2 : index
    %c0_92 = arith.constant 0 : index
    %c0_93 = arith.constant 0 : index
    %219 = vector.load %arg4[%c2_91, %c0_92, %c0_93] : memref<3x128x256xf32, #tpu.memory_space<vmem>>, vector<1x128x256xf32>
    %220 = vector.shape_cast %219 : vector<1x128x256xf32> to vector<128x256xf32>
    %cst_94 = arith.constant dense<0.000000e+00> : vector<8x256xf32>
    %221 = tpu.matmul %218, %220, %cst_94 {dimension_numbers = #tpu.dot_dimension_numbers<[1], [0], [0], [1], [0, 0, 1, 1], [], []>} : vector<8x128xf32>, vector<128x256xf32>, vector<8x256xf32> -> vector<8x256xf32>
    %c2_95 = arith.constant 2 : index
    %c0_96 = arith.constant 0 : index
    %222 = vector.load %arg5[%c2_95, %c0_96] : memref<3x256xf32, #tpu.memory_space<vmem>>, vector<1x256xf32>
    %223 = vector.broadcast %222 : vector<1x256xf32> to vector<8x256xf32>
    %224 = arith.addf %221, %223 : vector<8x256xf32>
    %225 = vector.extract_strided_slice %224 {offsets = [0, 0], sizes = [8, 128], strides = [1, 1]} : vector<8x256xf32> to vector<8x128xf32>
    %226 = math.tanh %225 : vector<8x128xf32>
    %227 = vector.extract_strided_slice %224 {offsets = [0, 128], sizes = [8, 128], strides = [1, 1]} : vector<8x256xf32> to vector<8x128xf32>
    %228 = arith.negf %227 : vector<8x128xf32>
    %229 = math.exp %228 : vector<8x128xf32>
    %cst_97 = arith.constant 1.000000e+00 : f32
    %230 = vector.broadcast %cst_97 : f32 to vector<8x128xf32>
    %231 = arith.addf %230, %229 : vector<8x128xf32>
    %232 = arith.divf %230, %231 : vector<8x128xf32>
    %233 = arith.subf %226, %218 : vector<8x128xf32>
    %234 = arith.mulf %233, %232 : vector<8x128xf32>
    %235 = arith.addf %234, %218 : vector<8x128xf32>
    %236 = arith.index_cast %c3_i32 : i32 to index
    %c0_98 = arith.constant 0 : index
    %c0_99 = arith.constant 0 : index
    %237 = vector.load %arg6[%236, %c0_98, %c0_99] : memref<8x8x128xf32, #tpu.memory_space<vmem>>, vector<1x8x128xf32>
    %238 = vector.shape_cast %237 : vector<1x8x128xf32> to vector<8x128xf32>
    %239 = vector.shape_cast %235 : vector<8x128xf32> to vector<1x8x128xf32>
    tpu.vector_store %arg6[%236, %c0_98, %c0_99], %239 {strides = array<i32>} : memref<8x8x128xf32, #tpu.memory_space<vmem>>, vector<1x8x128xf32>,
    %c4_i32 = arith.constant 4 : i32
    %240 = arith.index_cast %c4_i32 : i32 to index
    %c0_100 = arith.constant 0 : index
    %c0_101 = arith.constant 0 : index
    %241 = vector.load %arg3[%240, %c0_100, %c0_101] : memref<8x8x256xf32, #tpu.memory_space<vmem>>, vector<1x8x256xf32>
    %242 = vector.shape_cast %241 : vector<1x8x256xf32> to vector<8x256xf32>
    %c0_102 = arith.constant 0 : index
    %c0_103 = arith.constant 0 : index
    %c0_104 = arith.constant 0 : index
    %243 = vector.load %arg4[%c0_102, %c0_103, %c0_104] : memref<3x128x256xf32, #tpu.memory_space<vmem>>, vector<1x128x256xf32>
    %244 = vector.shape_cast %243 : vector<1x128x256xf32> to vector<128x256xf32>
    %cst_105 = arith.constant dense<0.000000e+00> : vector<8x256xf32>
    %245 = tpu.matmul %235, %244, %cst_105 {dimension_numbers = #tpu.dot_dimension_numbers<[1], [0], [0], [1], [0, 0, 1, 1], [], []>} : vector<8x128xf32>, vector<128x256xf32>, vector<8x256xf32> -> vector<8x256xf32>
    %c0_106 = arith.constant 0 : index
    %c0_107 = arith.constant 0 : index
    %246 = vector.load %arg5[%c0_106, %c0_107] : memref<3x256xf32, #tpu.memory_space<vmem>>, vector<1x256xf32>
    %247 = vector.broadcast %246 : vector<1x256xf32> to vector<8x256xf32>
    %248 = arith.addf %245, %247 : vector<8x256xf32>
    %249 = arith.addf %242, %248 : vector<8x256xf32>
    %250 = vector.extract_strided_slice %249 {offsets = [0, 0], sizes = [8, 128], strides = [1, 1]} : vector<8x256xf32> to vector<8x128xf32>
    %251 = math.tanh %250 : vector<8x128xf32>
    %252 = vector.extract_strided_slice %249 {offsets = [0, 128], sizes = [8, 128], strides = [1, 1]} : vector<8x256xf32> to vector<8x128xf32>
    %253 = arith.negf %252 : vector<8x128xf32>
    %254 = math.exp %253 : vector<8x128xf32>
    %cst_108 = arith.constant 1.000000e+00 : f32
    %255 = vector.broadcast %cst_108 : f32 to vector<8x128xf32>
    %256 = arith.addf %255, %254 : vector<8x128xf32>
    %257 = arith.divf %255, %256 : vector<8x128xf32>
    %258 = arith.subf %251, %235 : vector<8x128xf32>
    %259 = arith.mulf %258, %257 : vector<8x128xf32>
    %260 = arith.addf %259, %235 : vector<8x128xf32>
    %c1_109 = arith.constant 1 : index
    %c0_110 = arith.constant 0 : index
    %c0_111 = arith.constant 0 : index
    %261 = vector.load %arg4[%c1_109, %c0_110, %c0_111] : memref<3x128x256xf32, #tpu.memory_space<vmem>>, vector<1x128x256xf32>
    %262 = vector.shape_cast %261 : vector<1x128x256xf32> to vector<128x256xf32>
    %cst_112 = arith.constant dense<0.000000e+00> : vector<8x256xf32>
    %263 = tpu.matmul %260, %262, %cst_112 {dimension_numbers = #tpu.dot_dimension_numbers<[1], [0], [0], [1], [0, 0, 1, 1], [], []>} : vector<8x128xf32>, vector<128x256xf32>, vector<8x256xf32> -> vector<8x256xf32>
    %c1_113 = arith.constant 1 : index
    %c0_114 = arith.constant 0 : index
    %264 = vector.load %arg5[%c1_113, %c0_114] : memref<3x256xf32, #tpu.memory_space<vmem>>, vector<1x256xf32>
    %265 = vector.broadcast %264 : vector<1x256xf32> to vector<8x256xf32>
    %266 = arith.addf %263, %265 : vector<8x256xf32>
    %267 = vector.extract_strided_slice %266 {offsets = [0, 0], sizes = [8, 128], strides = [1, 1]} : vector<8x256xf32> to vector<8x128xf32>
    %268 = math.tanh %267 : vector<8x128xf32>
    %269 = vector.extract_strided_slice %266 {offsets = [0, 128], sizes = [8, 128], strides = [1, 1]} : vector<8x256xf32> to vector<8x128xf32>
    %270 = arith.negf %269 : vector<8x128xf32>
    %271 = math.exp %270 : vector<8x128xf32>
    %cst_115 = arith.constant 1.000000e+00 : f32
    %272 = vector.broadcast %cst_115 : f32 to vector<8x128xf32>
    %273 = arith.addf %272, %271 : vector<8x128xf32>
    %274 = arith.divf %272, %273 : vector<8x128xf32>
    %275 = arith.subf %268, %260 : vector<8x128xf32>
    %276 = arith.mulf %275, %274 : vector<8x128xf32>
    %277 = arith.addf %276, %260 : vector<8x128xf32>
    %c2_116 = arith.constant 2 : index
    %c0_117 = arith.constant 0 : index
    %c0_118 = arith.constant 0 : index
    %278 = vector.load %arg4[%c2_116, %c0_117, %c0_118] : memref<3x128x256xf32, #tpu.memory_space<vmem>>, vector<1x128x256xf32>
    %279 = vector.shape_cast %278 : vector<1x128x256xf32> to vector<128x256xf32>
    %cst_119 = arith.constant dense<0.000000e+00> : vector<8x256xf32>
    %280 = tpu.matmul %277, %279, %cst_119 {dimension_numbers = #tpu.dot_dimension_numbers<[1], [0], [0], [1], [0, 0, 1, 1], [], []>} : vector<8x128xf32>, vector<128x256xf32>, vector<8x256xf32> -> vector<8x256xf32>
    %c2_120 = arith.constant 2 : index
    %c0_121 = arith.constant 0 : index
    %281 = vector.load %arg5[%c2_120, %c0_121] : memref<3x256xf32, #tpu.memory_space<vmem>>, vector<1x256xf32>
    %282 = vector.broadcast %281 : vector<1x256xf32> to vector<8x256xf32>
    %283 = arith.addf %280, %282 : vector<8x256xf32>
    %284 = vector.extract_strided_slice %283 {offsets = [0, 0], sizes = [8, 128], strides = [1, 1]} : vector<8x256xf32> to vector<8x128xf32>
    %285 = math.tanh %284 : vector<8x128xf32>
    %286 = vector.extract_strided_slice %283 {offsets = [0, 128], sizes = [8, 128], strides = [1, 1]} : vector<8x256xf32> to vector<8x128xf32>
    %287 = arith.negf %286 : vector<8x128xf32>
    %288 = math.exp %287 : vector<8x128xf32>
    %cst_122 = arith.constant 1.000000e+00 : f32
    %289 = vector.broadcast %cst_122 : f32 to vector<8x128xf32>
    %290 = arith.addf %289, %288 : vector<8x128xf32>
    %291 = arith.divf %289, %290 : vector<8x128xf32>
    %292 = arith.subf %285, %277 : vector<8x128xf32>
    %293 = arith.mulf %292, %291 : vector<8x128xf32>
    %294 = arith.addf %293, %277 : vector<8x128xf32>
    %295 = arith.index_cast %c4_i32 : i32 to index
    %c0_123 = arith.constant 0 : index
    %c0_124 = arith.constant 0 : index
    %296 = vector.load %arg6[%295, %c0_123, %c0_124] : memref<8x8x128xf32, #tpu.memory_space<vmem>>, vector<1x8x128xf32>
    %297 = vector.shape_cast %296 : vector<1x8x128xf32> to vector<8x128xf32>
    %298 = vector.shape_cast %294 : vector<8x128xf32> to vector<1x8x128xf32>
    tpu.vector_store %arg6[%295, %c0_123, %c0_124], %298 {strides = array<i32>} : memref<8x8x128xf32, #tpu.memory_space<vmem>>, vector<1x8x128xf32>,
    %c5_i32 = arith.constant 5 : i32
    %299 = arith.index_cast %c5_i32 : i32 to index
    %c0_125 = arith.constant 0 : index
    %c0_126 = arith.constant 0 : index
    %300 = vector.load %arg3[%299, %c0_125, %c0_126] : memref<8x8x256xf32, #tpu.memory_space<vmem>>, vector<1x8x256xf32>
    %301 = vector.shape_cast %300 : vector<1x8x256xf32> to vector<8x256xf32>
    %c0_127 = arith.constant 0 : index
    %c0_128 = arith.constant 0 : index
    %c0_129 = arith.constant 0 : index
    %302 = vector.load %arg4[%c0_127, %c0_128, %c0_129] : memref<3x128x256xf32, #tpu.memory_space<vmem>>, vector<1x128x256xf32>
    %303 = vector.shape_cast %302 : vector<1x128x256xf32> to vector<128x256xf32>
    %cst_130 = arith.constant dense<0.000000e+00> : vector<8x256xf32>
    %304 = tpu.matmul %294, %303, %cst_130 {dimension_numbers = #tpu.dot_dimension_numbers<[1], [0], [0], [1], [0, 0, 1, 1], [], []>} : vector<8x128xf32>, vector<128x256xf32>, vector<8x256xf32> -> vector<8x256xf32>
    %c0_131 = arith.constant 0 : index
    %c0_132 = arith.constant 0 : index
    %305 = vector.load %arg5[%c0_131, %c0_132] : memref<3x256xf32, #tpu.memory_space<vmem>>, vector<1x256xf32>
    %306 = vector.broadcast %305 : vector<1x256xf32> to vector<8x256xf32>
    %307 = arith.addf %304, %306 : vector<8x256xf32>
    %308 = arith.addf %301, %307 : vector<8x256xf32>
    %309 = vector.extract_strided_slice %308 {offsets = [0, 0], sizes = [8, 128], strides = [1, 1]} : vector<8x256xf32> to vector<8x128xf32>
    %310 = math.tanh %309 : vector<8x128xf32>
    %311 = vector.extract_strided_slice %308 {offsets = [0, 128], sizes = [8, 128], strides = [1, 1]} : vector<8x256xf32> to vector<8x128xf32>
    %312 = arith.negf %311 : vector<8x128xf32>
    %313 = math.exp %312 : vector<8x128xf32>
    %cst_133 = arith.constant 1.000000e+00 : f32
    %314 = vector.broadcast %cst_133 : f32 to vector<8x128xf32>
    %315 = arith.addf %314, %313 : vector<8x128xf32>
    %316 = arith.divf %314, %315 : vector<8x128xf32>
    %317 = arith.subf %310, %294 : vector<8x128xf32>
    %318 = arith.mulf %317, %316 : vector<8x128xf32>
    %319 = arith.addf %318, %294 : vector<8x128xf32>
    %c1_134 = arith.constant 1 : index
    %c0_135 = arith.constant 0 : index
    %c0_136 = arith.constant 0 : index
    %320 = vector.load %arg4[%c1_134, %c0_135, %c0_136] : memref<3x128x256xf32, #tpu.memory_space<vmem>>, vector<1x128x256xf32>
    %321 = vector.shape_cast %320 : vector<1x128x256xf32> to vector<128x256xf32>
    %cst_137 = arith.constant dense<0.000000e+00> : vector<8x256xf32>
    %322 = tpu.matmul %319, %321, %cst_137 {dimension_numbers = #tpu.dot_dimension_numbers<[1], [0], [0], [1], [0, 0, 1, 1], [], []>} : vector<8x128xf32>, vector<128x256xf32>, vector<8x256xf32> -> vector<8x256xf32>
    %c1_138 = arith.constant 1 : index
    %c0_139 = arith.constant 0 : index
    %323 = vector.load %arg5[%c1_138, %c0_139] : memref<3x256xf32, #tpu.memory_space<vmem>>, vector<1x256xf32>
    %324 = vector.broadcast %323 : vector<1x256xf32> to vector<8x256xf32>
    %325 = arith.addf %322, %324 : vector<8x256xf32>
    %326 = vector.extract_strided_slice %325 {offsets = [0, 0], sizes = [8, 128], strides = [1, 1]} : vector<8x256xf32> to vector<8x128xf32>
    %327 = math.tanh %326 : vector<8x128xf32>
    %328 = vector.extract_strided_slice %325 {offsets = [0, 128], sizes = [8, 128], strides = [1, 1]} : vector<8x256xf32> to vector<8x128xf32>
    %329 = arith.negf %328 : vector<8x128xf32>
    %330 = math.exp %329 : vector<8x128xf32>
    %cst_140 = arith.constant 1.000000e+00 : f32
    %331 = vector.broadcast %cst_140 : f32 to vector<8x128xf32>
    %332 = arith.addf %331, %330 : vector<8x128xf32>
    %333 = arith.divf %331, %332 : vector<8x128xf32>
    %334 = arith.subf %327, %319 : vector<8x128xf32>
    %335 = arith.mulf %334, %333 : vector<8x128xf32>
    %336 = arith.addf %335, %319 : vector<8x128xf32>
    %c2_141 = arith.constant 2 : index
    %c0_142 = arith.constant 0 : index
    %c0_143 = arith.constant 0 : index
    %337 = vector.load %arg4[%c2_141, %c0_142, %c0_143] : memref<3x128x256xf32, #tpu.memory_space<vmem>>, vector<1x128x256xf32>
    %338 = vector.shape_cast %337 : vector<1x128x256xf32> to vector<128x256xf32>
    %cst_144 = arith.constant dense<0.000000e+00> : vector<8x256xf32>
    %339 = tpu.matmul %336, %338, %cst_144 {dimension_numbers = #tpu.dot_dimension_numbers<[1], [0], [0], [1], [0, 0, 1, 1], [], []>} : vector<8x128xf32>, vector<128x256xf32>, vector<8x256xf32> -> vector<8x256xf32>
    %c2_145 = arith.constant 2 : index
    %c0_146 = arith.constant 0 : index
    %340 = vector.load %arg5[%c2_145, %c0_146] : memref<3x256xf32, #tpu.memory_space<vmem>>, vector<1x256xf32>
    %341 = vector.broadcast %340 : vector<1x256xf32> to vector<8x256xf32>
    %342 = arith.addf %339, %341 : vector<8x256xf32>
    %343 = vector.extract_strided_slice %342 {offsets = [0, 0], sizes = [8, 128], strides = [1, 1]} : vector<8x256xf32> to vector<8x128xf32>
    %344 = math.tanh %343 : vector<8x128xf32>
    %345 = vector.extract_strided_slice %342 {offsets = [0, 128], sizes = [8, 128], strides = [1, 1]} : vector<8x256xf32> to vector<8x128xf32>
    %346 = arith.negf %345 : vector<8x128xf32>
    %347 = math.exp %346 : vector<8x128xf32>
    %cst_147 = arith.constant 1.000000e+00 : f32
    %348 = vector.broadcast %cst_147 : f32 to vector<8x128xf32>
    %349 = arith.addf %348, %347 : vector<8x128xf32>
    %350 = arith.divf %348, %349 : vector<8x128xf32>
    %351 = arith.subf %344, %336 : vector<8x128xf32>
    %352 = arith.mulf %351, %350 : vector<8x128xf32>
    %353 = arith.addf %352, %336 : vector<8x128xf32>
    %354 = arith.index_cast %c5_i32 : i32 to index
    %c0_148 = arith.constant 0 : index
    %c0_149 = arith.constant 0 : index
    %355 = vector.load %arg6[%354, %c0_148, %c0_149] : memref<8x8x128xf32, #tpu.memory_space<vmem>>, vector<1x8x128xf32>
    %356 = vector.shape_cast %355 : vector<1x8x128xf32> to vector<8x128xf32>
    %357 = vector.shape_cast %353 : vector<8x128xf32> to vector<1x8x128xf32>
    tpu.vector_store %arg6[%354, %c0_148, %c0_149], %357 {strides = array<i32>} : memref<8x8x128xf32, #tpu.memory_space<vmem>>, vector<1x8x128xf32>,
    %c6_i32 = arith.constant 6 : i32
    %358 = arith.index_cast %c6_i32 : i32 to index
    %c0_150 = arith.constant 0 : index
    %c0_151 = arith.constant 0 : index
    %359 = vector.load %arg3[%358, %c0_150, %c0_151] : memref<8x8x256xf32, #tpu.memory_space<vmem>>, vector<1x8x256xf32>
    %360 = vector.shape_cast %359 : vector<1x8x256xf32> to vector<8x256xf32>
    %c0_152 = arith.constant 0 : index
    %c0_153 = arith.constant 0 : index
    %c0_154 = arith.constant 0 : index
    %361 = vector.load %arg4[%c0_152, %c0_153, %c0_154] : memref<3x128x256xf32, #tpu.memory_space<vmem>>, vector<1x128x256xf32>
    %362 = vector.shape_cast %361 : vector<1x128x256xf32> to vector<128x256xf32>
    %cst_155 = arith.constant dense<0.000000e+00> : vector<8x256xf32>
    %363 = tpu.matmul %353, %362, %cst_155 {dimension_numbers = #tpu.dot_dimension_numbers<[1], [0], [0], [1], [0, 0, 1, 1], [], []>} : vector<8x128xf32>, vector<128x256xf32>, vector<8x256xf32> -> vector<8x256xf32>
    %c0_156 = arith.constant 0 : index
    %c0_157 = arith.constant 0 : index
    %364 = vector.load %arg5[%c0_156, %c0_157] : memref<3x256xf32, #tpu.memory_space<vmem>>, vector<1x256xf32>
    %365 = vector.broadcast %364 : vector<1x256xf32> to vector<8x256xf32>
    %366 = arith.addf %363, %365 : vector<8x256xf32>
    %367 = arith.addf %360, %366 : vector<8x256xf32>
    %368 = vector.extract_strided_slice %367 {offsets = [0, 0], sizes = [8, 128], strides = [1, 1]} : vector<8x256xf32> to vector<8x128xf32>
    %369 = math.tanh %368 : vector<8x128xf32>
    %370 = vector.extract_strided_slice %367 {offsets = [0, 128], sizes = [8, 128], strides = [1, 1]} : vector<8x256xf32> to vector<8x128xf32>
    %371 = arith.negf %370 : vector<8x128xf32>
    %372 = math.exp %371 : vector<8x128xf32>
    %cst_158 = arith.constant 1.000000e+00 : f32
    %373 = vector.broadcast %cst_158 : f32 to vector<8x128xf32>
    %374 = arith.addf %373, %372 : vector<8x128xf32>
    %375 = arith.divf %373, %374 : vector<8x128xf32>
    %376 = arith.subf %369, %353 : vector<8x128xf32>
    %377 = arith.mulf %376, %375 : vector<8x128xf32>
    %378 = arith.addf %377, %353 : vector<8x128xf32>
    %c1_159 = arith.constant 1 : index
    %c0_160 = arith.constant 0 : index
    %c0_161 = arith.constant 0 : index
    %379 = vector.load %arg4[%c1_159, %c0_160, %c0_161] : memref<3x128x256xf32, #tpu.memory_space<vmem>>, vector<1x128x256xf32>
    %380 = vector.shape_cast %379 : vector<1x128x256xf32> to vector<128x256xf32>
    %cst_162 = arith.constant dense<0.000000e+00> : vector<8x256xf32>
    %381 = tpu.matmul %378, %380, %cst_162 {dimension_numbers = #tpu.dot_dimension_numbers<[1], [0], [0], [1], [0, 0, 1, 1], [], []>} : vector<8x128xf32>, vector<128x256xf32>, vector<8x256xf32> -> vector<8x256xf32>
    %c1_163 = arith.constant 1 : index
    %c0_164 = arith.constant 0 : index
    %382 = vector.load %arg5[%c1_163, %c0_164] : memref<3x256xf32, #tpu.memory_space<vmem>>, vector<1x256xf32>
    %383 = vector.broadcast %382 : vector<1x256xf32> to vector<8x256xf32>
    %384 = arith.addf %381, %383 : vector<8x256xf32>
    %385 = vector.extract_strided_slice %384 {offsets = [0, 0], sizes = [8, 128], strides = [1, 1]} : vector<8x256xf32> to vector<8x128xf32>
    %386 = math.tanh %385 : vector<8x128xf32>
    %387 = vector.extract_strided_slice %384 {offsets = [0, 128], sizes = [8, 128], strides = [1, 1]} : vector<8x256xf32> to vector<8x128xf32>
    %388 = arith.negf %387 : vector<8x128xf32>
    %389 = math.exp %388 : vector<8x128xf32>
    %cst_165 = arith.constant 1.000000e+00 : f32
    %390 = vector.broadcast %cst_165 : f32 to vector<8x128xf32>
    %391 = arith.addf %390, %389 : vector<8x128xf32>
    %392 = arith.divf %390, %391 : vector<8x128xf32>
    %393 = arith.subf %386, %378 : vector<8x128xf32>
    %394 = arith.mulf %393, %392 : vector<8x128xf32>
    %395 = arith.addf %394, %378 : vector<8x128xf32>
    %c2_166 = arith.constant 2 : index
    %c0_167 = arith.constant 0 : index
    %c0_168 = arith.constant 0 : index
    %396 = vector.load %arg4[%c2_166, %c0_167, %c0_168] : memref<3x128x256xf32, #tpu.memory_space<vmem>>, vector<1x128x256xf32>
    %397 = vector.shape_cast %396 : vector<1x128x256xf32> to vector<128x256xf32>
    %cst_169 = arith.constant dense<0.000000e+00> : vector<8x256xf32>
    %398 = tpu.matmul %395, %397, %cst_169 {dimension_numbers = #tpu.dot_dimension_numbers<[1], [0], [0], [1], [0, 0, 1, 1], [], []>} : vector<8x128xf32>, vector<128x256xf32>, vector<8x256xf32> -> vector<8x256xf32>
    %c2_170 = arith.constant 2 : index
    %c0_171 = arith.constant 0 : index
    %399 = vector.load %arg5[%c2_170, %c0_171] : memref<3x256xf32, #tpu.memory_space<vmem>>, vector<1x256xf32>
    %400 = vector.broadcast %399 : vector<1x256xf32> to vector<8x256xf32>
    %401 = arith.addf %398, %400 : vector<8x256xf32>
    %402 = vector.extract_strided_slice %401 {offsets = [0, 0], sizes = [8, 128], strides = [1, 1]} : vector<8x256xf32> to vector<8x128xf32>
    %403 = math.tanh %402 : vector<8x128xf32>
    %404 = vector.extract_strided_slice %401 {offsets = [0, 128], sizes = [8, 128], strides = [1, 1]} : vector<8x256xf32> to vector<8x128xf32>
    %405 = arith.negf %404 : vector<8x128xf32>
    %406 = math.exp %405 : vector<8x128xf32>
    %cst_172 = arith.constant 1.000000e+00 : f32
    %407 = vector.broadcast %cst_172 : f32 to vector<8x128xf32>
    %408 = arith.addf %407, %406 : vector<8x128xf32>
    %409 = arith.divf %407, %408 : vector<8x128xf32>
    %410 = arith.subf %403, %395 : vector<8x128xf32>
    %411 = arith.mulf %410, %409 : vector<8x128xf32>
    %412 = arith.addf %411, %395 : vector<8x128xf32>
    %413 = arith.index_cast %c6_i32 : i32 to index
    %c0_173 = arith.constant 0 : index
    %c0_174 = arith.constant 0 : index
    %414 = vector.load %arg6[%413, %c0_173, %c0_174] : memref<8x8x128xf32, #tpu.memory_space<vmem>>, vector<1x8x128xf32>
    %415 = vector.shape_cast %414 : vector<1x8x128xf32> to vector<8x128xf32>
    %416 = vector.shape_cast %412 : vector<8x128xf32> to vector<1x8x128xf32>
    tpu.vector_store %arg6[%413, %c0_173, %c0_174], %416 {strides = array<i32>} : memref<8x8x128xf32, #tpu.memory_space<vmem>>, vector<1x8x128xf32>,
    %c7_i32 = arith.constant 7 : i32
    %417 = arith.index_cast %c7_i32 : i32 to index
    %c0_175 = arith.constant 0 : index
    %c0_176 = arith.constant 0 : index
    %418 = vector.load %arg3[%417, %c0_175, %c0_176] : memref<8x8x256xf32, #tpu.memory_space<vmem>>, vector<1x8x256xf32>
    %419 = vector.shape_cast %418 : vector<1x8x256xf32> to vector<8x256xf32>
    %c0_177 = arith.constant 0 : index
    %c0_178 = arith.constant 0 : index
    %c0_179 = arith.constant 0 : index
    %420 = vector.load %arg4[%c0_177, %c0_178, %c0_179] : memref<3x128x256xf32, #tpu.memory_space<vmem>>, vector<1x128x256xf32>
    %421 = vector.shape_cast %420 : vector<1x128x256xf32> to vector<128x256xf32>
    %cst_180 = arith.constant dense<0.000000e+00> : vector<8x256xf32>
    %422 = tpu.matmul %412, %421, %cst_180 {dimension_numbers = #tpu.dot_dimension_numbers<[1], [0], [0], [1], [0, 0, 1, 1], [], []>} : vector<8x128xf32>, vector<128x256xf32>, vector<8x256xf32> -> vector<8x256xf32>
    %c0_181 = arith.constant 0 : index
    %c0_182 = arith.constant 0 : index
    %423 = vector.load %arg5[%c0_181, %c0_182] : memref<3x256xf32, #tpu.memory_space<vmem>>, vector<1x256xf32>
    %424 = vector.broadcast %423 : vector<1x256xf32> to vector<8x256xf32>
    %425 = arith.addf %422, %424 : vector<8x256xf32>
    %426 = arith.addf %419, %425 : vector<8x256xf32>
    %427 = vector.extract_strided_slice %426 {offsets = [0, 0], sizes = [8, 128], strides = [1, 1]} : vector<8x256xf32> to vector<8x128xf32>
    %428 = math.tanh %427 : vector<8x128xf32>
    %429 = vector.extract_strided_slice %426 {offsets = [0, 128], sizes = [8, 128], strides = [1, 1]} : vector<8x256xf32> to vector<8x128xf32>
    %430 = arith.negf %429 : vector<8x128xf32>
    %431 = math.exp %430 : vector<8x128xf32>
    %cst_183 = arith.constant 1.000000e+00 : f32
    %432 = vector.broadcast %cst_183 : f32 to vector<8x128xf32>
    %433 = arith.addf %432, %431 : vector<8x128xf32>
    %434 = arith.divf %432, %433 : vector<8x128xf32>
    %435 = arith.subf %428, %412 : vector<8x128xf32>
    %436 = arith.mulf %435, %434 : vector<8x128xf32>
    %437 = arith.addf %436, %412 : vector<8x128xf32>
    %c1_184 = arith.constant 1 : index
    %c0_185 = arith.constant 0 : index
    %c0_186 = arith.constant 0 : index
    %438 = vector.load %arg4[%c1_184, %c0_185, %c0_186] : memref<3x128x256xf32, #tpu.memory_space<vmem>>, vector<1x128x256xf32>
    %439 = vector.shape_cast %438 : vector<1x128x256xf32> to vector<128x256xf32>
    %cst_187 = arith.constant dense<0.000000e+00> : vector<8x256xf32>
    %440 = tpu.matmul %437, %439, %cst_187 {dimension_numbers = #tpu.dot_dimension_numbers<[1], [0], [0], [1], [0, 0, 1, 1], [], []>} : vector<8x128xf32>, vector<128x256xf32>, vector<8x256xf32> -> vector<8x256xf32>
    %c1_188 = arith.constant 1 : index
    %c0_189 = arith.constant 0 : index
    %441 = vector.load %arg5[%c1_188, %c0_189] : memref<3x256xf32, #tpu.memory_space<vmem>>, vector<1x256xf32>
    %442 = vector.broadcast %441 : vector<1x256xf32> to vector<8x256xf32>
    %443 = arith.addf %440, %442 : vector<8x256xf32>
    %444 = vector.extract_strided_slice %443 {offsets = [0, 0], sizes = [8, 128], strides = [1, 1]} : vector<8x256xf32> to vector<8x128xf32>
    %445 = math.tanh %444 : vector<8x128xf32>
    %446 = vector.extract_strided_slice %443 {offsets = [0, 128], sizes = [8, 128], strides = [1, 1]} : vector<8x256xf32> to vector<8x128xf32>
    %447 = arith.negf %446 : vector<8x128xf32>
    %448 = math.exp %447 : vector<8x128xf32>
    %cst_190 = arith.constant 1.000000e+00 : f32
    %449 = vector.broadcast %cst_190 : f32 to vector<8x128xf32>
    %450 = arith.addf %449, %448 : vector<8x128xf32>
    %451 = arith.divf %449, %450 : vector<8x128xf32>
    %452 = arith.subf %445, %437 : vector<8x128xf32>
    %453 = arith.mulf %452, %451 : vector<8x128xf32>
    %454 = arith.addf %453, %437 : vector<8x128xf32>
    %c2_191 = arith.constant 2 : index
    %c0_192 = arith.constant 0 : index
    %c0_193 = arith.constant 0 : index
    %455 = vector.load %arg4[%c2_191, %c0_192, %c0_193] : memref<3x128x256xf32, #tpu.memory_space<vmem>>, vector<1x128x256xf32>
    %456 = vector.shape_cast %455 : vector<1x128x256xf32> to vector<128x256xf32>
    %cst_194 = arith.constant dense<0.000000e+00> : vector<8x256xf32>
    %457 = tpu.matmul %454, %456, %cst_194 {dimension_numbers = #tpu.dot_dimension_numbers<[1], [0], [0], [1], [0, 0, 1, 1], [], []>} : vector<8x128xf32>, vector<128x256xf32>, vector<8x256xf32> -> vector<8x256xf32>
    %c2_195 = arith.constant 2 : index
    %c0_196 = arith.constant 0 : index
    %458 = vector.load %arg5[%c2_195, %c0_196] : memref<3x256xf32, #tpu.memory_space<vmem>>, vector<1x256xf32>
    %459 = vector.broadcast %458 : vector<1x256xf32> to vector<8x256xf32>
    %460 = arith.addf %457, %459 : vector<8x256xf32>
    %461 = vector.extract_strided_slice %460 {offsets = [0, 0], sizes = [8, 128], strides = [1, 1]} : vector<8x256xf32> to vector<8x128xf32>
    %462 = math.tanh %461 : vector<8x128xf32>
    %463 = vector.extract_strided_slice %460 {offsets = [0, 128], sizes = [8, 128], strides = [1, 1]} : vector<8x256xf32> to vector<8x128xf32>
    %464 = arith.negf %463 : vector<8x128xf32>
    %465 = math.exp %464 : vector<8x128xf32>
    %cst_197 = arith.constant 1.000000e+00 : f32
    %466 = vector.broadcast %cst_197 : f32 to vector<8x128xf32>
    %467 = arith.addf %466, %465 : vector<8x128xf32>
    %468 = arith.divf %466, %467 : vector<8x128xf32>
    %469 = arith.subf %462, %454 : vector<8x128xf32>
    %470 = arith.mulf %469, %468 : vector<8x128xf32>
    %471 = arith.addf %470, %454 : vector<8x128xf32>
    %472 = arith.index_cast %c7_i32 : i32 to index
    %c0_198 = arith.constant 0 : index
    %c0_199 = arith.constant 0 : index
    %473 = vector.load %arg6[%472, %c0_198, %c0_199] : memref<8x8x128xf32, #tpu.memory_space<vmem>>, vector<1x8x128xf32>
    %474 = vector.shape_cast %473 : vector<1x8x128xf32> to vector<8x128xf32>
    %475 = vector.shape_cast %471 : vector<8x128xf32> to vector<1x8x128xf32>
    tpu.vector_store %arg6[%472, %c0_198, %c0_199], %475 {strides = array<i32>} : memref<8x8x128xf32, #tpu.memory_space<vmem>>, vector<1x8x128xf32>,
    %c8_i32 = arith.constant 8 : i32
    %c0_200 = arith.constant 0 : index
    %c0_201 = arith.constant 0 : index
    %476 = vector.load %arg7[%c0_200, %c0_201] : memref<8x128xf32, #tpu.memory_space<vmem>>, vector<8x128xf32>
    tpu.vector_store %arg7[%c0_200, %c0_201], %471 {strides = array<i32>} : memref<8x128xf32, #tpu.memory_space<vmem>>, vector<8x128xf32>,
    return
  }
  func.func @transform_0(%arg0: i32, %arg1: i32) -> (i32, i32) {
    %c0_i32 = arith.constant 0 : i32
    %c0_i32_0 = arith.constant 0 : i32
    return %arg0, %c0_i32 : i32, i32
  }
  func.func @transform_1(%arg0: i32, %arg1: i32) -> (i32, i32, i32) {
    %c0_i32 = arith.constant 0 : i32
    %c0_i32_0 = arith.constant 0 : i32
    return %arg1, %arg0, %c0_i32 : i32, i32, i32
  }
  func.func @transform_2(%arg0: i32, %arg1: i32) -> (i32, i32, i32) {
    %c0_i32 = arith.constant 0 : i32
    %c0_i32_0 = arith.constant 0 : i32
    %c0_i32_1 = arith.constant 0 : i32
    %c0_i32_2 = arith.constant 0 : i32
    return %c0_i32, %c0_i32_0, %c0_i32_1 : i32, i32, i32
  }
  func.func @transform_3(%arg0: i32, %arg1: i32) -> (i32, i32) {
    %c0_i32 = arith.constant 0 : i32
    %c0_i32_0 = arith.constant 0 : i32
    %c0_i32_1 = arith.constant 0 : i32
    return %c0_i32, %c0_i32_0 : i32, i32
  }
  func.func @transform_4(%arg0: i32, %arg1: i32) -> (i32, i32, i32) {
    %c0_i32 = arith.constant 0 : i32
    %c0_i32_0 = arith.constant 0 : i32
    return %arg1, %arg0, %c0_i32 : i32, i32, i32
  }
}

</mosaic_0001>

<bundles_post_ra>
// kernel: tpu_custom_call.1
= control target key start
LH: loop header
LB: loop body
LE: loop exit
PB: predicated region body
PF: predicated region fallthrough
CT: control target
= control target key end

     0   :  { %9 = vsyncpa [#allocation4], 0  ;;  %s5142_s0 = inlined_call_operand.hbm [shape: f32[8,128], index: 0, kind: input, shape index: {}]   ;;  %s5143_s1 = inlined_call_operand.hbm [shape: f32[8,8,256], index: 1, kind: input, shape index: {}]   ;;  %s5144_s2 = inlined_call_operand.hbm [shape: f32[3,128,256], index: 2, kind: input, shape index: {}]   ;;  %s5145_s3 = inlined_call_operand.vmem [shape: f32[3,256], index: 3, kind: input, shape index: {}]   ;;  %s5146_s4 = inlined_call_operand.hbm [shape: f32[8,8,128], index: 4, kind: output, shape index: {}]  }
   0x1   :  { %10 = vsyncpa [#allocation7], 0 }
   0x2   :  { %11 = vsyncpa [#allocation5], 0  ;;  %s4196_s15 = smov [#allocation6]   ;;  %s4102_s19 = scalar_lea.hbm %s5143_s1, 2048 }
   0x3   :  { %s27_s16 = sshll.u32 %s4196_s15, 4  ;;  %p4103_p0 = scmp.ne.s32.totalorder %s5143_s1, %s4102_s19  ;;  %s28_s16 = int_to_ptr.vmem [resolvable:$true] %s27_s16 }
   0x4   :  { %p4106_p1 = scmp.lt.u32.totalorder %s4102_s19, %s5143_s1 }
   0x6   :  { %p4108_p2 = pnand %p4106_p1, %p4103_p0 }
   0x8   :  { %4111 = shalt.err (!%p4108_p2)
}
   0x9   :  { %s4112_s24 = scalar_lea.vmem %s28_s16, 2048  ;;  %p4117_p4 = scmp.lt.s32.totalorder %s28_s16, %s28_s16 }
   0xa   :  { %p4113_p3 = scmp.ne.s32.totalorder %s28_s16, %s4112_s24  ;;  %p4118_p5 = scmp.lt.s32.totalorder %s4112_s24, %s4112_s24 }
   0xc   :  { %p4119_p6 = por %p4118_p5, %p4117_p4 }
   0xe   :  { %p4120_p7 = pnand %p4119_p6, %p4113_p3 }
  0x10   :  { %4123 = shalt.err (!%p4120_p7)
}
  0x11   :  { %s4197_s25 = smov 256   ;;  %s4198_s26 = smov 16  }
  0x12   :  { %33 = dma.hbm_to_vmem [thread:$0]  %s5143_s1, 2048, %s28_s16, [#allocation7], %s4197_s25, %s4197_s25, %s4198_s26  }
  0x13   :  { %s4199_s29 = smov [#allocation3]   ;;  %s4200_s5 = smov [#allocation8]  }
  0x14   :  { %s18_s30 = sshll.u32 %s4199_s29, 4  ;;  %s39_s6 = sshll.u32 %s4200_s5, 4  ;;  %s19_s30 = int_to_ptr.vmem [resolvable:$true] %s18_s30  ;;  %s40_s6 = int_to_ptr.vmem [resolvable:$true] %s39_s6 }
  0x15   :  { %s4124_s9 = scalar_lea.hbm %s5142_s0, 128 }
  0x16   :  { %p4125_p8 = scmp.ne.s32.totalorder %s5142_s0, %s4124_s9  ;;  %p4128_p9 = scmp.lt.u32.totalorder %s4124_s9, %s5142_s0 }
  0x18   :  { %p4130_p10 = pnand %p4128_p9, %p4125_p8 }
  0x1a   :  { %4133 = shalt.err (!%p4130_p10)
}
  0x1b   :  { %s4134_s1 = scalar_lea.vmem %s19_s30, 128  ;;  %p4139_p12 = scmp.lt.s32.totalorder %s19_s30, %s19_s30 }
  0x1c   :  { %p4135_p11 = scmp.ne.s32.totalorder %s19_s30, %s4134_s1  ;;  %p4140_p13 = scmp.lt.s32.totalorder %s4134_s1, %s4134_s1 }
  0x1e   :  { %p4141_p0 = por %p4140_p13, %p4139_p12 }
  0x20   :  { %p4142_p1 = pnand %p4141_p0, %p4135_p11 }
  0x22   :  { %4145 = shalt.err (!%p4142_p1)
}
  0x23   :  { %21 = dma.hbm_to_vmem [thread:$0]  %s5142_s0, 128, %s19_s30, [#allocation4]  }
  0x24   :  { %s4146_s18 = scalar_lea.hbm %s5144_s2, 12288 }
  0x25   :  { %p4147_p2 = scmp.ne.s32.totalorder %s5144_s2, %s4146_s18  ;;  %p4150_p3 = scmp.lt.u32.totalorder %s4146_s18, %s5144_s2 }
  0x27   :  { %p4152_p4 = pnand %p4150_p3, %p4147_p2 }
  0x29   :  { %4155 = shalt.err (!%p4152_p4)
}
  0x2a   :  { %s4156_s23 = scalar_lea.vmem %s40_s6, 12288  ;;  %p4161_p6 = scmp.lt.s32.totalorder %s40_s6, %s40_s6 }
  0x2b   :  { %p4157_p5 = scmp.ne.s32.totalorder %s40_s6, %s4156_s23  ;;  %p4162_p7 = scmp.lt.s32.totalorder %s4156_s23, %s4156_s23 }
  0x2d   :  { %p4163_p8 = por %p4162_p7, %p4161_p6 }
  0x2f   :  { %p4164_p9 = pnand %p4163_p8, %p4157_p5 }
  0x31   :  { %4167 = shalt.err (!%p4164_p9)
}
  0x32   :  { %45 = dma.hbm_to_vmem [thread:$0]  %s5144_s2, 12288, %s40_s6, [#allocation7], %s4197_s25, %s4197_s25, %s4198_s26  }
  0x33   :  { %4190 = dma.done.wait [#allocation4], 128  }
  0x34   :  { %4191 = vsyncadd [#allocation4], 4294967168 }
  0x35   :  { %4192 = dma.done.wait [#allocation7], 14336  }
  0x36   :  { %4193 = vsyncadd [#allocation7], 4294952960  ;;  %v5147_v0 = vmov 0.0   ;;  %v67_v1 = vld [vmem:[#allocation8 + $0x8] sm:$0xff]  ;;  %v69_v2 = vld [vmem:[#allocation8 + $0x18] sm:$0xff]  ;;  %s4202_s16 = smov [#allocation9]  }
  0x37   :  { %174 = vmatprep.mubr.f32.mxu0 %v5147_v0  ;;  %303 = vmatprep.mubr.f32.mxu1 %v5147_v0  ;;  %v66_v3 = vld [vmem:[#allocation8] sm:$0xff]  ;;  %v4274_v4 = vpack.c.bf16 %v69_v2, %v67_v1  ;;  %v68_v5 = vld [vmem:[#allocation8 + $0x10] sm:$0xff]  ;;  %v71_v6 = vld [vmem:[#allocation8 + $0x28] sm:$0xff]  ;;  %s3128_s17 = sshll.u32 %s4202_s16, 4  ;;  %s3129_s17 = int_to_ptr.vmem [resolvable:$true] %s3128_s17 }
  0x38   :  { %v73_v7 = vld [vmem:[#allocation8 + $0x38] sm:$0xff]  ;;  %v4276_v8 = vpack.c.bf16 %v68_v5, %v66_v3  ;;  %v70_v10 = vld [vmem:[#allocation8 + $0x20] sm:$0xff]  ;;  %v72_v11 = vld [vmem:[#allocation8 + $0x30] sm:$0xff]  ;;  %p4173_p11 = scmp.lt.s32.totalorder %s3129_s17, %s3129_s17 }
  0x39   :  { %v4278_v9 = vpack.c.bf16 %v73_v7, %v71_v6  ;;  %v75_v12 = vld [vmem:[#allocation8 + $0x48] sm:$0xff]  ;;  %3182 = vmatprep.subr.bf16.mxu0 %v4274_v4  ;;  %v77_v13 = vld [vmem:[#allocation8 + $0x58] sm:$0xff]  ;;  %v4282_v14 = vpack.c.bf16 %v72_v11, %v70_v10  ;;  %v74_v16 = vld [vmem:[#allocation8 + $0x40] sm:$0xff] }
  0x3a   :  { %3184 = vmatpush1.bf16.msra.mxu0 %v4276_v8  ;;  %v4285_v15 = vpack.c.bf16 %v77_v13, %v75_v12  ;;  %v76_v17 = vld [vmem:[#allocation8 + $0x50] sm:$0xff]  ;;  %v79_v18 = vld [vmem:[#allocation8 + $0x68] sm:$0xff]  ;;  %v81_v19 = vld [vmem:[#allocation8 + $0x78] sm:$0xff] }
  0x3b   :  { %3186 = vmatprep.subr.bf16.mxu0 %v4278_v9  ;;  %v4288_v20 = vpack.c.bf16 %v76_v17, %v74_v16  ;;  %v4291_v21 = vpack.c.bf16 %v81_v19, %v79_v18  ;;  %v78_v22 = vld [vmem:[#allocation8 + $0x60] sm:$0xff]  ;;  %v80_v23 = vld [vmem:[#allocation8 + $0x70] sm:$0xff]  ;;  %v83_v24 = vld [vmem:[#allocation8 + $0x88] sm:$0xff] }
  0x3c   :  { %v85_v25 = vld [vmem:[#allocation8 + $0x98] sm:$0xff]  ;;  %v4294_v26 = vpack.c.bf16 %v80_v23, %v78_v22  ;;  %v82_v28 = vld [vmem:[#allocation8 + $0x80] sm:$0xff]  ;;  %v84_v29 = vld [vmem:[#allocation8 + $0x90] sm:$0xff] }
  0x3d   :  { %v4297_v27 = vpack.c.bf16 %v85_v25, %v83_v24  ;;  %v87_v30 = vld [vmem:[#allocation8 + $0xa8] sm:$0xff]  ;;  %v89_v31 = vld [vmem:[#allocation8 + $0xb8] sm:$0xff]  ;;  %v4300_v32 = vpack.c.bf16 %v84_v29, %v82_v28  ;;  %v86_v34 = vld [vmem:[#allocation8 + $0xa0] sm:$0xff] }
  0x3e   :  { %3188 = vmatpush1.bf16.msra.mxu0 %v4282_v14  ;;  %v4303_v33 = vpack.c.bf16 %v89_v31, %v87_v30  ;;  %v88_v35 = vld [vmem:[#allocation8 + $0xb0] sm:$0xff]  ;;  %v91_v36 = vld [vmem:[#allocation8 + $0xc8] sm:$0xff]  ;;  %v93_v37 = vld [vmem:[#allocation8 + $0xd8] sm:$0xff] }
  0x3f   :  { %3190 = vmatprep.subr.bf16.mxu0 %v4285_v15  ;;  %v4306_v38 = vpack.c.bf16 %v88_v35, %v86_v34  ;;  %v4309_v39 = vpack.c.bf16 %v93_v37, %v91_v36  ;;  %v90_v40 = vld [vmem:[#allocation8 + $0xc0] sm:$0xff]  ;;  %v92_v41 = vld [vmem:[#allocation8 + $0xd0] sm:$0xff]  ;;  %v95_v42 = vld [vmem:[#allocation8 + $0xe8] sm:$0xff] }
  0x40   :  { %v97_v43 = vld [vmem:[#allocation8 + $0xf8] sm:$0xff]  ;;  %v4312_v44 = vpack.c.bf16 %v92_v41, %v90_v40  ;;  %v94_v46 = vld [vmem:[#allocation8 + $0xe0] sm:$0xff]  ;;  %v96_v47 = vld [vmem:[#allocation8 + $0xf0] sm:$0xff] }
  0x41   :  { %v4315_v45 = vpack.c.bf16 %v97_v43, %v95_v42  ;;  %v4318_v48 = vpack.c.bf16 %v96_v47, %v94_v46  ;;  %v4322_v49 = vld [vmem:[#allocation3] sm:$0xff]  ;;  %v195_v50 = vld [vmem:[#allocation8 + $0x108] sm:$0xff]  ;;  %v194_v53 = vld [vmem:[#allocation8 + $0x100] sm:$0xff] }
  0x42   :  { %3192 = vmatpush1.bf16.msra.mxu0 %v4288_v20  ;;  %v197_v51 = vld [vmem:[#allocation8 + $0x118] sm:$0xff]  ;;  %v196_v54 = vld [vmem:[#allocation8 + $0x110] sm:$0xff]  ;;  %v199_v56 = vld [vmem:[#allocation8 + $0x128] sm:$0xff] }
  0x43   :  { %3194 = vmatprep.subr.bf16.mxu0 %v4291_v21  ;;  %5159 = vst [vmem:[#allocation13_spill] sm:$0xff] %v4318_v48  ;;  %v4326_v52 = vpack.c.bf16 %v197_v51, %v195_v50  ;;  %v4328_v55 = vpack.c.bf16 %v196_v54, %v194_v53  ;;  %v201_v57 = vld [vmem:[#allocation8 + $0x138] sm:$0xff]  ;;  %v198_v59 = vld [vmem:[#allocation8 + $0x120] sm:$0xff]  ;;  %v200_v60 = vld [vmem:[#allocation8 + $0x130] sm:$0xff]  ;;  %v100_v53 = vlaneseq }
  0x44   :  { %v4332_v58 = vpack.c.bf16 %v201_v57, %v199_v56  ;;  %v4334_v61 = vpack.c.bf16 %v200_v60, %v198_v59  ;;  %v203_v62 = vld [vmem:[#allocation8 + $0x148] sm:$0xff]  ;;  %v205_v63 = vld [vmem:[#allocation8 + $0x158] sm:$0xff]  ;;  %v202_v2 = vld [vmem:[#allocation8 + $0x140] sm:$0xff] }
  0x45   :  { %3214 = vmatprep.subr.bf16.mxu1 %v4326_v52  ;;  %v4338_v1 = vpack.c.bf16 %v205_v63, %v203_v62  ;;  %v204_v3 = vld [vmem:[#allocation8 + $0x150] sm:$0xff]  ;;  %v207_v6 = vld [vmem:[#allocation8 + $0x168] sm:$0xff]  ;;  %v209_v7 = vld [vmem:[#allocation8 + $0x178] sm:$0xff]  ;;  %v101_v54 = vshrl.u32 %v100_v53, 7 }
  0x46   :  { %3196 = vmatpush1.bf16.msra.mxu0 %v4294_v26  ;;  %3216 = vmatpush1.bf16.msra.mxu1 %v4328_v55  ;;  %v4340_v5 = vpack.c.bf16 %v204_v3, %v202_v2  ;;  %v4344_v10 = vpack.c.bf16 %v209_v7, %v207_v6  ;;  %v206_v11 = vld [vmem:[#allocation8 + $0x160] sm:$0xff]  ;;  %v208_v12 = vld [vmem:[#allocation8 + $0x170] sm:$0xff]  ;;  %v211_v16 = vld [vmem:[#allocation8 + $0x188] sm:$0xff] }
  0x47   :  { %3198 = vmatprep.subr.bf16.mxu0 %v4297_v27  ;;  %3218 = vmatprep.subr.bf16.mxu1 %v4332_v58  ;;  %v4346_v13 = vpack.c.bf16 %v208_v12, %v206_v11  ;;  %v213_v17 = vld [vmem:[#allocation8 + $0x198] sm:$0xff]  ;;  %v210_v19 = vld [vmem:[#allocation8 + $0x180] sm:$0xff]  ;;  %v212_v22 = vld [vmem:[#allocation8 + $0x190] sm:$0xff]  ;;  %v4375_v56 = vsub.s32 1, %v101_v54  ;;  %v4381_v62 = vsub.s32 0, %v101_v54 }
  0x48   :  { %v4350_v18 = vpack.c.bf16 %v213_v17, %v211_v16  ;;  %v4352_v23 = vpack.c.bf16 %v212_v22, %v210_v19  ;;  %v215_v24 = vld [vmem:[#allocation8 + $0x1a8] sm:$0xff]  ;;  %v217_v25 = vld [vmem:[#allocation8 + $0x1b8] sm:$0xff]  ;;  %v214_v28 = vld [vmem:[#allocation8 + $0x1a0] sm:$0xff] }
  0x49   :  { %v4356_v29 = vpack.c.bf16 %v217_v25, %v215_v24  ;;  %v216_v30 = vld [vmem:[#allocation8 + $0x1b0] sm:$0xff]  ;;  %v219_v31 = vld [vmem:[#allocation8 + $0x1c8] sm:$0xff]  ;;  %v221_v34 = vld [vmem:[#allocation8 + $0x1d8] sm:$0xff] }
  0x4a   :  { %3200 = vmatpush1.bf16.msra.mxu0 %v4300_v32  ;;  %3220 = vmatpush1.bf16.msra.mxu1 %v4334_v61  ;;  %v4358_v35 = vpack.c.bf16 %v216_v30, %v214_v28  ;;  %v4360_v36 = vpack.c.bf16 %v221_v34, %v219_v31  ;;  %v218_v37 = vld [vmem:[#allocation8 + $0x1c0] sm:$0xff]  ;;  %v220_v40 = vld [vmem:[#allocation8 + $0x1d0] sm:$0xff]  ;;  %v223_v41 = vld [vmem:[#allocation8 + $0x1e8] sm:$0xff] }
  0x4b   :  { %3202 = vmatprep.subr.bf16.mxu0 %v4303_v33  ;;  %3222 = vmatprep.subr.bf16.mxu1 %v4338_v1  ;;  %v225_v42 = vld [vmem:[#allocation8 + $0x1f8] sm:$0xff]  ;;  %v4364_v43 = vpack.c.bf16 %v220_v40, %v218_v37  ;;  %v222_v47 = vld [vmem:[#allocation8 + $0x1e0] sm:$0xff]  ;;  %v224_v50 = vld [vmem:[#allocation8 + $0x1f0] sm:$0xff] }
  0x4c   :  { %v4367_v46 = vpack.c.bf16 %v225_v42, %v223_v41  ;;  %v4370_v51 = vpack.c.bf16 %v224_v50, %v222_v47  ;;  %v98_v57 = vld [vmem:[%s5145_s3] ss:$4 sm:$0x3]  ;;  %v65_v63 = vld [vmem:[#allocation6 + $0x8] sm:$0xff]  ;;  %v64_v16 = vld [vmem:[#allocation6] sm:$0xff] }
  0x4d   :  { %v107_v59 = vrot.slane %v98_v57, %v4375_v56  ;;  %v103_v7 = vrot.slane %v98_v57, %v4381_v62  ;;  %v324_v34 = vld [vmem:[#allocation8 + $0x218] sm:$0xff]  ;;  %v321_v40 = vld [vmem:[#allocation8 + $0x200] sm:$0xff]  ;;  %v323_v41 = vld [vmem:[#allocation8 + $0x210] sm:$0xff] }
  0x4e   :  { %3204 = vmatpush1.bf16.msra.mxu0 %v4306_v38  ;;  %3224 = vmatpush1.bf16.msra.mxu1 %v4340_v5  ;;  %v4407_v42 = vpack.c.bf16 %v323_v41, %v321_v40  ;;  %v326_v47 = vld [vmem:[#allocation8 + $0x228] sm:$0xff]  ;;  %v328_v50 = vld [vmem:[#allocation8 + $0x238] sm:$0xff]  ;;  %v325_v54 = vld [vmem:[#allocation8 + $0x220] sm:$0xff] }
  0x4f   :  { %3206 = vmatprep.subr.bf16.mxu0 %v4309_v39  ;;  %3226 = vmatprep.subr.bf16.mxu1 %v4344_v10  ;;  %v4412_v53 = vpack.c.bf16 %v328_v50, %v326_v47  ;;  %v327_v57 = vld [vmem:[#allocation8 + $0x230] sm:$0xff]  ;;  %v342_v40 = vld [vmem:[#allocation8 + $0x2a8] sm:$0xff]  ;;  %v344_v41 = vld [vmem:[#allocation8 + $0x2b8] sm:$0xff] }
  0x50   :  { %v341_v47 = vld [vmem:[#allocation8 + $0x2a0] sm:$0xff]  ;;  %v4436_v50 = vpack.c.bf16 %v344_v41, %v342_v40  ;;  %v3142_v40 = vld [vmem:[%s5145_s3 + $0x1] ss:$4 sm:$0x3] }
  0x51   :  { %v236_v41 = vrot.slane %v3142_v40, %v4375_v56 }
  0x52   :  { %3208 = vmatpush1.bf16.msra.mxu0 %v4312_v44  ;;  %3228 = vmatpush1.bf16.msra.mxu1 %v4346_v13 }
  0x53   :  { %3210 = vmatprep.subr.bf16.mxu0 %v4315_v45  ;;  %3230 = vmatprep.subr.bf16.mxu1 %v4350_v18 }
  0x56   :  { %3212 = vmatpush1.bf16.msra.mxu0 %v4318_v48  ;;  %3232 = vmatpush1.bf16.msra.mxu1 %v4352_v23 }
  0x57   :  { %3234 = vmatprep.subr.bf16.mxu1 %v4356_v29 }
  0x59   :  { %175 = vmatmul.mubr.f32.vlgmr.msra.gmra.mrb[0].mxu0 %v4322_v49 }
  0x5a   :  { %430 = vmatprep.mubr.f32.mxu0 %v5147_v0  ;;  %3236 = vmatpush1.bf16.msra.mxu1 %v4358_v35 }
  0x5b   :  { %3238 = vmatprep.subr.bf16.mxu1 %v4360_v36 }
  0x5e   :  { %3240 = vmatpush1.bf16.msra.mxu1 %v4364_v43 }
  0x5f   :  { %3242 = vmatprep.subr.bf16.mxu1 %v4367_v46 }
  0x62   :  { %3244 = vmatpush1.bf16.msra.mxu1 %v4370_v51 }
  0x63   :  { %3278 = vmatprep.subr.bf16.mxu1 %v4274_v4 }
 0x12c   :  { %v176_v60 = vpop.f32.mrb[0].mxu0 }
 0x12d   :  { %v178_v2 = vpop.f32.mrb[1].mxu0  ;;  %v177_v12 = vadd.f32 %v176_v60, %v103_v7  ;;  %v330_v60 = vld [vmem:[#allocation8 + $0x248] sm:$0xff] }
 0x12e   :  { %v179_v3 = vadd.f32 %v178_v2, %v107_v59  ;;  %v4414_v59 = vpack.c.bf16 %v327_v57, %v325_v54  ;;  %v343_v54 = vld [vmem:[#allocation8 + $0x2b0] sm:$0xff]  ;;  %v346_v57 = vld [vmem:[#allocation8 + $0x2c8] sm:$0xff] }
 0x12f   :  { %v181_v17 = vadd.f32 %v177_v12, %v64_v16  ;;  %v336_v12 = vld [vmem:[#allocation8 + $0x278] sm:$0xff] }
 0x130   :  { %v182_v6 = vadd.f32 %v179_v3, %v65_v63  ;;  %v332_v63 = vld [vmem:[#allocation8 + $0x258] sm:$0xff]  ;;  %v329_v3 = vld [vmem:[#allocation8 + $0x240] sm:$0xff] }
 0x131   :  { %v4418_v2 = vpack.c.bf16 %v332_v63, %v330_v60  ;;  %v348_v60 = vld [vmem:[#allocation8 + $0x2d8] sm:$0xff]  ;;  %v4438_v63 = vpack.c.bf16 %v343_v54, %v341_v47 }
 0x132   :  { %v3141_v11 = vmul.f32 -1.442695, %v182_v6  ;;  %v331_v6 = vld [vmem:[#allocation8 + $0x250] sm:$0xff] }
 0x133   :  { %v4420_v7 = vpack.c.bf16 %v331_v6, %v329_v3  ;;  %v4440_v3 = vpack.c.bf16 %v348_v60, %v346_v57  ;;  %v345_v6 = vld [vmem:[#allocation8 + $0x2c0] sm:$0xff] }
 0x134   :  { %3958 = vpow2.f32 %v3141_v11  ;;  %v334_v11 = vld [vmem:[#allocation8 + $0x268] sm:$0xff] }
 0x135   :  { %3960 = vtanh.f32 %v181_v17  ;;  %v4424_v16 = vpack.c.bf16 %v336_v12, %v334_v11  ;;  %v333_v17 = vld [vmem:[#allocation8 + $0x260] sm:$0xff]  ;;  %v347_v11 = vld [vmem:[#allocation8 + $0x2d0] sm:$0xff]  ;;  %v350_v12 = vld [vmem:[#allocation8 + $0x2e8] sm:$0xff] }
 0x13e   :  { %v3959_v19 = vpop.eup %3958 }
 0x13f   :  { %v187_v22 = vadd.f32 1.0, %v3959_v19  ;;  %v3961_v24 = vpop.eup %3960  ;;  %v335_v19 = vld [vmem:[#allocation8 + $0x270] sm:$0xff] }
 0x140   :  { %v190_v25 = vsub.f32 %v3961_v24, %v4322_v49  ;;  %v338_v24 = vld [vmem:[#allocation8 + $0x288] sm:$0xff] }
 0x141   :  { %3962 = vrcp.f32 %v187_v22  ;;  %v4426_v22 = vpack.c.bf16 %v335_v19, %v333_v17  ;;  %v352_v17 = vld [vmem:[#allocation8 + $0x2f8] sm:$0xff]  ;;  %v4444_v19 = vpack.c.bf16 %v347_v11, %v345_v6  ;;  %v232_v6 = vrot.slane %v3142_v40, %v4381_v62 }
 0x143   :  { %5161 = vst [vmem:[#allocation15_spill] sm:$0xff] %v4444_v19 }
 0x14b   :  { %v3963_v28 = vpop.eup %3962 }
 0x14c   :  { %v191_v30 = vmul.f32 %v3963_v28, %v190_v25  ;;  %v340_v25 = vld [vmem:[#allocation8 + $0x298] sm:$0xff] }
 0x14d   :  { %v4430_v28 = vpack.c.bf16 %v340_v25, %v338_v24  ;;  %v4447_v24 = vpack.c.bf16 %v352_v17, %v350_v12  ;;  %v349_v25 = vld [vmem:[#allocation8 + $0x2e0] sm:$0xff] }
 0x14e   :  { %v4386_v31 = vadd.f32 %v191_v30, %v4322_v49  ;;  %v322_v49 = vld [vmem:[#allocation8 + $0x208] sm:$0xff]  ;;  %v337_v30 = vld [vmem:[#allocation8 + $0x280] sm:$0xff] }
 0x14f   :  { %v4405_v37 = vpack.c.bf16 %v324_v34, %v322_v49  ;;  %v339_v49 = vld [vmem:[#allocation8 + $0x290] sm:$0xff]  ;;  %5162 = vst [vmem:[#allocation16_spill] sm:$0xff] %v4447_v24 }
 0x150   :  { %304 = vmatmul.mubr.f32.vlgmr.msra.gmra.mrb[0].mxu1 %v4386_v31  ;;  %v4432_v34 = vpack.c.bf16 %v339_v49, %v337_v30  ;;  %v351_v30 = vld [vmem:[#allocation8 + $0x2f0] sm:$0xff] }
 0x151   :  { %3280 = vmatpush1.bf16.msra.mxu1 %v4276_v8  ;;  %559 = vmatprep.mubr.f32.mxu1 %v5147_v0  ;;  %5160 = vst [vmem:[#allocation14_spill] sm:$0xff] %v4405_v37  ;;  %v4450_v49 = vpack.c.bf16 %v351_v30, %v349_v25 }
 0x152   :  { %3282 = vmatprep.subr.bf16.mxu1 %v4278_v9  ;;  %3246 = vmatprep.subr.bf16.mxu0 %v4405_v37 }
 0x153   :  { %3248 = vmatpush1.bf16.msra.mxu0 %v4407_v42  ;;  %5163 = vst [vmem:[#allocation17_spill] sm:$0xff] %v4450_v49 }
 0x154   :  { %3250 = vmatprep.subr.bf16.mxu0 %v4412_v53 }
 0x155   :  { %3284 = vmatpush1.bf16.msra.mxu1 %v4282_v14 }
 0x156   :  { %3286 = vmatprep.subr.bf16.mxu1 %v4285_v15 }
 0x157   :  { %3252 = vmatpush1.bf16.msra.mxu0 %v4414_v59 }
 0x158   :  { %3254 = vmatprep.subr.bf16.mxu0 %v4418_v2 }
 0x159   :  { %3288 = vmatpush1.bf16.msra.mxu1 %v4288_v20 }
 0x15a   :  { %3290 = vmatprep.subr.bf16.mxu1 %v4291_v21 }
 0x15b   :  { %3256 = vmatpush1.bf16.msra.mxu0 %v4420_v7 }
 0x15c   :  { %3258 = vmatprep.subr.bf16.mxu0 %v4424_v16 }
 0x15d   :  { %3292 = vmatpush1.bf16.msra.mxu1 %v4294_v26 }
 0x15e   :  { %3294 = vmatprep.subr.bf16.mxu1 %v4297_v27 }
 0x15f   :  { %3260 = vmatpush1.bf16.msra.mxu0 %v4426_v22 }
 0x160   :  { %3262 = vmatprep.subr.bf16.mxu0 %v4430_v28 }
 0x161   :  { %3296 = vmatpush1.bf16.msra.mxu1 %v4300_v32 }
 0x162   :  { %3298 = vmatprep.subr.bf16.mxu1 %v4303_v33 }
 0x163   :  { %3264 = vmatpush1.bf16.msra.mxu0 %v4432_v34 }
 0x164   :  { %3266 = vmatprep.subr.bf16.mxu0 %v4436_v50 }
 0x165   :  { %3300 = vmatpush1.bf16.msra.mxu1 %v4306_v38 }
 0x166   :  { %3302 = vmatprep.subr.bf16.mxu1 %v4309_v39 }
 0x167   :  { %3268 = vmatpush1.bf16.msra.mxu0 %v4438_v63 }
 0x168   :  { %3270 = vmatprep.subr.bf16.mxu0 %v4440_v3 }
 0x169   :  { %3304 = vmatpush1.bf16.msra.mxu1 %v4312_v44 }
 0x16a   :  { %3306 = vmatprep.subr.bf16.mxu1 %v4315_v45 }
 0x16b   :  { %3272 = vmatpush1.bf16.msra.mxu0 %v4444_v19 }
 0x16c   :  { %3274 = vmatprep.subr.bf16.mxu0 %v4447_v24 }
 0x16d   :  { %3308 = vmatpush1.bf16.msra.mxu1 %v4318_v48 }
 0x16e   :  { %3342 = vmatprep.subr.bf16.mxu1 %v4405_v37 }
 0x16f   :  { %3276 = vmatpush1.bf16.msra.mxu0 %v4450_v49 }
 0x170   :  { %3310 = vmatprep.subr.bf16.mxu0 %v4326_v52 }
 0x223   :  { %v305_v47 = vpop.f32.mrb[0].mxu1 }
 0x224   :  { %v307_v54 = vpop.f32.mrb[1].mxu1  ;;  %v306_v11 = vadd.f32 %v305_v47, %v232_v6 }
 0x225   :  { %v308_v57 = vadd.f32 %v307_v54, %v236_v41  ;;  %v5164_v41 = vmov 0.0  }
 0x227   :  { %v3143_v60 = vmul.f32 -1.442695, %v308_v57 }
 0x229   :  { %3964 = vpow2.f32 %v3143_v60 }
 0x22a   :  { %3966 = vtanh.f32 %v306_v11 }
 0x233   :  { %v3965_v12 = vpop.eup %3964 }
 0x234   :  { %v314_v17 = vadd.f32 1.0, %v3965_v12  ;;  %v3967_v25 = vpop.eup %3966 }
 0x235   :  { %v317_v30 = vsub.f32 %v3967_v25, %v4386_v31 }
 0x236   :  { %3968 = vrcp.f32 %v314_v17 }
 0x240   :  { %v3969_v0 = vpop.eup %3968 }
 0x241   :  { %v318_v37 = vmul.f32 %v3969_v0, %v317_v30  ;;  %v3144_v0 = vld [vmem:[%s5145_s3 + $0x2] ss:$4 sm:$0x3] }
 0x242   :  { %v359_v57 = vrot.slane %v3144_v0, %v4381_v62 }
 0x243   :  { %v319_v48 = vadd.f32 %v318_v37, %v4386_v31  ;;  %v363_v31 = vrot.slane %v3144_v0, %v4375_v56 }
 0x245   :  { %431 = vmatmul.mubr.f32.vlgmr.msra.gmra.mrb[2].mxu0 %v319_v48 }
 0x246   :  { %3312 = vmatpush1.bf16.msra.mxu0 %v4328_v55  ;;  %686 = vmatprep.mubr.f32.mxu0 %v5164_v41 }
 0x247   :  { %3314 = vmatprep.subr.bf16.mxu0 %v4332_v58 }
 0x24a   :  { %3316 = vmatpush1.bf16.msra.mxu0 %v4334_v61 }
 0x24b   :  { %3318 = vmatprep.subr.bf16.mxu0 %v4338_v1 }
 0x24e   :  { %3320 = vmatpush1.bf16.msra.mxu0 %v4340_v5 }
 0x24f   :  { %3322 = vmatprep.subr.bf16.mxu0 %v4344_v10 }
 0x252   :  { %3324 = vmatpush1.bf16.msra.mxu0 %v4346_v13 }
 0x253   :  { %3326 = vmatprep.subr.bf16.mxu0 %v4350_v18 }
 0x256   :  { %3328 = vmatpush1.bf16.msra.mxu0 %v4352_v23 }
 0x257   :  { %3330 = vmatprep.subr.bf16.mxu0 %v4356_v29 }
 0x25a   :  { %3332 = vmatpush1.bf16.msra.mxu0 %v4358_v35 }
 0x25b   :  { %3334 = vmatprep.subr.bf16.mxu0 %v4360_v36 }
 0x25e   :  { %3336 = vmatpush1.bf16.msra.mxu0 %v4364_v43 }
 0x25f   :  { %3338 = vmatprep.subr.bf16.mxu0 %v4367_v46 }
 0x262   :  { %3340 = vmatpush1.bf16.msra.mxu0 %v4370_v51 }
 0x263   :  { %3374 = vmatprep.subr.bf16.mxu0 %v4274_v4 }
 0x318   :  { %v432_v37 = vpop.f32.mrb[2].mxu0 }
 0x319   :  { %v434_v40 = vpop.f32.mrb[3].mxu0  ;;  %v433_v60 = vadd.f32 %v432_v37, %v359_v57  ;;  %v450_v37 = vld [vmem:[#allocation6 + $0x18] sm:$0xff] }
 0x31a   :  { %v435_v47 = vadd.f32 %v434_v40, %v363_v31 }
 0x31c   :  { %v3145_v54 = vmul.f32 -1.442695, %v435_v47 }
 0x31e   :  { %3970 = vpow2.f32 %v3145_v54 }
 0x31f   :  { %3972 = vtanh.f32 %v433_v60 }
 0x328   :  { %v3971_v6 = vpop.eup %3970 }
 0x329   :  { %v441_v11 = vadd.f32 1.0, %v3971_v6  ;;  %v3973_v12 = vpop.eup %3972 }
 0x32a   :  { %v444_v4 = vsub.f32 %v3973_v12, %v319_v48 }
 0x32b   :  { %3974 = vrcp.f32 %v441_v11  ;;  %v449_v11 = vld [vmem:[#allocation6 + $0x10] sm:$0xff] }
 0x335   :  { %v3975_v17 = vpop.eup %3974 }
 0x336   :  { %v445_v25 = vmul.f32 %v3975_v17, %v444_v4 }
 0x338   :  { %v446_v30 = vadd.f32 %v445_v25, %v319_v48  ;;  %v483_v48 = vld [vmem:[%s5145_s3] ss:$4 sm:$0x3] }
 0x339   :  { %v492_v0 = vrot.slane %v483_v48, %v4375_v56  ;;  %v488_v57 = vrot.slane %v483_v48, %v4381_v62  ;;  %v831_v48 = vld [vmem:[#allocation6 + $0x20] sm:$0xff] }
 0x33a   :  { %447 = vst [vmem:[#allocation9] sm:$0xff] %v446_v30  ;;  %560 = vmatmul.mubr.f32.vlgmr.msra.gmra.mrb[2].mxu1 %v446_v30 }
 0x33b   :  { %3344 = vmatpush1.bf16.msra.mxu1 %v4407_v42  ;;  %811 = vmatprep.mubr.f32.mxu1 %v5164_v41 }
 0x33c   :  { %3346 = vmatprep.subr.bf16.mxu1 %v4412_v53 }
 0x33f   :  { %3348 = vmatpush1.bf16.msra.mxu1 %v4414_v59 }
 0x340   :  { %3350 = vmatprep.subr.bf16.mxu1 %v4418_v2 }
 0x343   :  { %3352 = vmatpush1.bf16.msra.mxu1 %v4420_v7 }
 0x344   :  { %3354 = vmatprep.subr.bf16.mxu1 %v4424_v16 }
 0x347   :  { %3356 = vmatpush1.bf16.msra.mxu1 %v4426_v22 }
 0x348   :  { %3358 = vmatprep.subr.bf16.mxu1 %v4430_v28 }
 0x34b   :  { %3360 = vmatpush1.bf16.msra.mxu1 %v4432_v34 }
 0x34c   :  { %3362 = vmatprep.subr.bf16.mxu1 %v4436_v50 }
 0x34f   :  { %3364 = vmatpush1.bf16.msra.mxu1 %v4438_v63 }
 0x350   :  { %3366 = vmatprep.subr.bf16.mxu1 %v4440_v3 }
 0x353   :  { %3368 = vmatpush1.bf16.msra.mxu1 %v4444_v19 }
 0x354   :  { %3370 = vmatprep.subr.bf16.mxu1 %v4447_v24 }
 0x357   :  { %3372 = vmatpush1.bf16.msra.mxu1 %v4450_v49 }
 0x358   :  { %3406 = vmatprep.subr.bf16.mxu1 %v4326_v52 }
 0x40d   :  { %v561_v31 = vpop.f32.mrb[2].mxu1 }
 0x40e   :  { %v563_v40 = vpop.f32.mrb[3].mxu1  ;;  %v562_v6 = vadd.f32 %v561_v31, %v488_v57 }
 0x40f   :  { %v564_v47 = vadd.f32 %v563_v40, %v492_v0 }
 0x410   :  { %v566_v12 = vadd.f32 %v562_v6, %v449_v11  ;;  %v3152_v6 = vld [vmem:[%s5145_s3 + $0x1] ss:$4 sm:$0x3] }
 0x411   :  { %v567_v54 = vadd.f32 %v564_v47, %v450_v37  ;;  %v1001_v11 = vrot.slane %v3152_v6, %v4375_v56 }
 0x413   :  { %v3146_v60 = vmul.f32 -1.442695, %v567_v54 }
 0x415   :  { %3976 = vpow2.f32 %v3146_v60 }
 0x416   :  { %3978 = vtanh.f32 %v566_v12 }
 0x41f   :  { %v3977_v52 = vpop.eup %3976 }
 0x420   :  { %v572_v4 = vadd.f32 1.0, %v3977_v52  ;;  %v3979_v17 = vpop.eup %3978 }
 0x421   :  { %v575_v25 = vsub.f32 %v3979_v17, %v446_v30 }
 0x422   :  { %3980 = vrcp.f32 %v572_v4 }
 0x42c   :  { %v3981_v49 = vpop.eup %3980 }
 0x42d   :  { %v576_v24 = vmul.f32 %v3981_v49, %v575_v25  ;;  %v997_v25 = vrot.slane %v3152_v6, %v4381_v62  ;;  %v1245_v6 = vld [vmem:[#allocation8 + $0xf0] sm:$0xff] }
 0x42f   :  { %v577_v19 = vadd.f32 %v576_v24, %v446_v30 }
 0x431   :  { %687 = vmatmul.mubr.f32.vlgmr.msra.gmra.mrb[4].mxu0 %v577_v19 }
 0x432   :  { %3376 = vmatpush1.bf16.msra.mxu0 %v4276_v8  ;;  %941 = vmatprep.mubr.f32.mxu0 %v5164_v41  ;;  %v5165_v8 = vld [vmem:[#allocation13_spill] sm:$0xff] }
 0x433   :  { %3378 = vmatprep.subr.bf16.mxu0 %v4278_v9  ;;  %v5166_v9 = vld [vmem:[#allocation14_spill] sm:$0xff] }
 0x436   :  { %3380 = vmatpush1.bf16.msra.mxu0 %v4282_v14  ;;  %v3147_v14 = vld [vmem:[%s5145_s3 + $0x1] ss:$4 sm:$0x3] }
 0x437   :  { %3382 = vmatprep.subr.bf16.mxu0 %v4285_v15  ;;  %v619_v15 = vrot.slane %v3147_v14, %v4375_v56 }
 0x43a   :  { %3384 = vmatpush1.bf16.msra.mxu0 %v4288_v20 }
 0x43b   :  { %3386 = vmatprep.subr.bf16.mxu0 %v4291_v21 }
 0x43e   :  { %3388 = vmatpush1.bf16.msra.mxu0 %v4294_v26 }
 0x43f   :  { %3390 = vmatprep.subr.bf16.mxu0 %v4297_v27 }
 0x442   :  { %3392 = vmatpush1.bf16.msra.mxu0 %v4300_v32  ;;  %v615_v32 = vrot.slane %v3147_v14, %v4381_v62 }
 0x443   :  { %3394 = vmatprep.subr.bf16.mxu0 %v4303_v33 }
 0x446   :  { %3396 = vmatpush1.bf16.msra.mxu0 %v4306_v38 }
 0x447   :  { %3398 = vmatprep.subr.bf16.mxu0 %v4309_v39 }
 0x44a   :  { %3400 = vmatpush1.bf16.msra.mxu0 %v4312_v44 }
 0x44b   :  { %3402 = vmatprep.subr.bf16.mxu0 %v4315_v45 }
 0x44e   :  { %3404 = vmatpush1.bf16.msra.mxu0 %v5165_v8 }
 0x44f   :  { %3438 = vmatprep.subr.bf16.mxu0 %v5166_v9 }
 0x504   :  { %v688_v20 = vpop.f32.mrb[4].mxu0 }
 0x505   :  { %v690_v21 = vpop.f32.mrb[5].mxu0  ;;  %v689_v33 = vadd.f32 %v688_v20, %v615_v32  ;;  %v1216_v32 = vld [vmem:[#allocation8 + $0x8] sm:$0xff] }
 0x506   :  { %v691_v26 = vadd.f32 %v690_v21, %v619_v15 }
 0x508   :  { %v3148_v27 = vmul.f32 -1.442695, %v691_v26 }
 0x50a   :  { %3982 = vpow2.f32 %v3148_v27 }
 0x50b   :  { %3984 = vtanh.f32 %v689_v33  ;;  %v1218_v33 = vld [vmem:[#allocation8 + $0x18] sm:$0xff] }
 0x514   :  { %v3983_v38 = vpop.eup %3982 }
 0x515   :  { %v697_v39 = vadd.f32 1.0, %v3983_v38  ;;  %v3985_v44 = vpop.eup %3984  ;;  %v4580_v38 = vpack.c.bf16 %v1218_v33, %v1216_v32 }
 0x516   :  { %v700_v45 = vsub.f32 %v3985_v44, %v577_v19  ;;  %v1217_v44 = vld [vmem:[#allocation8 + $0x10] sm:$0xff] }
 0x517   :  { %3986 = vrcp.f32 %v697_v39  ;;  %v1215_v39 = vld [vmem:[#allocation8] sm:$0xff] }
 0x521   :  { %v3987_v24 = vpop.eup %3986 }
 0x522   :  { %v701_v49 = vmul.f32 %v3987_v24, %v700_v45  ;;  %v4582_v45 = vpack.c.bf16 %v1217_v44, %v1215_v39  ;;  %v1220_v24 = vld [vmem:[#allocation8 + $0x28] sm:$0xff] }
 0x523   :  { %v1343_v44 = vld [vmem:[#allocation8 + $0x108] sm:$0xff] }
 0x524   :  { %v702_v30 = vadd.f32 %v701_v49, %v577_v19  ;;  %v1222_v49 = vld [vmem:[#allocation8 + $0x38] sm:$0xff] }
 0x526   :  { %812 = vmatmul.mubr.f32.vlgmr.msra.gmra.mrb[4].mxu1 %v702_v30 }
 0x527   :  { %3408 = vmatpush1.bf16.msra.mxu1 %v4328_v55  ;;  %1068 = vmatprep.mubr.f32.mxu1 %v5164_v41  ;;  %v3149_v55 = vld [vmem:[%s5145_s3 + $0x2] ss:$4 sm:$0x3] }
 0x528   :  { %3410 = vmatprep.subr.bf16.mxu1 %v4332_v58  ;;  %v744_v58 = vrot.slane %v3149_v55, %v4375_v56 }
 0x52b   :  { %3412 = vmatpush1.bf16.msra.mxu1 %v4334_v61 }
 0x52c   :  { %3414 = vmatprep.subr.bf16.mxu1 %v4338_v1 }
 0x52f   :  { %3416 = vmatpush1.bf16.msra.mxu1 %v4340_v5 }
 0x530   :  { %3418 = vmatprep.subr.bf16.mxu1 %v4344_v10 }
 0x533   :  { %3420 = vmatpush1.bf16.msra.mxu1 %v4346_v13  ;;  %v740_v13 = vrot.slane %v3149_v55, %v4381_v62  ;;  %v1219_v55 = vld [vmem:[#allocation8 + $0x20] sm:$0xff] }
 0x534   :  { %3422 = vmatprep.subr.bf16.mxu1 %v4350_v18 }
 0x537   :  { %3424 = vmatpush1.bf16.msra.mxu1 %v4352_v23 }
 0x538   :  { %3426 = vmatprep.subr.bf16.mxu1 %v4356_v29 }
 0x53b   :  { %3428 = vmatpush1.bf16.msra.mxu1 %v4358_v35 }
 0x53c   :  { %3430 = vmatprep.subr.bf16.mxu1 %v4360_v36 }
 0x53f   :  { %3432 = vmatpush1.bf16.msra.mxu1 %v4364_v43 }
 0x540   :  { %3434 = vmatprep.subr.bf16.mxu1 %v4367_v46 }
 0x543   :  { %3436 = vmatpush1.bf16.msra.mxu1 %v4370_v51 }
 0x544   :  { %3470 = vmatprep.subr.bf16.mxu1 %v4580_v38 }
 0x5f9   :  { %v813_v61 = vpop.f32.mrb[4].mxu1 }
 0x5fa   :  { %v815_v1 = vpop.f32.mrb[5].mxu1  ;;  %v814_v18 = vadd.f32 %v813_v61, %v740_v13  ;;  %v1223_v13 = vld [vmem:[#allocation8 + $0x40] sm:$0xff] }
 0x5fb   :  { %v816_v5 = vadd.f32 %v815_v1, %v744_v58  ;;  %v1221_v58 = vld [vmem:[#allocation8 + $0x30] sm:$0xff]  ;;  %v1224_v1 = vld [vmem:[#allocation8 + $0x48] sm:$0xff] }
 0x5fc   :  { %v4588_v61 = vpack.c.bf16 %v1221_v58, %v1219_v55  ;;  %v1342_v55 = vld [vmem:[#allocation8 + $0x100] sm:$0xff]  ;;  %v1344_v58 = vld [vmem:[#allocation8 + $0x110] sm:$0xff] }
 0x5fd   :  { %v3150_v10 = vmul.f32 -1.442695, %v816_v5  ;;  %v1226_v5 = vld [vmem:[#allocation8 + $0x58] sm:$0xff] }
 0x5ff   :  { %3988 = vpow2.f32 %v3150_v10  ;;  %v4592_v10 = vpack.c.bf16 %v1226_v5, %v1224_v1  ;;  %v4642_v1 = vpack.c.bf16 %v1344_v58, %v1342_v55  ;;  %v1349_v5 = vld [vmem:[#allocation8 + $0x138] sm:$0xff]  ;;  %v1372_v55 = vld [vmem:[#allocation8 + $0x1f0] sm:$0xff] }
 0x600   :  { %3990 = vtanh.f32 %v814_v18  ;;  %v1225_v18 = vld [vmem:[#allocation8 + $0x50] sm:$0xff] }
 0x609   :  { %v3989_v23 = vpop.eup %3988 }
 0x60a   :  { %v822_v29 = vadd.f32 1.0, %v3989_v23  ;;  %v3991_v35 = vpop.eup %3990  ;;  %v4594_v23 = vpack.c.bf16 %v1225_v18, %v1223_v13  ;;  %v1346_v18 = vld [vmem:[#allocation8 + $0x120] sm:$0xff] }
 0x60b   :  { %v825_v36 = vsub.f32 %v3991_v35, %v702_v30  ;;  %v1230_v35 = vld [vmem:[#allocation8 + $0x78] sm:$0xff] }
 0x60c   :  { %3992 = vrcp.f32 %v822_v29  ;;  %v1228_v29 = vld [vmem:[#allocation8 + $0x68] sm:$0xff] }
 0x616   :  { %v3993_v43 = vpop.eup %3992 }
 0x617   :  { %v826_v46 = vmul.f32 %v3993_v43, %v825_v36  ;;  %v4598_v36 = vpack.c.bf16 %v1230_v35, %v1228_v29  ;;  %v1227_v43 = vld [vmem:[#allocation8 + $0x60] sm:$0xff]  ;;  %v1348_v29 = vld [vmem:[#allocation8 + $0x130] sm:$0xff] }
 0x618   :  { %v4648_v35 = vpack.c.bf16 %v1348_v29, %v1346_v18  ;;  %v1214_v29 = vld [vmem:[#allocation6 + $0x38] sm:$0xff] }
 0x619   :  { %v827_v51 = vadd.f32 %v826_v46, %v702_v30  ;;  %v4586_v30 = vpack.c.bf16 %v1222_v49, %v1220_v24  ;;  %v1229_v46 = vld [vmem:[#allocation8 + $0x70] sm:$0xff]  ;;  %v1345_v24 = vld [vmem:[#allocation8 + $0x118] sm:$0xff] }
 0x61a   :  { %v4640_v49 = vpack.c.bf16 %v1345_v24, %v1343_v44  ;;  %v1370_v24 = vld [vmem:[#allocation8 + $0x1e0] sm:$0xff] }
 0x61b   :  { %829 = vst [vmem:[#allocation9 + $0x8] sm:$0xff] %v827_v51  ;;  %942 = vmatmul.mubr.f32.vlgmr.msra.gmra.mrb[6].mxu0 %v827_v51  ;;  %v4684_v58 = vpack.c.bf16 %v1372_v55, %v1370_v24  ;;  %v1471_v55 = vld [vmem:[#allocation8 + $0x220] sm:$0xff] }
 0x61c   :  { %3440 = vmatpush1.bf16.msra.mxu0 %v4407_v42  ;;  %1193 = vmatprep.mubr.f32.mxu0 %v5164_v41  ;;  %v5167_v42 = vld [vmem:[#allocation15_spill] sm:$0xff] }
 0x61d   :  { %3442 = vmatprep.subr.bf16.mxu0 %v4412_v53  ;;  %v5168_v53 = vld [vmem:[#allocation16_spill] sm:$0xff] }
 0x620   :  { %3444 = vmatpush1.bf16.msra.mxu0 %v4414_v59  ;;  %v5169_v59 = vld [vmem:[#allocation17_spill] sm:$0xff] }
 0x621   :  { %3446 = vmatprep.subr.bf16.mxu0 %v4418_v2  ;;  %v865_v2 = vld [vmem:[%s5145_s3] ss:$4 sm:$0x3] }
 0x624   :  { %3448 = vmatpush1.bf16.msra.mxu0 %v4420_v7  ;;  %v874_v7 = vrot.slane %v865_v2, %v4375_v56 }
 0x625   :  { %3450 = vmatprep.subr.bf16.mxu0 %v4424_v16 }
 0x628   :  { %3452 = vmatpush1.bf16.msra.mxu0 %v4426_v22  ;;  %v832_v22 = vld [vmem:[#allocation6 + $0x28] sm:$0xff] }
 0x629   :  { %3454 = vmatprep.subr.bf16.mxu0 %v4430_v28 }
 0x62c   :  { %3456 = vmatpush1.bf16.msra.mxu0 %v4432_v34 }
 0x62d   :  { %3458 = vmatprep.subr.bf16.mxu0 %v4436_v50 }
 0x630   :  { %3460 = vmatpush1.bf16.msra.mxu0 %v4438_v63  ;;  %v870_v63 = vrot.slane %v865_v2, %v4381_v62  ;;  %v1231_v2 = vld [vmem:[#allocation8 + $0x80] sm:$0xff] }
 0x631   :  { %3462 = vmatprep.subr.bf16.mxu0 %v4440_v3 }
 0x634   :  { %3464 = vmatpush1.bf16.msra.mxu0 %v5167_v42  ;;  %v1232_v42 = vld [vmem:[#allocation8 + $0x88] sm:$0xff] }
 0x635   :  { %3466 = vmatprep.subr.bf16.mxu0 %v5168_v53  ;;  %v1234_v53 = vld [vmem:[#allocation8 + $0x98] sm:$0xff] }
 0x638   :  { %3468 = vmatpush1.bf16.msra.mxu0 %v5169_v59  ;;  %v4604_v59 = vpack.c.bf16 %v1234_v53, %v1232_v42  ;;  %v1350_v53 = vld [vmem:[#allocation8 + $0x140] sm:$0xff] }
 0x639   :  { %3502 = vmatprep.subr.bf16.mxu0 %v4640_v49 }
 0x6ee   :  { %v943_v16 = vpop.f32.mrb[6].mxu0 }
 0x6ef   :  { %v945_v28 = vpop.f32.mrb[7].mxu0  ;;  %v944_v19 = vadd.f32 %v943_v16, %v870_v63  ;;  %v1237_v63 = vld [vmem:[#allocation8 + $0xb0] sm:$0xff] }
 0x6f0   :  { %v946_v34 = vadd.f32 %v945_v28, %v874_v7  ;;  %v1233_v7 = vld [vmem:[#allocation8 + $0x90] sm:$0xff]  ;;  %v1238_v28 = vld [vmem:[#allocation8 + $0xb8] sm:$0xff] }
 0x6f1   :  { %v948_v0 = vadd.f32 %v944_v19, %v831_v48  ;;  %v4606_v16 = vpack.c.bf16 %v1233_v7, %v1231_v2  ;;  %v1242_v19 = vld [vmem:[#allocation8 + $0xd8] sm:$0xff]  ;;  %v1352_v2 = vld [vmem:[#allocation8 + $0x150] sm:$0xff] }
 0x6f2   :  { %v949_v50 = vadd.f32 %v946_v34, %v832_v22  ;;  %v1236_v22 = vld [vmem:[#allocation8 + $0xa8] sm:$0xff]  ;;  %v1235_v34 = vld [vmem:[#allocation8 + $0xa0] sm:$0xff]  ;;  %v4654_v7 = vpack.c.bf16 %v1352_v2, %v1350_v53 }
 0x6f3   :  { %v4612_v48 = vpack.c.bf16 %v1237_v63, %v1235_v34  ;;  %v1354_v63 = vld [vmem:[#allocation8 + $0x160] sm:$0xff] }
 0x6f4   :  { %v3151_v3 = vmul.f32 -1.442695, %v949_v50  ;;  %v4610_v50 = vpack.c.bf16 %v1238_v28, %v1236_v22  ;;  %v1355_v22 = vld [vmem:[#allocation8 + $0x168] sm:$0xff]  ;;  %v1357_v28 = vld [vmem:[#allocation8 + $0x178] sm:$0xff] }
 0x6f5   :  { %v4658_v34 = vpack.c.bf16 %v1357_v28, %v1355_v22 }
 0x6f6   :  { %3994 = vpow2.f32 %v3151_v3  ;;  %v1240_v3 = vld [vmem:[#allocation8 + $0xc8] sm:$0xff] }
 0x6f7   :  { %3996 = vtanh.f32 %v948_v0  ;;  %v4614_v0 = vpack.c.bf16 %v1242_v19, %v1240_v3  ;;  %v1356_v3 = vld [vmem:[#allocation8 + $0x170] sm:$0xff] }
 0x6f8   :  { %v4660_v19 = vpack.c.bf16 %v1356_v3, %v1354_v63  ;;  %v1213_v63 = vld [vmem:[#allocation6 + $0x30] sm:$0xff] }
 0x700   :  { %v3995_v31 = vpop.eup %3994 }
 0x701   :  { %v954_v37 = vadd.f32 1.0, %v3995_v31  ;;  %v3997_v40 = vpop.eup %3996  ;;  %v1239_v31 = vld [vmem:[#allocation8 + $0xc0] sm:$0xff] }
 0x702   :  { %v957_v47 = vsub.f32 %v3997_v40, %v827_v51  ;;  %v1244_v40 = vld [vmem:[#allocation8 + $0xe8] sm:$0xff] }
 0x703   :  { %3998 = vrcp.f32 %v954_v37  ;;  %v1241_v37 = vld [vmem:[#allocation8 + $0xd0] sm:$0xff] }
 0x70d   :  { %v3999_v54 = vpop.eup %3998 }
 0x70e   :  { %v958_v57 = vmul.f32 %v3999_v54, %v957_v47  ;;  %v1246_v47 = vld [vmem:[#allocation8 + $0xf8] sm:$0xff]  ;;  %v4618_v54 = vpack.c.bf16 %v1241_v37, %v1239_v31  ;;  %v1359_v31 = vld [vmem:[#allocation8 + $0x188] sm:$0xff] }
 0x70f   :  { %v1361_v37 = vld [vmem:[#allocation8 + $0x198] sm:$0xff] }
 0x710   :  { %v959_v60 = vadd.f32 %v958_v57, %v827_v51  ;;  %v4600_v51 = vpack.c.bf16 %v1229_v46, %v1227_v43  ;;  %v4621_v57 = vpack.c.bf16 %v1246_v47, %v1244_v40  ;;  %v1351_v43 = vld [vmem:[#allocation8 + $0x148] sm:$0xff]  ;;  %v1353_v46 = vld [vmem:[#allocation8 + $0x158] sm:$0xff]  ;;  %v4664_v40 = vpack.c.bf16 %v1361_v37, %v1359_v31  ;;  %v1358_v47 = vld [vmem:[#allocation8 + $0x180] sm:$0xff] }
 0x711   :  { %v4652_v42 = vpack.c.bf16 %v1353_v46, %v1351_v43 }
 0x712   :  { %1069 = vmatmul.mubr.f32.vlgmr.msra.gmra.mrb[6].mxu1 %v959_v60  ;;  %5170 = vst [vmem:[#allocation13_spill] sm:$0xff] %v4621_v57 }
 0x713   :  { %1323 = vmatprep.mubr.f32.mxu1 %v5164_v41  ;;  %3472 = vmatpush1.bf16.msra.mxu1 %v4582_v45 }
 0x714   :  { %3474 = vmatprep.subr.bf16.mxu1 %v4586_v30 }
 0x717   :  { %3476 = vmatpush1.bf16.msra.mxu1 %v4588_v61 }
 0x718   :  { %3478 = vmatprep.subr.bf16.mxu1 %v4592_v10 }
 0x71b   :  { %3480 = vmatpush1.bf16.msra.mxu1 %v4594_v23 }
 0x71c   :  { %3482 = vmatprep.subr.bf16.mxu1 %v4598_v36 }
 0x71f   :  { %3484 = vmatpush1.bf16.msra.mxu1 %v4600_v51 }
 0x720   :  { %3486 = vmatprep.subr.bf16.mxu1 %v4604_v59 }
 0x723   :  { %3488 = vmatpush1.bf16.msra.mxu1 %v4606_v16 }
 0x724   :  { %3490 = vmatprep.subr.bf16.mxu1 %v4610_v50 }
 0x727   :  { %3492 = vmatpush1.bf16.msra.mxu1 %v4612_v48 }
 0x728   :  { %3494 = vmatprep.subr.bf16.mxu1 %v4614_v0 }
 0x72b   :  { %3496 = vmatpush1.bf16.msra.mxu1 %v4618_v54 }
 0x72c   :  { %3498 = vmatprep.subr.bf16.mxu1 %v4621_v57 }
 0x7e5   :  { %v1070_v12 = vpop.f32.mrb[6].mxu1 }
 0x7e6   :  { %v1072_v52 = vpop.f32.mrb[7].mxu1  ;;  %v1071_v8 = vadd.f32 %v1070_v12, %v997_v25  ;;  %v3154_v12 = vld [vmem:[%s5145_s3 + $0x2] ss:$4 sm:$0x3] }
 0x7e7   :  { %v1073_v4 = vadd.f32 %v1072_v52, %v1001_v11  ;;  %v1126_v52 = vrot.slane %v3154_v12, %v4375_v56 }
 0x7e9   :  { %v3153_v17 = vmul.f32 -1.442695, %v1073_v4 }
 0x7eb   :  { %4000 = vpow2.f32 %v3153_v17 }
 0x7ec   :  { %4002 = vtanh.f32 %v1071_v8 }
 0x7f5   :  { %v4001_v9 = vpop.eup %4000 }
 0x7f6   :  { %v1079_v14 = vadd.f32 1.0, %v4001_v9  ;;  %v4003_v15 = vpop.eup %4002  ;;  %v1122_v9 = vrot.slane %v3154_v12, %v4381_v62  ;;  %v1363_v12 = vld [vmem:[#allocation8 + $0x1a8] sm:$0xff] }
 0x7f7   :  { %v1082_v20 = vsub.f32 %v4003_v15, %v959_v60 }
 0x7f8   :  { %4004 = vrcp.f32 %v1079_v14 }
 0x802   :  { %v4005_v21 = vpop.eup %4004 }
 0x803   :  { %v1083_v26 = vmul.f32 %v4005_v21, %v1082_v20 }
 0x805   :  { %v4576_v27 = vadd.f32 %v1083_v26, %v959_v60  ;;  %v1243_v60 = vld [vmem:[#allocation8 + $0xe0] sm:$0xff] }
 0x806   :  { %v4624_v11 = vpack.c.bf16 %v1245_v6, %v1243_v60  ;;  %v1360_v60 = vld [vmem:[#allocation8 + $0x190] sm:$0xff] }
 0x807   :  { %1194 = vmatmul.mubr.f32.vlgmr.msra.gmra.mrb[8].mxu0 %v4576_v27  ;;  %v4666_v6 = vpack.c.bf16 %v1360_v60, %v1358_v47 }
 0x808   :  { %1450 = vmatprep.mubr.f32.mxu0 %v5164_v41  ;;  %5171 = vst [vmem:[#allocation14_spill] sm:$0xff] %v4624_v11  ;;  %3500 = vmatpush1.bf16.msra.mxu1 %v4624_v11 }
 0x809   :  { %3504 = vmatpush1.bf16.msra.mxu0 %v4642_v1 }
 0x8da   :  { %v1195_v4 = vpop.f32.mrb[8].mxu0 }
 0x8db   :  { %v1197_v17 = vpop.f32.mrb[9].mxu0  ;;  %v1196_v14 = vadd.f32 %v1195_v4, %v1122_v9  ;;  %v1362_v4 = vld [vmem:[#allocation8 + $0x1a0] sm:$0xff]  ;;  %v1369_v9 = vld [vmem:[#allocation8 + $0x1d8] sm:$0xff] }
 0x8dc   :  { %v1198_v25 = vadd.f32 %v1197_v17, %v1126_v52  ;;  %v1365_v52 = vld [vmem:[#allocation8 + $0x1b8] sm:$0xff] }
 0x8dd   :  { %v4670_v17 = vpack.c.bf16 %v1365_v52, %v1363_v12 }
 0x8de   :  { %v3155_v8 = vmul.f32 -1.442695, %v1198_v25  ;;  %v1364_v25 = vld [vmem:[#allocation8 + $0x1b0] sm:$0xff] }
 0x8e0   :  { %4006 = vpow2.f32 %v3155_v8  ;;  %v1367_v8 = vld [vmem:[#allocation8 + $0x1c8] sm:$0xff] }
 0x8e1   :  { %4008 = vtanh.f32 %v1196_v14  ;;  %v4672_v14 = vpack.c.bf16 %v1364_v25, %v1362_v4  ;;  %v1470_v25 = vld [vmem:[#allocation8 + $0x218] sm:$0xff] }
 0x8ea   :  { %v4007_v15 = vpop.eup %4006 }
 0x8eb   :  { %v1204_v20 = vadd.f32 1.0, %v4007_v15  ;;  %v4009_v21 = vpop.eup %4008  ;;  %v4674_v15 = vpack.c.bf16 %v1369_v9, %v1367_v8  ;;  %v1467_v9 = vld [vmem:[#allocation8 + $0x200] sm:$0xff] }
 0x8ec   :  { %v1207_v26 = vsub.f32 %v4009_v21, %v4576_v27  ;;  %v1368_v21 = vld [vmem:[#allocation8 + $0x1d0] sm:$0xff] }
 0x8ed   :  { %4010 = vrcp.f32 %v1204_v20  ;;  %v1366_v20 = vld [vmem:[#allocation8 + $0x1c0] sm:$0xff] }
 0x8f7   :  { %v4011_v32 = vpop.eup %4010 }
 0x8f8   :  { %v1208_v33 = vmul.f32 %v4011_v32, %v1207_v26  ;;  %v1371_v26 = vld [vmem:[#allocation8 + $0x1e8] sm:$0xff]  ;;  %v1373_v32 = vld [vmem:[#allocation8 + $0x1f8] sm:$0xff] }
 0x8f9   :  { %v4681_v44 = vpack.c.bf16 %v1373_v32, %v1371_v26  ;;  %v1472_v26 = vld [vmem:[#allocation8 + $0x228] sm:$0xff]  ;;  %v1474_v32 = vld [vmem:[#allocation8 + $0x238] sm:$0xff] }
 0x8fa   :  { %v4635_v39 = vadd.f32 %v1208_v33, %v4576_v27  ;;  %v1347_v27 = vld [vmem:[#allocation8 + $0x128] sm:$0xff]  ;;  %v4678_v33 = vpack.c.bf16 %v1368_v21, %v1366_v20  ;;  %v1469_v20 = vld [vmem:[#allocation8 + $0x210] sm:$0xff]  ;;  %v4722_v24 = vpack.c.bf16 %v1474_v32, %v1472_v26  ;;  %v1487_v26 = vld [vmem:[#allocation8 + $0x2a0] sm:$0xff] }
 0x8fb   :  { %v4646_v13 = vpack.c.bf16 %v1349_v5, %v1347_v27  ;;  %v1247_v27 = vld [vmem:[%s5145_s3] ss:$4 sm:$0x3]  ;;  %v4717_v21 = vpack.c.bf16 %v1469_v20, %v1467_v9  ;;  %v1488_v9 = vld [vmem:[#allocation8 + $0x2a8] sm:$0xff] }
 0x8fc   :  { %1211 = vst [vmem:[#allocation9 + $0x10] sm:$0xff] %v4635_v39  ;;  %1324 = vmatmul.mubr.f32.vlgmr.msra.gmra.mrb[8].mxu1 %v4635_v39  ;;  %v1256_v5 = vrot.slane %v1247_v27, %v4375_v56  ;;  %v1252_v2 = vrot.slane %v1247_v27, %v4381_v62  ;;  %v1473_v27 = vld [vmem:[#allocation8 + $0x230] sm:$0xff]  ;;  %v1490_v20 = vld [vmem:[#allocation8 + $0x2b8] sm:$0xff] }
 0x8fd   :  { %1575 = vmatprep.mubr.f32.mxu1 %v5164_v41  ;;  %3506 = vmatprep.subr.bf16.mxu0 %v4646_v13  ;;  %v4746_v32 = vpack.c.bf16 %v1490_v20, %v1488_v9  ;;  %v3157_v9 = vld [vmem:[%s5145_s3 + $0x1] ss:$4 sm:$0x3] }
 0x8fe   :  { %3508 = vmatpush1.bf16.msra.mxu0 %v4648_v35  ;;  %v1383_v20 = vrot.slane %v3157_v9, %v4375_v56 }
 0x8ff   :  { %3510 = vmatprep.subr.bf16.mxu0 %v4652_v42 }
 0x902   :  { %3512 = vmatpush1.bf16.msra.mxu0 %v4654_v7 }
 0x903   :  { %3514 = vmatprep.subr.bf16.mxu0 %v4658_v34 }
 0x906   :  { %3516 = vmatpush1.bf16.msra.mxu0 %v4660_v19 }
 0x907   :  { %3518 = vmatprep.subr.bf16.mxu0 %v4664_v40 }
 0x90a   :  { %3520 = vmatpush1.bf16.msra.mxu0 %v4666_v6 }
 0x90b   :  { %3522 = vmatprep.subr.bf16.mxu0 %v4670_v17 }
 0x90e   :  { %3524 = vmatpush1.bf16.msra.mxu0 %v4672_v14 }
 0x90f   :  { %3526 = vmatprep.subr.bf16.mxu0 %v4674_v15 }
 0x912   :  { %3528 = vmatpush1.bf16.msra.mxu0 %v4678_v33 }
 0x913   :  { %3530 = vmatprep.subr.bf16.mxu0 %v4681_v44 }
 0x916   :  { %3532 = vmatpush1.bf16.msra.mxu0 %v4684_v58 }
 0x917   :  { %3566 = vmatprep.subr.bf16.mxu0 %v4580_v38 }
 0x9cf   :  { %v1325_v18 = vpop.f32.mrb[8].mxu1 }
 0x9d0   :  { %v1327_v43 = vpop.f32.mrb[9].mxu1  ;;  %v1326_v28 = vadd.f32 %v1325_v18, %v1252_v2  ;;  %v1476_v18 = vld [vmem:[#allocation8 + $0x248] sm:$0xff] }
 0x9d1   :  { %v1328_v46 = vadd.f32 %v1327_v43, %v1256_v5  ;;  %v4724_v5 = vpack.c.bf16 %v1473_v27, %v1471_v55  ;;  %v1489_v55 = vld [vmem:[#allocation8 + $0x2b0] sm:$0xff]  ;;  %v1492_v27 = vld [vmem:[#allocation8 + $0x2c8] sm:$0xff] }
 0x9d2   :  { %v1330_v3 = vadd.f32 %v1326_v28, %v1213_v63  ;;  %v1482_v28 = vld [vmem:[#allocation8 + $0x278] sm:$0xff] }
 0x9d3   :  { %v1331_v53 = vadd.f32 %v1328_v46, %v1214_v29  ;;  %v1478_v29 = vld [vmem:[#allocation8 + $0x258] sm:$0xff]  ;;  %v1475_v46 = vld [vmem:[#allocation8 + $0x240] sm:$0xff] }
 0x9d4   :  { %v4728_v43 = vpack.c.bf16 %v1478_v29, %v1476_v18  ;;  %v1494_v18 = vld [vmem:[#allocation8 + $0x2d8] sm:$0xff]  ;;  %v4748_v29 = vpack.c.bf16 %v1489_v55, %v1487_v26 }
 0x9d5   :  { %v3156_v22 = vmul.f32 -1.442695, %v1331_v53  ;;  %v1477_v53 = vld [vmem:[#allocation8 + $0x250] sm:$0xff] }
 0x9d6   :  { %v4730_v2 = vpack.c.bf16 %v1477_v53, %v1475_v46  ;;  %v4750_v46 = vpack.c.bf16 %v1494_v18, %v1492_v27  ;;  %v1491_v53 = vld [vmem:[#allocation8 + $0x2c0] sm:$0xff] }
 0x9d7   :  { %4012 = vpow2.f32 %v3156_v22  ;;  %v1480_v22 = vld [vmem:[#allocation8 + $0x268] sm:$0xff] }
 0x9d8   :  { %4014 = vtanh.f32 %v1330_v3  ;;  %v4734_v63 = vpack.c.bf16 %v1482_v28, %v1480_v22  ;;  %v1479_v3 = vld [vmem:[#allocation8 + $0x260] sm:$0xff]  ;;  %v1493_v22 = vld [vmem:[#allocation8 + $0x2d0] sm:$0xff]  ;;  %v1496_v28 = vld [vmem:[#allocation8 + $0x2e8] sm:$0xff] }
 0x9e1   :  { %v4013_v31 = vpop.eup %4012 }
 0x9e2   :  { %v1336_v37 = vadd.f32 1.0, %v4013_v31  ;;  %v4015_v47 = vpop.eup %4014  ;;  %v1481_v31 = vld [vmem:[#allocation8 + $0x270] sm:$0xff] }
 0x9e3   :  { %v1339_v60 = vsub.f32 %v4015_v47, %v4635_v39  ;;  %v1484_v47 = vld [vmem:[#allocation8 + $0x288] sm:$0xff] }
 0x9e4   :  { %4016 = vrcp.f32 %v1336_v37  ;;  %v4736_v37 = vpack.c.bf16 %v1481_v31, %v1479_v3  ;;  %v1498_v3 = vld [vmem:[#allocation8 + $0x2f8] sm:$0xff]  ;;  %v4754_v31 = vpack.c.bf16 %v1493_v22, %v1491_v53  ;;  %v1379_v53 = vrot.slane %v3157_v9, %v4381_v62 }
 0x9ee   :  { %v4017_v12 = vpop.eup %4016 }
 0x9ef   :  { %v1340_v52 = vmul.f32 %v4017_v12, %v1339_v60  ;;  %v1486_v60 = vld [vmem:[#allocation8 + $0x298] sm:$0xff] }
 0x9f0   :  { %v4740_v12 = vpack.c.bf16 %v1486_v60, %v1484_v47  ;;  %v4757_v47 = vpack.c.bf16 %v1498_v3, %v1496_v28  ;;  %v1495_v60 = vld [vmem:[#allocation8 + $0x2e0] sm:$0xff] }
 0x9f1   :  { %v4696_v4 = vadd.f32 %v1340_v52, %v4635_v39  ;;  %v1468_v39 = vld [vmem:[#allocation8 + $0x208] sm:$0xff]  ;;  %v1483_v52 = vld [vmem:[#allocation8 + $0x280] sm:$0xff] }
 0x9f2   :  { %v4715_v8 = vpack.c.bf16 %v1470_v25, %v1468_v39  ;;  %v1485_v39 = vld [vmem:[#allocation8 + $0x290] sm:$0xff]  ;;  %5173 = vst [vmem:[#allocation16_spill] sm:$0xff] %v4757_v47 }
 0x9f3   :  { %1451 = vmatmul.mubr.f32.vlgmr.msra.gmra.mrb[10].mxu0 %v4696_v4  ;;  %v4742_v25 = vpack.c.bf16 %v1485_v39, %v1483_v52  ;;  %v1497_v52 = vld [vmem:[#allocation8 + $0x2f0] sm:$0xff] }
 0x9f4   :  { %3568 = vmatpush1.bf16.msra.mxu0 %v4582_v45  ;;  %1705 = vmatprep.mubr.f32.mxu0 %v5164_v41  ;;  %5172 = vst [vmem:[#allocation15_spill] sm:$0xff] %v4715_v8  ;;  %v4760_v39 = vpack.c.bf16 %v1497_v52, %v1495_v60 }
 0x9f5   :  { %3570 = vmatprep.subr.bf16.mxu0 %v4586_v30  ;;  %3534 = vmatprep.subr.bf16.mxu1 %v4715_v8 }
 0x9f6   :  { %3536 = vmatpush1.bf16.msra.mxu1 %v4717_v21  ;;  %5174 = vst [vmem:[#allocation17_spill] sm:$0xff] %v4760_v39 }
 0x9f7   :  { %3538 = vmatprep.subr.bf16.mxu1 %v4722_v24 }
 0x9f8   :  { %3572 = vmatpush1.bf16.msra.mxu0 %v4588_v61 }
 0x9f9   :  { %3574 = vmatprep.subr.bf16.mxu0 %v4592_v10 }
 0x9fa   :  { %3540 = vmatpush1.bf16.msra.mxu1 %v4724_v5 }
 0x9fb   :  { %3542 = vmatprep.subr.bf16.mxu1 %v4728_v43 }
 0x9fc   :  { %3576 = vmatpush1.bf16.msra.mxu0 %v4594_v23 }
 0x9fd   :  { %3578 = vmatprep.subr.bf16.mxu0 %v4598_v36 }
 0x9fe   :  { %3544 = vmatpush1.bf16.msra.mxu1 %v4730_v2 }
 0x9ff   :  { %3546 = vmatprep.subr.bf16.mxu1 %v4734_v63 }
 0xa00   :  { %3580 = vmatpush1.bf16.msra.mxu0 %v4600_v51 }
 0xa01   :  { %3582 = vmatprep.subr.bf16.mxu0 %v4604_v59 }
 0xa02   :  { %3548 = vmatpush1.bf16.msra.mxu1 %v4736_v37 }
 0xa03   :  { %3550 = vmatprep.subr.bf16.mxu1 %v4740_v12 }
 0xa04   :  { %3584 = vmatpush1.bf16.msra.mxu0 %v4606_v16 }
 0xa05   :  { %3586 = vmatprep.subr.bf16.mxu0 %v4610_v50 }
 0xa06   :  { %3552 = vmatpush1.bf16.msra.mxu1 %v4742_v25 }
 0xa07   :  { %3554 = vmatprep.subr.bf16.mxu1 %v4746_v32 }
 0xa08   :  { %3588 = vmatpush1.bf16.msra.mxu0 %v4612_v48 }
 0xa09   :  { %3590 = vmatprep.subr.bf16.mxu0 %v4614_v0 }
 0xa0a   :  { %3556 = vmatpush1.bf16.msra.mxu1 %v4748_v29 }
 0xa0b   :  { %3558 = vmatprep.subr.bf16.mxu1 %v4750_v46 }
 0xa0c   :  { %3592 = vmatpush1.bf16.msra.mxu0 %v4618_v54 }
 0xa0d   :  { %3594 = vmatprep.subr.bf16.mxu0 %v4621_v57 }
 0xa0e   :  { %3560 = vmatpush1.bf16.msra.mxu1 %v4754_v31 }
 0xa0f   :  { %3562 = vmatprep.subr.bf16.mxu1 %v4757_v47 }
 0xa10   :  { %3596 = vmatpush1.bf16.msra.mxu0 %v4624_v11 }
 0xa11   :  { %3630 = vmatprep.subr.bf16.mxu0 %v4715_v8 }
 0xa12   :  { %3564 = vmatpush1.bf16.msra.mxu1 %v4760_v39 }
 0xa13   :  { %3598 = vmatprep.subr.bf16.mxu1 %v4640_v49 }
 0xac6   :  { %v1452_v26 = vpop.f32.mrb[10].mxu0 }
 0xac7   :  { %v1454_v55 = vpop.f32.mrb[11].mxu0  ;;  %v1453_v22 = vadd.f32 %v1452_v26, %v1379_v53 }
 0xac8   :  { %v1455_v27 = vadd.f32 %v1454_v55, %v1383_v20 }
 0xaca   :  { %v3158_v18 = vmul.f32 -1.442695, %v1455_v27 }
 0xacc   :  { %4018 = vpow2.f32 %v3158_v18 }
 0xacd   :  { %4020 = vtanh.f32 %v1453_v22 }
 0xad6   :  { %v4019_v28 = vpop.eup %4018 }
 0xad7   :  { %v1461_v3 = vadd.f32 1.0, %v4019_v28  ;;  %v4021_v60 = vpop.eup %4020 }
 0xad8   :  { %v1464_v52 = vsub.f32 %v4021_v60, %v4696_v4 }
 0xad9   :  { %4022 = vrcp.f32 %v1461_v3 }
 0xae3   :  { %v4023_v8 = vpop.eup %4022 }
 0xae4   :  { %v1465_v11 = vmul.f32 %v4023_v8, %v1464_v52 }
 0xae6   :  { %v1466_v57 = vadd.f32 %v1465_v11, %v4696_v4  ;;  %v3159_v11 = vld [vmem:[%s5145_s3 + $0x2] ss:$4 sm:$0x3] }
 0xae7   :  { %v1508_v4 = vrot.slane %v3159_v11, %v4375_v56  ;;  %v1504_v55 = vrot.slane %v3159_v11, %v4381_v62 }
 0xae8   :  { %1576 = vmatmul.mubr.f32.vlgmr.msra.gmra.mrb[10].mxu1 %v1466_v57 }
 0xae9   :  { %3600 = vmatpush1.bf16.msra.mxu1 %v4642_v1  ;;  %1832 = vmatprep.mubr.f32.mxu1 %v5164_v41 }
 0xaea   :  { %3602 = vmatprep.subr.bf16.mxu1 %v4646_v13 }
 0xaed   :  { %3604 = vmatpush1.bf16.msra.mxu1 %v4648_v35 }
 0xaee   :  { %3606 = vmatprep.subr.bf16.mxu1 %v4652_v42 }
 0xaf1   :  { %3608 = vmatpush1.bf16.msra.mxu1 %v4654_v7 }
 0xaf2   :  { %3610 = vmatprep.subr.bf16.mxu1 %v4658_v34 }
 0xaf5   :  { %3612 = vmatpush1.bf16.msra.mxu1 %v4660_v19 }
 0xaf6   :  { %3614 = vmatprep.subr.bf16.mxu1 %v4664_v40 }
 0xaf9   :  { %3616 = vmatpush1.bf16.msra.mxu1 %v4666_v6 }
 0xafa   :  { %3618 = vmatprep.subr.bf16.mxu1 %v4670_v17 }
 0xafd   :  { %3620 = vmatpush1.bf16.msra.mxu1 %v4672_v14 }
 0xafe   :  { %3622 = vmatprep.subr.bf16.mxu1 %v4674_v15 }
 0xb01   :  { %3624 = vmatpush1.bf16.msra.mxu1 %v4678_v33 }
 0xb02   :  { %3626 = vmatprep.subr.bf16.mxu1 %v4681_v44 }
 0xb05   :  { %3628 = vmatpush1.bf16.msra.mxu1 %v4684_v58 }
 0xb06   :  { %3662 = vmatprep.subr.bf16.mxu1 %v4580_v38 }
 0xbbb   :  { %v1577_v8 = vpop.f32.mrb[10].mxu1 }
 0xbbc   :  { %v1579_v9 = vpop.f32.mrb[11].mxu1  ;;  %v1578_v27 = vadd.f32 %v1577_v8, %v1504_v55 }
 0xbbd   :  { %v1580_v20 = vadd.f32 %v1579_v9, %v1508_v4  ;;  %v1596_v4 = vld [vmem:[#allocation6 + $0x48] sm:$0xff] }
 0xbbf   :  { %v3160_v26 = vmul.f32 -1.442695, %v1580_v20 }
 0xbc1   :  { %4024 = vpow2.f32 %v3160_v26 }
 0xbc2   :  { %4026 = vtanh.f32 %v1578_v27 }
 0xbcb   :  { %v4025_v18 = vpop.eup %4024 }
 0xbcc   :  { %v1586_v53 = vadd.f32 1.0, %v4025_v18  ;;  %v4027_v22 = vpop.eup %4026  ;;  %v1595_v18 = vld [vmem:[#allocation6 + $0x40] sm:$0xff] }
 0xbcd   :  { %v1589_v38 = vsub.f32 %v4027_v22, %v1466_v57 }
 0xbce   :  { %4028 = vrcp.f32 %v1586_v53 }
 0xbd8   :  { %v4029_v28 = vpop.eup %4028 }
 0xbd9   :  { %v1590_v3 = vmul.f32 %v4029_v28, %v1589_v38 }
 0xbdb   :  { %v1591_v60 = vadd.f32 %v1590_v3, %v1466_v57  ;;  %v1629_v57 = vld [vmem:[%s5145_s3] ss:$4 sm:$0x3] }
 0xbdc   :  { %v1638_v52 = vrot.slane %v1629_v57, %v4375_v56  ;;  %v1634_v26 = vrot.slane %v1629_v57, %v4381_v62 }
 0xbdd   :  { %1593 = vst [vmem:[#allocation9 + $0x18] sm:$0xff] %v1591_v60  ;;  %1706 = vmatmul.mubr.f32.vlgmr.msra.gmra.mrb[12].mxu0 %v1591_v60 }
 0xbde   :  { %3632 = vmatpush1.bf16.msra.mxu0 %v4717_v21  ;;  %1957 = vmatprep.mubr.f32.mxu0 %v5164_v41 }
 0xbdf   :  { %3634 = vmatprep.subr.bf16.mxu0 %v4722_v24 }
 0xbe2   :  { %3636 = vmatpush1.bf16.msra.mxu0 %v4724_v5 }
 0xbe3   :  { %3638 = vmatprep.subr.bf16.mxu0 %v4728_v43 }
 0xbe6   :  { %3640 = vmatpush1.bf16.msra.mxu0 %v4730_v2 }
 0xbe7   :  { %3642 = vmatprep.subr.bf16.mxu0 %v4734_v63 }
 0xbea   :  { %3644 = vmatpush1.bf16.msra.mxu0 %v4736_v37 }
 0xbeb   :  { %3646 = vmatprep.subr.bf16.mxu0 %v4740_v12 }
 0xbee   :  { %3648 = vmatpush1.bf16.msra.mxu0 %v4742_v25 }
 0xbef   :  { %3650 = vmatprep.subr.bf16.mxu0 %v4746_v32 }
 0xbf2   :  { %3652 = vmatpush1.bf16.msra.mxu0 %v4748_v29 }
 0xbf3   :  { %3654 = vmatprep.subr.bf16.mxu0 %v4750_v46 }
 0xbf6   :  { %3656 = vmatpush1.bf16.msra.mxu0 %v4754_v31 }
 0xbf7   :  { %3658 = vmatprep.subr.bf16.mxu0 %v4757_v47 }
 0xbfa   :  { %3660 = vmatpush1.bf16.msra.mxu0 %v4760_v39 }
 0xbfb   :  { %3694 = vmatprep.subr.bf16.mxu0 %v4640_v49 }
 0xcb0   :  { %v1707_v11 = vpop.f32.mrb[12].mxu0 }
 0xcb1   :  { %v1709_v8 = vpop.f32.mrb[13].mxu0  ;;  %v1708_v27 = vadd.f32 %v1707_v11, %v1634_v26 }
 0xcb2   :  { %v1710_v9 = vadd.f32 %v1709_v8, %v1638_v52 }
 0xcb3   :  { %v1712_v53 = vadd.f32 %v1708_v27, %v1595_v18  ;;  %v3167_v18 = vld [vmem:[%s5145_s3 + $0x1] ss:$4 sm:$0x3] }
 0xcb4   :  { %v1713_v20 = vadd.f32 %v1710_v9, %v1596_v4 }
 0xcb6   :  { %v3161_v55 = vmul.f32 -1.442695, %v1713_v20 }
 0xcb8   :  { %4030 = vpow2.f32 %v3161_v55 }
 0xcb9   :  { %4032 = vtanh.f32 %v1712_v53  ;;  %v2147_v53 = vrot.slane %v3167_v18, %v4375_v56 }
 0xcc2   :  { %v4031_v49 = vpop.eup %4030 }
 0xcc3   :  { %v1718_v22 = vadd.f32 1.0, %v4031_v49  ;;  %v4033_v38 = vpop.eup %4032 }
 0xcc4   :  { %v1721_v28 = vsub.f32 %v4033_v38, %v1591_v60 }
 0xcc5   :  { %4034 = vrcp.f32 %v1718_v22 }
 0xccf   :  { %v4035_v3 = vpop.eup %4034 }
 0xcd0   :  { %v1722_v39 = vmul.f32 %v4035_v3, %v1721_v28  ;;  %v2143_v3 = vrot.slane %v3167_v18, %v4381_v62  ;;  %v2391_v18 = vld [vmem:[#allocation8 + $0xf0] sm:$0xff] }
 0xcd2   :  { %v1723_v47 = vadd.f32 %v1722_v39, %v1591_v60 }
 0xcd4   :  { %1833 = vmatmul.mubr.f32.vlgmr.msra.gmra.mrb[12].mxu1 %v1723_v47 }
 0xcd5   :  { %3664 = vmatpush1.bf16.msra.mxu1 %v4582_v45  ;;  %2087 = vmatprep.mubr.f32.mxu1 %v5164_v41  ;;  %v5175_v45 = vld [vmem:[#allocation13_spill] sm:$0xff] }
 0xcd6   :  { %3666 = vmatprep.subr.bf16.mxu1 %v4586_v30  ;;  %v5176_v30 = vld [vmem:[#allocation14_spill] sm:$0xff] }
 0xcd9   :  { %3668 = vmatpush1.bf16.msra.mxu1 %v4588_v61  ;;  %v5177_v61 = vld [vmem:[#allocation15_spill] sm:$0xff] }
 0xcda   :  { %3670 = vmatprep.subr.bf16.mxu1 %v4592_v10  ;;  %v3162_v10 = vld [vmem:[%s5145_s3 + $0x1] ss:$4 sm:$0x3] }
 0xcdd   :  { %3672 = vmatpush1.bf16.msra.mxu1 %v4594_v23  ;;  %v1765_v23 = vrot.slane %v3162_v10, %v4375_v56 }
 0xcde   :  { %3674 = vmatprep.subr.bf16.mxu1 %v4598_v36 }
 0xce1   :  { %3676 = vmatpush1.bf16.msra.mxu1 %v4600_v51 }
 0xce2   :  { %3678 = vmatprep.subr.bf16.mxu1 %v4604_v59 }
 0xce5   :  { %3680 = vmatpush1.bf16.msra.mxu1 %v4606_v16 }
 0xce6   :  { %3682 = vmatprep.subr.bf16.mxu1 %v4610_v50  ;;  %v1761_v50 = vrot.slane %v3162_v10, %v4381_v62 }
 0xce9   :  { %3684 = vmatpush1.bf16.msra.mxu1 %v4612_v48 }
 0xcea   :  { %3686 = vmatprep.subr.bf16.mxu1 %v4614_v0 }
 0xced   :  { %3688 = vmatpush1.bf16.msra.mxu1 %v4618_v54 }
 0xcee   :  { %3690 = vmatprep.subr.bf16.mxu1 %v5175_v45 }
 0xcf1   :  { %3692 = vmatpush1.bf16.msra.mxu1 %v5176_v30 }
 0xcf2   :  { %3726 = vmatprep.subr.bf16.mxu1 %v5177_v61 }
 0xda7   :  { %v1834_v36 = vpop.f32.mrb[12].mxu1 }
 0xda8   :  { %v1836_v51 = vpop.f32.mrb[13].mxu1  ;;  %v1835_v48 = vadd.f32 %v1834_v36, %v1761_v50  ;;  %v2364_v50 = vld [vmem:[#allocation8 + $0x18] sm:$0xff] }
 0xda9   :  { %v1837_v59 = vadd.f32 %v1836_v51, %v1765_v23 }
 0xdab   :  { %v3163_v16 = vmul.f32 -1.442695, %v1837_v59 }
 0xdad   :  { %4036 = vpow2.f32 %v3163_v16  ;;  %v2362_v16 = vld [vmem:[#allocation8 + $0x8] sm:$0xff] }
 0xdae   :  { %4038 = vtanh.f32 %v1835_v48  ;;  %v4890_v48 = vpack.c.bf16 %v2364_v50, %v2362_v16 }
 0xdb7   :  { %v4037_v0 = vpop.eup %4036 }
 0xdb8   :  { %v1843_v54 = vadd.f32 1.0, %v4037_v0  ;;  %v4039_v39 = vpop.eup %4038  ;;  %v2361_v0 = vld [vmem:[#allocation8] sm:$0xff] }
 0xdb9   :  { %v1846_v60 = vsub.f32 %v4039_v39, %v1723_v47 }
 0xdba   :  { %4040 = vrcp.f32 %v1843_v54  ;;  %v2363_v54 = vld [vmem:[#allocation8 + $0x10] sm:$0xff] }
 0xdbb   :  { %v4892_v39 = vpack.c.bf16 %v2363_v54, %v2361_v0  ;;  %v2489_v54 = vld [vmem:[#allocation8 + $0x108] sm:$0xff] }
 0xdc4   :  { %v4041_v57 = vpop.eup %4040 }
 0xdc5   :  { %v1847_v52 = vmul.f32 %v4041_v57, %v1846_v60  ;;  %v2366_v60 = vld [vmem:[#allocation8 + $0x28] sm:$0xff]  ;;  %v2368_v57 = vld [vmem:[#allocation8 + $0x38] sm:$0xff] }
 0xdc7   :  { %v1848_v11 = vadd.f32 %v1847_v52, %v1723_v47  ;;  %v4896_v52 = vpack.c.bf16 %v2368_v57, %v2366_v60  ;;  %v2491_v60 = vld [vmem:[#allocation8 + $0x118] sm:$0xff] }
 0xdc8   :  { %v4950_v57 = vpack.c.bf16 %v2491_v60, %v2489_v54  ;;  %v2516_v60 = vld [vmem:[#allocation8 + $0x1e0] sm:$0xff] }
 0xdc9   :  { %1958 = vmatmul.mubr.f32.vlgmr.msra.gmra.mrb[14].mxu0 %v1848_v11 }
 0xdca   :  { %3696 = vmatpush1.bf16.msra.mxu0 %v4642_v1  ;;  %2214 = vmatprep.mubr.f32.mxu0 %v5164_v41  ;;  %v3164_v1 = vld [vmem:[%s5145_s3 + $0x2] ss:$4 sm:$0x3] }
 0xdcb   :  { %3698 = vmatprep.subr.bf16.mxu0 %v4646_v13  ;;  %v1890_v13 = vrot.slane %v3164_v1, %v4375_v56 }
 0xdce   :  { %3700 = vmatpush1.bf16.msra.mxu0 %v4648_v35 }
 0xdcf   :  { %3702 = vmatprep.subr.bf16.mxu0 %v4652_v42 }
 0xdd2   :  { %3704 = vmatpush1.bf16.msra.mxu0 %v4654_v7 }
 0xdd3   :  { %3706 = vmatprep.subr.bf16.mxu0 %v4658_v34 }
 0xdd6   :  { %3708 = vmatpush1.bf16.msra.mxu0 %v4660_v19  ;;  %v1886_v19 = vrot.slane %v3164_v1, %v4381_v62  ;;  %v2367_v1 = vld [vmem:[#allocation8 + $0x30] sm:$0xff] }
 0xdd7   :  { %3710 = vmatprep.subr.bf16.mxu0 %v4664_v40 }
 0xdda   :  { %3712 = vmatpush1.bf16.msra.mxu0 %v4666_v6 }
 0xddb   :  { %3714 = vmatprep.subr.bf16.mxu0 %v4670_v17 }
 0xdde   :  { %3716 = vmatpush1.bf16.msra.mxu0 %v4672_v14 }
 0xddf   :  { %3718 = vmatprep.subr.bf16.mxu0 %v4674_v15 }
 0xde2   :  { %3720 = vmatpush1.bf16.msra.mxu0 %v4678_v33 }
 0xde3   :  { %3722 = vmatprep.subr.bf16.mxu0 %v4681_v44 }
 0xde6   :  { %3724 = vmatpush1.bf16.msra.mxu0 %v4684_v58 }
 0xde7   :  { %3758 = vmatprep.subr.bf16.mxu0 %v4890_v48 }
 0xe9c   :  { %v1959_v35 = vpop.f32.mrb[14].mxu0 }
 0xe9d   :  { %v1961_v42 = vpop.f32.mrb[15].mxu0  ;;  %v1960_v40 = vadd.f32 %v1959_v35, %v1886_v19  ;;  %v2370_v35 = vld [vmem:[#allocation8 + $0x48] sm:$0xff]  ;;  %v2371_v19 = vld [vmem:[#allocation8 + $0x50] sm:$0xff] }
 0xe9e   :  { %v1962_v7 = vadd.f32 %v1961_v42, %v1890_v13  ;;  %v2372_v42 = vld [vmem:[#allocation8 + $0x58] sm:$0xff] }
 0xea0   :  { %v3165_v34 = vmul.f32 -1.442695, %v1962_v7  ;;  %v4902_v7 = vpack.c.bf16 %v2372_v42, %v2370_v35  ;;  %v2495_v42 = vld [vmem:[#allocation8 + $0x138] sm:$0xff] }
 0xea2   :  { %4042 = vpow2.f32 %v3165_v34  ;;  %v2369_v34 = vld [vmem:[#allocation8 + $0x40] sm:$0xff] }
 0xea3   :  { %4044 = vtanh.f32 %v1960_v40  ;;  %v4904_v40 = vpack.c.bf16 %v2371_v19, %v2369_v34  ;;  %v2492_v19 = vld [vmem:[#allocation8 + $0x120] sm:$0xff] }
 0xeac   :  { %v4043_v6 = vpop.eup %4042 }
 0xead   :  { %v1968_v17 = vadd.f32 1.0, %v4043_v6  ;;  %v4045_v14 = vpop.eup %4044  ;;  %v2374_v6 = vld [vmem:[#allocation8 + $0x68] sm:$0xff] }
 0xeae   :  { %v1971_v15 = vsub.f32 %v4045_v14, %v1848_v11 }
 0xeaf   :  { %4046 = vrcp.f32 %v1968_v17  ;;  %v2376_v17 = vld [vmem:[#allocation8 + $0x78] sm:$0xff] }
 0xeb0   :  { %v4908_v14 = vpack.c.bf16 %v2376_v17, %v2374_v6  ;;  %v2494_v6 = vld [vmem:[#allocation8 + $0x130] sm:$0xff] }
 0xeb1   :  { %v4958_v17 = vpack.c.bf16 %v2494_v6, %v2492_v19  ;;  %v2360_v6 = vld [vmem:[#allocation6 + $0x68] sm:$0xff] }
 0xeb9   :  { %v4047_v33 = vpop.eup %4046 }
 0xeba   :  { %v1972_v44 = vmul.f32 %v4047_v33, %v1971_v15  ;;  %v2373_v15 = vld [vmem:[#allocation8 + $0x60] sm:$0xff]  ;;  %v2375_v33 = vld [vmem:[#allocation8 + $0x70] sm:$0xff] }
 0xebc   :  { %v1973_v58 = vadd.f32 %v1972_v44, %v1848_v11  ;;  %v2365_v11 = vld [vmem:[#allocation8 + $0x20] sm:$0xff]  ;;  %v4910_v44 = vpack.c.bf16 %v2375_v33, %v2373_v15  ;;  %v2497_v15 = vld [vmem:[#allocation8 + $0x148] sm:$0xff]  ;;  %v2499_v33 = vld [vmem:[#allocation8 + $0x158] sm:$0xff] }
 0xebd   :  { %v4898_v13 = vpack.c.bf16 %v2367_v1, %v2365_v11  ;;  %v2488_v11 = vld [vmem:[#allocation8 + $0x100] sm:$0xff]  ;;  %v2490_v1 = vld [vmem:[#allocation8 + $0x110] sm:$0xff] }
 0xebe   :  { %1975 = vst [vmem:[#allocation9 + $0x20] sm:$0xff] %v1973_v58  ;;  %2088 = vmatmul.mubr.f32.vlgmr.msra.gmra.mrb[14].mxu1 %v1973_v58  ;;  %v4952_v35 = vpack.c.bf16 %v2490_v1, %v2488_v11  ;;  %v2518_v11 = vld [vmem:[#allocation8 + $0x1f0] sm:$0xff] }
 0xebf   :  { %3728 = vmatpush1.bf16.msra.mxu1 %v4717_v21  ;;  %2339 = vmatprep.mubr.f32.mxu1 %v5164_v41  ;;  %v5178_v21 = vld [vmem:[#allocation16_spill] sm:$0xff]  ;;  %v4994_v1 = vpack.c.bf16 %v2518_v11, %v2516_v60  ;;  %v2630_v60 = vld [vmem:[#allocation8 + $0x288] sm:$0xff] }
 0xec0   :  { %3730 = vmatprep.subr.bf16.mxu1 %v4722_v24  ;;  %v5179_v24 = vld [vmem:[#allocation17_spill] sm:$0xff]  ;;  %v2632_v11 = vld [vmem:[#allocation8 + $0x298] sm:$0xff] }
 0xec3   :  { %3732 = vmatpush1.bf16.msra.mxu1 %v4724_v5  ;;  %v2011_v5 = vld [vmem:[%s5145_s3] ss:$4 sm:$0x3] }
 0xec4   :  { %3734 = vmatprep.subr.bf16.mxu1 %v4728_v43  ;;  %v2020_v43 = vrot.slane %v2011_v5, %v4375_v56 }
 0xec7   :  { %3736 = vmatpush1.bf16.msra.mxu1 %v4730_v2 }
 0xec8   :  { %3738 = vmatprep.subr.bf16.mxu1 %v4734_v63  ;;  %v1978_v63 = vld [vmem:[#allocation6 + $0x58] sm:$0xff] }
 0xecb   :  { %3740 = vmatpush1.bf16.msra.mxu1 %v4736_v37 }
 0xecc   :  { %3742 = vmatprep.subr.bf16.mxu1 %v4740_v12 }
 0xecf   :  { %3744 = vmatpush1.bf16.msra.mxu1 %v4742_v25 }
 0xed0   :  { %3746 = vmatprep.subr.bf16.mxu1 %v4746_v32  ;;  %v2016_v32 = vrot.slane %v2011_v5, %v4381_v62  ;;  %v2377_v5 = vld [vmem:[#allocation8 + $0x80] sm:$0xff] }
 0xed3   :  { %3748 = vmatpush1.bf16.msra.mxu1 %v4748_v29 }
 0xed4   :  { %3750 = vmatprep.subr.bf16.mxu1 %v4750_v46 }
 0xed7   :  { %3752 = vmatpush1.bf16.msra.mxu1 %v4754_v31  ;;  %v1977_v31 = vld [vmem:[#allocation6 + $0x50] sm:$0xff] }
 0xed8   :  { %3754 = vmatprep.subr.bf16.mxu1 %v5178_v21  ;;  %v2380_v21 = vld [vmem:[#allocation8 + $0x98] sm:$0xff] }
 0xedb   :  { %3756 = vmatpush1.bf16.msra.mxu1 %v5179_v24 }
 0xedc   :  { %3790 = vmatprep.subr.bf16.mxu1 %v4950_v57 }
 0xf91   :  { %v2089_v2 = vpop.f32.mrb[14].mxu1 }
 0xf92   :  { %v2091_v37 = vpop.f32.mrb[15].mxu1  ;;  %v2090_v46 = vadd.f32 %v2089_v2, %v2016_v32  ;;  %v2383_v32 = vld [vmem:[#allocation8 + $0xb0] sm:$0xff] }
 0xf93   :  { %v2092_v12 = vadd.f32 %v2091_v37, %v2020_v43  ;;  %v2379_v43 = vld [vmem:[#allocation8 + $0x90] sm:$0xff]  ;;  %v2384_v37 = vld [vmem:[#allocation8 + $0xb8] sm:$0xff] }
 0xf94   :  { %v2094_v47 = vadd.f32 %v2090_v46, %v1977_v31  ;;  %v4916_v2 = vpack.c.bf16 %v2379_v43, %v2377_v5  ;;  %v2388_v46 = vld [vmem:[#allocation8 + $0xd8] sm:$0xff]  ;;  %v2498_v5 = vld [vmem:[#allocation8 + $0x150] sm:$0xff] }
 0xf95   :  { %v2095_v25 = vadd.f32 %v2092_v12, %v1978_v63  ;;  %v2382_v63 = vld [vmem:[#allocation8 + $0xa8] sm:$0xff]  ;;  %v2381_v12 = vld [vmem:[#allocation8 + $0xa0] sm:$0xff] }
 0xf96   :  { %v4922_v31 = vpack.c.bf16 %v2383_v32, %v2381_v12  ;;  %v2500_v32 = vld [vmem:[#allocation8 + $0x160] sm:$0xff] }
 0xf97   :  { %v3166_v29 = vmul.f32 -1.442695, %v2095_v25  ;;  %v4920_v25 = vpack.c.bf16 %v2384_v37, %v2382_v63  ;;  %v2501_v63 = vld [vmem:[#allocation8 + $0x168] sm:$0xff]  ;;  %v2503_v37 = vld [vmem:[#allocation8 + $0x178] sm:$0xff] }
 0xf98   :  { %v4968_v12 = vpack.c.bf16 %v2503_v37, %v2501_v63 }
 0xf99   :  { %4048 = vpow2.f32 %v3166_v29  ;;  %v2386_v29 = vld [vmem:[#allocation8 + $0xc8] sm:$0xff] }
 0xf9a   :  { %4050 = vtanh.f32 %v2094_v47  ;;  %v4924_v47 = vpack.c.bf16 %v2388_v46, %v2386_v29  ;;  %v2502_v29 = vld [vmem:[#allocation8 + $0x170] sm:$0xff] }
 0xf9b   :  { %v4970_v46 = vpack.c.bf16 %v2502_v29, %v2500_v32  ;;  %v2359_v32 = vld [vmem:[#allocation6 + $0x60] sm:$0xff] }
 0xfa3   :  { %v4049_v4 = vpop.eup %4048 }
 0xfa4   :  { %v2100_v8 = vadd.f32 1.0, %v4049_v4  ;;  %v4051_v9 = vpop.eup %4050  ;;  %v2385_v4 = vld [vmem:[#allocation8 + $0xc0] sm:$0xff] }
 0xfa5   :  { %v2103_v20 = vsub.f32 %v4051_v9, %v1973_v58  ;;  %v2390_v9 = vld [vmem:[#allocation8 + $0xe8] sm:$0xff] }
 0xfa6   :  { %4052 = vrcp.f32 %v2100_v8  ;;  %v2387_v8 = vld [vmem:[#allocation8 + $0xd0] sm:$0xff] }
 0xfb0   :  { %v4053_v26 = vpop.eup %4052 }
 0xfb1   :  { %v2104_v55 = vmul.f32 %v4053_v26, %v2103_v20  ;;  %v2392_v20 = vld [vmem:[#allocation8 + $0xf8] sm:$0xff]  ;;  %v4928_v26 = vpack.c.bf16 %v2387_v8, %v2385_v4  ;;  %v2505_v4 = vld [vmem:[#allocation8 + $0x188] sm:$0xff] }
 0xfb2   :  { %v2507_v8 = vld [vmem:[#allocation8 + $0x198] sm:$0xff] }
 0xfb3   :  { %v2105_v27 = vadd.f32 %v2104_v55, %v1973_v58  ;;  %v2378_v58 = vld [vmem:[#allocation8 + $0x88] sm:$0xff]  ;;  %v4931_v55 = vpack.c.bf16 %v2392_v20, %v2390_v9  ;;  %v4974_v9 = vpack.c.bf16 %v2507_v8, %v2505_v4  ;;  %v2504_v20 = vld [vmem:[#allocation8 + $0x180] sm:$0xff] }
 0xfb4   :  { %v4914_v24 = vpack.c.bf16 %v2380_v21, %v2378_v58  ;;  %v4962_v58 = vpack.c.bf16 %v2499_v33, %v2497_v15  ;;  %v2496_v21 = vld [vmem:[#allocation8 + $0x140] sm:$0xff] }
 0xfb5   :  { %2215 = vmatmul.mubr.f32.vlgmr.msra.gmra.mrb[16].mxu0 %v2105_v27  ;;  %v4964_v43 = vpack.c.bf16 %v2498_v5, %v2496_v21 }
 0xfb6   :  { %2469 = vmatprep.mubr.f32.mxu0 %v5164_v41  ;;  %3760 = vmatpush1.bf16.msra.mxu0 %v4892_v39 }
 0xfb7   :  { %3762 = vmatprep.subr.bf16.mxu0 %v4896_v52 }
 0xfba   :  { %3764 = vmatpush1.bf16.msra.mxu0 %v4898_v13 }
 0xfbb   :  { %3766 = vmatprep.subr.bf16.mxu0 %v4902_v7 }
 0xfbe   :  { %3768 = vmatpush1.bf16.msra.mxu0 %v4904_v40 }
 0xfbf   :  { %3770 = vmatprep.subr.bf16.mxu0 %v4908_v14 }
 0xfc2   :  { %3772 = vmatpush1.bf16.msra.mxu0 %v4910_v44 }
 0xfc3   :  { %3774 = vmatprep.subr.bf16.mxu0 %v4914_v24 }
 0xfc6   :  { %3776 = vmatpush1.bf16.msra.mxu0 %v4916_v2 }
 0xfc7   :  { %3778 = vmatprep.subr.bf16.mxu0 %v4920_v25 }
 0xfca   :  { %3780 = vmatpush1.bf16.msra.mxu0 %v4922_v31 }
 0xfcb   :  { %3782 = vmatprep.subr.bf16.mxu0 %v4924_v47 }
 0xfce   :  { %3784 = vmatpush1.bf16.msra.mxu0 %v4928_v26 }
 0xfcf   :  { %3786 = vmatprep.subr.bf16.mxu0 %v4931_v55 }
0x1088   :  { %v2216_v49 = vpop.f32.mrb[16].mxu0 }
0x1089   :  { %v2218_v22 = vpop.f32.mrb[17].mxu0  ;;  %v2217_v45 = vadd.f32 %v2216_v49, %v2143_v3  ;;  %v3169_v49 = vld [vmem:[%s5145_s3 + $0x2] ss:$4 sm:$0x3] }
0x108a   :  { %v2219_v38 = vadd.f32 %v2218_v22, %v2147_v53  ;;  %v2272_v22 = vrot.slane %v3169_v49, %v4375_v56 }
0x108c   :  { %v3168_v28 = vmul.f32 -1.442695, %v2219_v38 }
0x108e   :  { %4054 = vpow2.f32 %v3168_v28 }
0x108f   :  { %4056 = vtanh.f32 %v2217_v45 }
0x1098   :  { %v4055_v30 = vpop.eup %4054 }
0x1099   :  { %v2225_v61 = vadd.f32 1.0, %v4055_v30  ;;  %v4057_v10 = vpop.eup %4056  ;;  %v2268_v30 = vrot.slane %v3169_v49, %v4381_v62  ;;  %v2509_v49 = vld [vmem:[#allocation8 + $0x1a8] sm:$0xff] }
0x109a   :  { %v2228_v23 = vsub.f32 %v4057_v10, %v2105_v27 }
0x109b   :  { %4058 = vrcp.f32 %v2225_v61 }
0x10a5   :  { %v4059_v36 = vpop.eup %4058 }
0x10a6   :  { %v2229_v51 = vmul.f32 %v4059_v36, %v2228_v23 }
0x10a8   :  { %v4886_v59 = vadd.f32 %v2229_v51, %v2105_v27  ;;  %v2389_v27 = vld [vmem:[#allocation8 + $0xe0] sm:$0xff] }
0x10a9   :  { %v4934_v53 = vpack.c.bf16 %v2391_v18, %v2389_v27  ;;  %v2506_v27 = vld [vmem:[#allocation8 + $0x190] sm:$0xff] }
0x10aa   :  { %2340 = vmatmul.mubr.f32.vlgmr.msra.gmra.mrb[16].mxu1 %v4886_v59  ;;  %v4976_v18 = vpack.c.bf16 %v2506_v27, %v2504_v20 }
0x10ab   :  { %2596 = vmatprep.mubr.f32.mxu1 %v5164_v41  ;;  %3788 = vmatpush1.bf16.msra.mxu0 %v4934_v53 }
0x10ac   :  { %3792 = vmatpush1.bf16.msra.mxu1 %v4952_v35 }
0x117d   :  { %v2341_v38 = vpop.f32.mrb[16].mxu1 }
0x117e   :  { %v2343_v28 = vpop.f32.mrb[17].mxu1  ;;  %v2342_v61 = vadd.f32 %v2341_v38, %v2268_v30  ;;  %v2508_v38 = vld [vmem:[#allocation8 + $0x1a0] sm:$0xff]  ;;  %v2515_v30 = vld [vmem:[#allocation8 + $0x1d8] sm:$0xff] }
0x117f   :  { %v2344_v3 = vadd.f32 %v2343_v28, %v2272_v22  ;;  %v2511_v22 = vld [vmem:[#allocation8 + $0x1b8] sm:$0xff] }
0x1180   :  { %v4980_v28 = vpack.c.bf16 %v2511_v22, %v2509_v49 }
0x1181   :  { %v3170_v45 = vmul.f32 -1.442695, %v2344_v3  ;;  %v2510_v3 = vld [vmem:[#allocation8 + $0x1b0] sm:$0xff] }
0x1183   :  { %4060 = vpow2.f32 %v3170_v45  ;;  %v2513_v45 = vld [vmem:[#allocation8 + $0x1c8] sm:$0xff] }
0x1184   :  { %4062 = vtanh.f32 %v2342_v61  ;;  %v4982_v61 = vpack.c.bf16 %v2510_v3, %v2508_v38  ;;  %v2623_v38 = vld [vmem:[#allocation8 + $0x250] sm:$0xff] }
0x118d   :  { %v4061_v10 = vpop.eup %4060 }
0x118e   :  { %v2350_v23 = vadd.f32 1.0, %v4061_v10  ;;  %v4063_v36 = vpop.eup %4062  ;;  %v4984_v10 = vpack.c.bf16 %v2515_v30, %v2513_v45  ;;  %v2626_v45 = vld [vmem:[#allocation8 + $0x268] sm:$0xff]  ;;  %v2628_v30 = vld [vmem:[#allocation8 + $0x278] sm:$0xff] }
0x118f   :  { %v2353_v51 = vsub.f32 %v4063_v36, %v4886_v59  ;;  %v2514_v36 = vld [vmem:[#allocation8 + $0x1d0] sm:$0xff] }
0x1190   :  { %4064 = vrcp.f32 %v2350_v23  ;;  %v2512_v23 = vld [vmem:[#allocation8 + $0x1c0] sm:$0xff] }
0x119a   :  { %v4065_v16 = vpop.eup %4064 }
0x119b   :  { %v2354_v50 = vmul.f32 %v4065_v16, %v2353_v51  ;;  %v2517_v51 = vld [vmem:[#allocation8 + $0x1e8] sm:$0xff]  ;;  %v2519_v16 = vld [vmem:[#allocation8 + $0x1f8] sm:$0xff] }
0x119c   :  { %v4991_v54 = vpack.c.bf16 %v2519_v16, %v2517_v51  ;;  %v2627_v51 = vld [vmem:[#allocation8 + $0x270] sm:$0xff] }
0x119d   :  { %v4945_v0 = vadd.f32 %v2354_v50, %v4886_v59  ;;  %v2493_v59 = vld [vmem:[#allocation8 + $0x128] sm:$0xff]  ;;  %v4988_v50 = vpack.c.bf16 %v2514_v36, %v2512_v23  ;;  %v5040_v23 = vpack.c.bf16 %v2628_v30, %v2626_v45  ;;  %v2625_v36 = vld [vmem:[#allocation8 + $0x260] sm:$0xff] }
0x119e   :  { %v4956_v34 = vpack.c.bf16 %v2495_v42, %v2493_v59  ;;  %v2393_v59 = vld [vmem:[%s5145_s3] ss:$4 sm:$0x3]  ;;  %v5042_v16 = vpack.c.bf16 %v2627_v51, %v2625_v36 }
0x119f   :  { %2357 = vst [vmem:[#allocation9 + $0x28] sm:$0xff] %v4945_v0  ;;  %2470 = vmatmul.mubr.f32.vlgmr.msra.gmra.mrb[18].mxu0 %v4945_v0  ;;  %v2402_v42 = vrot.slane %v2393_v59, %v4375_v56  ;;  %v2398_v5 = vrot.slane %v2393_v59, %v4381_v62  ;;  %v5046_v59 = vpack.c.bf16 %v2632_v11, %v2630_v60 }
0x11a0   :  { %2721 = vmatprep.mubr.f32.mxu0 %v5164_v41  ;;  %3794 = vmatprep.subr.bf16.mxu1 %v4956_v34 }
0x11a1   :  { %3796 = vmatpush1.bf16.msra.mxu1 %v4958_v17 }
0x11a2   :  { %3798 = vmatprep.subr.bf16.mxu1 %v4962_v58 }
0x11a5   :  { %3800 = vmatpush1.bf16.msra.mxu1 %v4964_v43 }
0x11a6   :  { %3802 = vmatprep.subr.bf16.mxu1 %v4968_v12 }
0x11a9   :  { %3804 = vmatpush1.bf16.msra.mxu1 %v4970_v46 }
0x11aa   :  { %3806 = vmatprep.subr.bf16.mxu1 %v4974_v9 }
0x11ad   :  { %3808 = vmatpush1.bf16.msra.mxu1 %v4976_v18 }
0x11ae   :  { %3810 = vmatprep.subr.bf16.mxu1 %v4980_v28 }
0x11b1   :  { %3812 = vmatpush1.bf16.msra.mxu1 %v4982_v61 }
0x11b2   :  { %3814 = vmatprep.subr.bf16.mxu1 %v4984_v10 }
0x11b5   :  { %3816 = vmatpush1.bf16.msra.mxu1 %v4988_v50 }
0x11b6   :  { %3818 = vmatprep.subr.bf16.mxu1 %v4991_v54 }
0x11b9   :  { %3820 = vmatpush1.bf16.msra.mxu1 %v4994_v1 }
0x11ba   :  { %3854 = vmatprep.subr.bf16.mxu1 %v4890_v48 }
0x1272   :  { %v2471_v19 = vpop.f32.mrb[18].mxu0 }
0x1273   :  { %v2473_v15 = vpop.f32.mrb[19].mxu0  ;;  %v2472_v37 = vadd.f32 %v2471_v19, %v2398_v5  ;;  %v2631_v19 = vld [vmem:[#allocation8 + $0x290] sm:$0xff] }
0x1274   :  { %v2474_v33 = vadd.f32 %v2473_v15, %v2402_v42  ;;  %v2629_v42 = vld [vmem:[#allocation8 + $0x280] sm:$0xff]  ;;  %v2634_v15 = vld [vmem:[#allocation8 + $0x2a8] sm:$0xff] }
0x1275   :  { %v2476_v29 = vadd.f32 %v2472_v37, %v2359_v32  ;;  %v2638_v37 = vld [vmem:[#allocation8 + $0x2c8] sm:$0xff]  ;;  %v2640_v32 = vld [vmem:[#allocation8 + $0x2d8] sm:$0xff] }
0x1276   :  { %v2477_v21 = vadd.f32 %v2474_v33, %v2360_v6  ;;  %v5048_v6 = vpack.c.bf16 %v2631_v19, %v2629_v42  ;;  %v2636_v33 = vld [vmem:[#allocation8 + $0x2b8] sm:$0xff] }
0x1277   :  { %v5052_v5 = vpack.c.bf16 %v2636_v33, %v2634_v15 }
0x1278   :  { %v3171_v63 = vmul.f32 -1.442695, %v2477_v21  ;;  %v2633_v21 = vld [vmem:[#allocation8 + $0x2a0] sm:$0xff] }
0x127a   :  { %4066 = vpow2.f32 %v3171_v63  ;;  %v2635_v63 = vld [vmem:[#allocation8 + $0x2b0] sm:$0xff] }
0x127b   :  { %4068 = vtanh.f32 %v2476_v29  ;;  %v5054_v29 = vpack.c.bf16 %v2635_v63, %v2633_v21 }
0x1284   :  { %v4067_v48 = vpop.eup %4066 }
0x1285   :  { %v2482_v4 = vadd.f32 1.0, %v4067_v48  ;;  %v4069_v8 = vpop.eup %4068  ;;  %v5056_v48 = vpack.c.bf16 %v2640_v32, %v2638_v37  ;;  %v3177_v37 = vld [vmem:[%s5145_s3 + $0x1] ss:$4 sm:$0x3] }
0x1286   :  { %v2485_v20 = vsub.f32 %v4069_v8, %v4945_v0  ;;  %v2639_v8 = vld [vmem:[#allocation8 + $0x2d0] sm:$0xff]  ;;  %v2911_v32 = vrot.slane %v3177_v37, %v4375_v56 }
0x1287   :  { %4070 = vrcp.f32 %v2482_v4  ;;  %v2637_v4 = vld [vmem:[#allocation8 + $0x2c0] sm:$0xff] }
0x1291   :  { %v4071_v27 = vpop.eup %4070 }
0x1292   :  { %v2486_v49 = vmul.f32 %v4071_v27, %v2485_v20  ;;  %v2642_v20 = vld [vmem:[#allocation8 + $0x2e8] sm:$0xff]  ;;  %v2644_v27 = vld [vmem:[#allocation8 + $0x2f8] sm:$0xff] }
0x1294   :  { %v5006_v22 = vadd.f32 %v2486_v49, %v4945_v0  ;;  %v2621_v0 = vld [vmem:[#allocation8 + $0x240] sm:$0xff]  ;;  %v5060_v49 = vpack.c.bf16 %v2639_v8, %v2637_v4 }
0x1295   :  { %v5036_v3 = vpack.c.bf16 %v2623_v38, %v2621_v0 }
0x1296   :  { %2597 = vmatmul.mubr.f32.vlgmr.msra.gmra.mrb[18].mxu1 %v5006_v22 }
0x1297   :  { %3856 = vmatpush1.bf16.msra.mxu1 %v4892_v39  ;;  %2851 = vmatprep.mubr.f32.mxu1 %v5164_v41  ;;  %v2614_v39 = vld [vmem:[#allocation8 + $0x208] sm:$0xff] }
0x1298   :  { %3858 = vmatprep.subr.bf16.mxu1 %v4896_v52  ;;  %v2616_v52 = vld [vmem:[#allocation8 + $0x218] sm:$0xff] }
0x129b   :  { %3860 = vmatpush1.bf16.msra.mxu1 %v4898_v13  ;;  %v3821_v13 = vpack.c.bf16 %v2616_v52, %v2614_v39  ;;  %v5063_v39 = vpack.c.bf16 %v2644_v27, %v2642_v20  ;;  %v2641_v52 = vld [vmem:[#allocation8 + $0x2e0] sm:$0xff]  ;;  %v2907_v20 = vrot.slane %v3177_v37, %v4381_v62 }
0x129c   :  { %3862 = vmatprep.subr.bf16.mxu1 %v4902_v7  ;;  %v2613_v7 = vld [vmem:[#allocation8 + $0x200] sm:$0xff] }
0x129d   :  { %3822 = vmatprep.subr.bf16.mxu0 %v3821_v13 }
0x129f   :  { %3864 = vmatpush1.bf16.msra.mxu1 %v4904_v40  ;;  %v2615_v40 = vld [vmem:[#allocation8 + $0x210] sm:$0xff] }
0x12a0   :  { %3866 = vmatprep.subr.bf16.mxu1 %v4908_v14  ;;  %v5025_v14 = vpack.c.bf16 %v2615_v40, %v2613_v7  ;;  %v3172_v40 = vld [vmem:[%s5145_s3 + $0x1] ss:$4 sm:$0x3] }
0x12a2   :  { %3824 = vmatpush1.bf16.msra.mxu0 %v5025_v14 }
0x12a3   :  { %3868 = vmatpush1.bf16.msra.mxu1 %v4910_v44  ;;  %v2618_v44 = vld [vmem:[#allocation8 + $0x228] sm:$0xff] }
0x12a4   :  { %3870 = vmatprep.subr.bf16.mxu1 %v4914_v24  ;;  %v2620_v24 = vld [vmem:[#allocation8 + $0x238] sm:$0xff] }
0x12a7   :  { %3872 = vmatpush1.bf16.msra.mxu1 %v4916_v2  ;;  %v5028_v2 = vpack.c.bf16 %v2620_v24, %v2618_v44  ;;  %v2529_v44 = vrot.slane %v3172_v40, %v4375_v56 }
0x12a8   :  { %3874 = vmatprep.subr.bf16.mxu1 %v4920_v25  ;;  %v2617_v25 = vld [vmem:[#allocation8 + $0x220] sm:$0xff] }
0x12a9   :  { %3826 = vmatprep.subr.bf16.mxu0 %v5028_v2 }
0x12ab   :  { %3876 = vmatpush1.bf16.msra.mxu1 %v4922_v31  ;;  %v2619_v31 = vld [vmem:[#allocation8 + $0x230] sm:$0xff] }
0x12ac   :  { %3878 = vmatprep.subr.bf16.mxu1 %v4924_v47  ;;  %v5030_v47 = vpack.c.bf16 %v2619_v31, %v2617_v25 }
0x12ae   :  { %3828 = vmatpush1.bf16.msra.mxu0 %v5030_v47 }
0x12af   :  { %3880 = vmatpush1.bf16.msra.mxu1 %v4928_v26  ;;  %v2622_v26 = vld [vmem:[#allocation8 + $0x248] sm:$0xff] }
0x12b0   :  { %3882 = vmatprep.subr.bf16.mxu1 %v4931_v55  ;;  %v2624_v55 = vld [vmem:[#allocation8 + $0x258] sm:$0xff] }
0x12b3   :  { %3884 = vmatpush1.bf16.msra.mxu1 %v4934_v53  ;;  %v5034_v53 = vpack.c.bf16 %v2624_v55, %v2622_v26  ;;  %v2525_v55 = vrot.slane %v3172_v40, %v4381_v62 }
0x12b4   :  { %3918 = vmatprep.subr.bf16.mxu1 %v3821_v13  ;;  %v2643_v13 = vld [vmem:[#allocation8 + $0x2f0] sm:$0xff] }
0x12b5   :  { %3830 = vmatprep.subr.bf16.mxu0 %v5034_v53  ;;  %v5066_v7 = vpack.c.bf16 %v2643_v13, %v2641_v52 }
0x12b6   :  { %3832 = vmatpush1.bf16.msra.mxu0 %v5036_v3 }
0x12b7   :  { %3834 = vmatprep.subr.bf16.mxu0 %v5040_v23 }
0x12ba   :  { %3836 = vmatpush1.bf16.msra.mxu0 %v5042_v16 }
0x12bb   :  { %3838 = vmatprep.subr.bf16.mxu0 %v5046_v59 }
0x12be   :  { %3840 = vmatpush1.bf16.msra.mxu0 %v5048_v6 }
0x12bf   :  { %3842 = vmatprep.subr.bf16.mxu0 %v5052_v5 }
0x12c2   :  { %3844 = vmatpush1.bf16.msra.mxu0 %v5054_v29 }
0x12c3   :  { %3846 = vmatprep.subr.bf16.mxu0 %v5056_v48 }
0x12c6   :  { %3848 = vmatpush1.bf16.msra.mxu0 %v5060_v49 }
0x12c7   :  { %3850 = vmatprep.subr.bf16.mxu0 %v5063_v39 }
0x12ca   :  { %3852 = vmatpush1.bf16.msra.mxu0 %v5066_v7 }
0x12cb   :  { %3886 = vmatprep.subr.bf16.mxu0 %v4950_v57 }
0x1369   :  { %v2598_v24 = vpop.f32.mrb[18].mxu1 }
0x136a   :  { %v2600_v25 = vpop.f32.mrb[19].mxu1  ;;  %v2599_v0 = vadd.f32 %v2598_v24, %v2525_v55  ;;  %v3179_v24 = vld [vmem:[%s5145_s3 + $0x2] ss:$4 sm:$0x3] }
0x136b   :  { %v2601_v31 = vadd.f32 %v2600_v25, %v2529_v44  ;;  %v3036_v25 = vrot.slane %v3179_v24, %v4375_v56 }
0x136d   :  { %v3173_v26 = vmul.f32 -1.442695, %v2601_v31 }
0x136f   :  { %4072 = vpow2.f32 %v3173_v26 }
0x1370   :  { %4074 = vtanh.f32 %v2599_v0 }
0x1379   :  { %v4073_v38 = vpop.eup %4072 }
0x137a   :  { %v2607_v45 = vadd.f32 1.0, %v4073_v38  ;;  %v4075_v30 = vpop.eup %4074  ;;  %v3032_v38 = vrot.slane %v3179_v24, %v4381_v62 }
0x137b   :  { %v2610_v57 = vsub.f32 %v4075_v30, %v5006_v22 }
0x137c   :  { %4076 = vrcp.f32 %v2607_v45 }
0x1386   :  { %v4077_v36 = vpop.eup %4076 }
0x1387   :  { %v2611_v51 = vmul.f32 %v4077_v36, %v2610_v57 }
0x1389   :  { %v2612_v60 = vadd.f32 %v2611_v51, %v5006_v22 }
0x138b   :  { %2722 = vmatmul.mubr.f32.vlgmr.msra.gmra.mrb[20].mxu0 %v2612_v60 }
0x138c   :  { %3888 = vmatpush1.bf16.msra.mxu0 %v4952_v35  ;;  %2978 = vmatprep.mubr.f32.mxu0 %v5164_v41  ;;  %v3174_v35 = vld [vmem:[%s5145_s3 + $0x2] ss:$4 sm:$0x3] }
0x138d   :  { %3890 = vmatprep.subr.bf16.mxu0 %v4956_v34  ;;  %v2654_v34 = vrot.slane %v3174_v35, %v4375_v56 }
0x1390   :  { %3892 = vmatpush1.bf16.msra.mxu0 %v4958_v17 }
0x1391   :  { %3894 = vmatprep.subr.bf16.mxu0 %v4962_v58 }
0x1394   :  { %3896 = vmatpush1.bf16.msra.mxu0 %v4964_v43 }
0x1395   :  { %3898 = vmatprep.subr.bf16.mxu0 %v4968_v12 }
0x1398   :  { %3900 = vmatpush1.bf16.msra.mxu0 %v4970_v46  ;;  %v2650_v46 = vrot.slane %v3174_v35, %v4381_v62 }
0x1399   :  { %3902 = vmatprep.subr.bf16.mxu0 %v4974_v9 }
0x139c   :  { %3904 = vmatpush1.bf16.msra.mxu0 %v4976_v18 }
0x139d   :  { %3906 = vmatprep.subr.bf16.mxu0 %v4980_v28 }
0x13a0   :  { %3908 = vmatpush1.bf16.msra.mxu0 %v4982_v61 }
0x13a1   :  { %3910 = vmatprep.subr.bf16.mxu0 %v4984_v10 }
0x13a4   :  { %3912 = vmatpush1.bf16.msra.mxu0 %v4988_v50 }
0x13a5   :  { %3914 = vmatprep.subr.bf16.mxu0 %v4991_v54 }
0x13a8   :  { %3916 = vmatpush1.bf16.msra.mxu0 %v4994_v1 }
0x145e   :  { %v2723_v17 = vpop.f32.mrb[20].mxu0 }
0x145f   :  { %v2725_v58 = vpop.f32.mrb[21].mxu0  ;;  %v2724_v9 = vadd.f32 %v2723_v17, %v2650_v46 }
0x1460   :  { %v2726_v43 = vadd.f32 %v2725_v58, %v2654_v34 }
0x1462   :  { %v3175_v12 = vmul.f32 -1.442695, %v2726_v43 }
0x1464   :  { %4078 = vpow2.f32 %v3175_v12 }
0x1465   :  { %4080 = vtanh.f32 %v2724_v9 }
0x146e   :  { %v4079_v18 = vpop.eup %4078 }
0x146f   :  { %v2732_v28 = vadd.f32 1.0, %v4079_v18  ;;  %v4081_v61 = vpop.eup %4080 }
0x1470   :  { %v2735_v10 = vsub.f32 %v4081_v61, %v2612_v60 }
0x1471   :  { %4082 = vrcp.f32 %v2732_v28 }
0x147b   :  { %v4083_v50 = vpop.eup %4082 }
0x147c   :  { %v2736_v54 = vmul.f32 %v4083_v50, %v2735_v10 }
0x147e   :  { %v2737_v1 = vadd.f32 %v2736_v54, %v2612_v60 }
0x1480   :  { %2739 = vst [vmem:[#allocation9 + $0x30] sm:$0xff] %v2737_v1  ;;  %2852 = vmatmul.mubr.f32.vlgmr.msra.gmra.mrb[20].mxu1 %v2737_v1 }
0x1481   :  { %3920 = vmatpush1.bf16.msra.mxu1 %v5025_v14  ;;  %3103 = vmatprep.mubr.f32.mxu1 %v5164_v41  ;;  %v2775_v41 = vld [vmem:[%s5145_s3] ss:$4 sm:$0x3]  ;;  %s4168_s3 = scalar_lea.vmem %s3129_s17, 1024 }
0x1482   :  { %3922 = vmatprep.subr.bf16.mxu1 %v5028_v2  ;;  %v2784_v22 = vrot.slane %v2775_v41, %v4375_v56  ;;  %v2742_v2 = vld [vmem:[#allocation6 + $0x78] sm:$0xff]  ;;  %p4169_p10 = scmp.ne.s32.totalorder %s3129_s17, %s4168_s3  ;;  %p4174_p12 = scmp.lt.s32.totalorder %s4168_s3, %s4168_s3 }
0x1484   :  { %p4175_p13 = por %p4174_p12, %p4173_p11 }
0x1485   :  { %3924 = vmatpush1.bf16.msra.mxu1 %v5030_v47 }
0x1486   :  { %3926 = vmatprep.subr.bf16.mxu1 %v5034_v53  ;;  %p4176_p0 = pnand %p4175_p13, %p4169_p10 }
0x1489   :  { %3928 = vmatpush1.bf16.msra.mxu1 %v5036_v3 }
0x148a   :  { %3930 = vmatprep.subr.bf16.mxu1 %v5040_v23  ;;  %v2780_v23 = vrot.slane %v2775_v41, %v4381_v62 }
0x148d   :  { %3932 = vmatpush1.bf16.msra.mxu1 %v5042_v16 }
0x148e   :  { %3934 = vmatprep.subr.bf16.mxu1 %v5046_v59  ;;  %v2741_v59 = vld [vmem:[#allocation6 + $0x70] sm:$0xff] }
0x1491   :  { %3936 = vmatpush1.bf16.msra.mxu1 %v5048_v6 }
0x1492   :  { %3938 = vmatprep.subr.bf16.mxu1 %v5052_v5 }
0x1495   :  { %3940 = vmatpush1.bf16.msra.mxu1 %v5054_v29 }
0x1496   :  { %3942 = vmatprep.subr.bf16.mxu1 %v5056_v48 }
0x1499   :  { %3944 = vmatpush1.bf16.msra.mxu1 %v5060_v49 }
0x149a   :  { %3946 = vmatprep.subr.bf16.mxu1 %v5063_v39 }
0x149d   :  { %3948 = vmatpush1.bf16.msra.mxu1 %v5066_v7 }
0x1553   :  { %v2853_v14 = vpop.f32.mrb[20].mxu1 }
0x1554   :  { %v2855_v47 = vpop.f32.mrb[21].mxu1  ;;  %v2854_v11 = vadd.f32 %v2853_v14, %v2780_v23 }
0x1555   :  { %v2856_v53 = vadd.f32 %v2855_v47, %v2784_v22 }
0x1556   :  { %v2858_v42 = vadd.f32 %v2854_v11, %v2741_v59 }
0x1557   :  { %v2859_v3 = vadd.f32 %v2856_v53, %v2742_v2 }
0x1559   :  { %v3176_v16 = vmul.f32 -1.442695, %v2859_v3 }
0x155b   :  { %4084 = vpow2.f32 %v3176_v16 }
0x155c   :  { %4086 = vtanh.f32 %v2858_v42 }
0x1565   :  { %v4085_v19 = vpop.eup %4084 }
0x1566   :  { %v2864_v6 = vadd.f32 1.0, %v4085_v19  ;;  %v4087_v15 = vpop.eup %4086 }
0x1567   :  { %v2867_v33 = vsub.f32 %v4087_v15, %v2737_v1 }
0x1568   :  { %4088 = vrcp.f32 %v2864_v6 }
0x1572   :  { %v4089_v21 = vpop.eup %4088 }
0x1573   :  { %v2868_v5 = vmul.f32 %v4089_v21, %v2867_v33 }
0x1575   :  { %v2869_v63 = vadd.f32 %v2868_v5, %v2737_v1 }
0x1577   :  { %2979 = vmatmul.mubr.f32.vlgmr.msra.gmra.mrb[22].mxu0 %v2869_v63 }
0x164a   :  { %v2980_v29 = vpop.f32.mrb[22].mxu0 }
0x164b   :  { %v2982_v48 = vpop.f32.mrb[23].mxu0  ;;  %v2981_v27 = vadd.f32 %v2980_v29, %v2907_v20 }
0x164c   :  { %v2983_v4 = vadd.f32 %v2982_v48, %v2911_v32 }
0x164e   :  { %v3178_v8 = vmul.f32 -1.442695, %v2983_v4 }
0x1650   :  { %4090 = vpow2.f32 %v3178_v8 }
0x1651   :  { %4092 = vtanh.f32 %v2981_v27 }
0x165a   :  { %v4091_v49 = vpop.eup %4090 }
0x165b   :  { %v2989_v39 = vadd.f32 1.0, %v4091_v49  ;;  %v4093_v52 = vpop.eup %4092 }
0x165c   :  { %v2992_v13 = vsub.f32 %v4093_v52, %v2869_v63 }
0x165d   :  { %4094 = vrcp.f32 %v2989_v39 }
0x1667   :  { %v4095_v7 = vpop.eup %4094 }
0x1668   :  { %v2993_v40 = vmul.f32 %v4095_v7, %v2992_v13 }
0x166a   :  { %v2994_v44 = vadd.f32 %v2993_v40, %v2869_v63 }
0x166c   :  { %3104 = vmatmul.mubr.f32.vlgmr.msra.gmra.mrb[22].mxu1 %v2994_v44 }
0x173f   :  { %v3105_v31 = vpop.f32.mrb[22].mxu1 }
0x1740   :  { %v3107_v26 = vpop.f32.mrb[23].mxu1  ;;  %v3106_v45 = vadd.f32 %v3105_v31, %v3032_v38 }
0x1741   :  { %v3108_v55 = vadd.f32 %v3107_v26, %v3036_v25 }
0x1743   :  { %v3180_v0 = vmul.f32 -1.442695, %v3108_v55 }
0x1745   :  { %4096 = vpow2.f32 %v3180_v0 }
0x1746   :  { %4098 = vtanh.f32 %v3106_v45 }
0x174f   :  { %v4097_v30 = vpop.eup %4096 }
0x1750   :  { %v3114_v57 = vadd.f32 1.0, %v4097_v30  ;;  %v4099_v36 = vpop.eup %4098 }
0x1751   :  { %v3117_v51 = vsub.f32 %v4099_v36, %v2994_v44 }
0x1752   :  { %4100 = vrcp.f32 %v3114_v57 }
0x175c   :  { %v4101_v60 = vpop.eup %4100 }
0x175d   :  { %v3118_v35 = vmul.f32 %v4101_v60, %v3117_v51 }
0x175f   :  { %v3119_v56 = vadd.f32 %v3118_v35, %v2994_v44 }
0x1761   :  { %3121 = vst [vmem:[#allocation9 + $0x38] sm:$0xff] %v3119_v56 }
0x1762   :  { %4179 = shalt.err (!%p4176_p0)
}
0x1763   :  { %s4180_s20 = scalar_lea.hbm %s5146_s4, 1024 }
0x1764   :  { %p4181_p1 = scmp.ne.s32.totalorder %s5146_s4, %s4180_s20  ;;  %p4184_p2 = scmp.lt.u32.totalorder %s4180_s20, %s5146_s4 }
0x1766   :  { %p4186_p3 = pnand %p4184_p2, %p4181_p1 }
0x1768   :  { %4189 = shalt.err (!%p4186_p3)
}
0x1769   :  { %s4203_s24 = smov 128   ;;  %s4204_s2 = smov 8  }
0x176a   :  { %3134 = dma.vmem_to_hbm [thread:$0]  %s3129_s17, 1024, %s5146_s4, [#allocation5], %s4203_s24, %s4203_s24, %s4204_s2  }
0x176b   :  { %4194 = dma.done.wait [#allocation5], 1024  }
0x176c   :  { %4195 = vsyncadd [#allocation5], 4294966272 }
0x176d   :  { %3138 = vsyncpa [#allocation4], 1 }
0x176e   :  { %3139 = vsyncpa [#allocation7], 1 }
0x176f   :  { %3140 = vsyncpa [#allocation5], 1 }

</bundles_post_ra>
